<compile_context>
chip_gen: v6e
topology: v6e:2x2x1
jax: 0.10.0
libtpu: 0.0.40
codegen_flags: <defaults>
</compile_context>

<pallas_src>
import functools

import jax
import jax.numpy as jnp
from jax.experimental import pallas as pl
from jax.experimental.pallas import tpu as pltpu

NUM_CLASSES = 50
BN_EPS = 1e-5
LAYER_CFG = [(64, 3, 1), (128, 4, 2), (256, 23, 2), (512, 3, 2)]   # ResNet-101

ACT_DTYPE = jnp.bfloat16           # inter-layer activation dtype


def _round_up(x, m):
    return -(-x // m) * m


def _pick_tile(dim, candidates):
    """Pick the tile from `candidates` minimizing padded size; prefer bigger tiles."""
    best_pad, best_t = None, None
    for t in candidates:
        p = _round_up(dim, t)
        if best_pad is None or p < best_pad or (p == best_pad and t > best_t):
            best_pad, best_t = p, t
    return best_t


def _maybe_pad2(x, rows, cols, value=0):
    r, c = x.shape
    if r == rows and c == cols:
        return x
    return jnp.pad(x, ((0, rows - r), (0, cols - c)), constant_values=value)


# --------------------------------------------------------------------------
# Fused conv matmul kernel:  out = relu?(A @ B + bias [+ residual])
#   bf16 operands, f32 VMEM accumulator, epilogue fused into the last k-step.
# --------------------------------------------------------------------------
def _make_fused_matmul_kernel(relu, has_res):
    def kernel(*refs):
        if has_res:
            a_ref, b_ref, c_ref, r_ref, o_ref, acc_ref = refs
        else:
            a_ref, b_ref, c_ref, o_ref, acc_ref = refs
        k = pl.program_id(2)

        @pl.when(k == 0)
        def _():
            acc_ref[...] = jnp.zeros_like(acc_ref)

        # bf16 x bf16 -> f32 accumulation into the resident VMEM scratch.
        acc_ref[...] += jnp.dot(a_ref[...], b_ref[...],
                                preferred_element_type=jnp.float32)

        @pl.when(k == pl.num_programs(2) - 1)
        def _():
            y = acc_ref[...] + c_ref[...].astype(jnp.float32)
            if has_res:
                y = y + r_ref[...].astype(jnp.float32)
            if relu:
                y = jnp.maximum(y, 0.0)
            o_ref[...] = y.astype(o_ref.dtype)

    return kernel


@functools.lru_cache(maxsize=None)
def _fused_matmul_fn(Mp, Kp, Np, TM, TN, TK, relu, has_res, out_dtype_name):
    out_dtype = jnp.dtype(out_dtype_name)
    kernel = _make_fused_matmul_kernel(relu, has_res)
    grid = (Mp // TM, Np // TN, Kp // TK)
    in_specs = [
        pl.BlockSpec((TM, TK), lambda i, j, k: (i, k)),    # A: bf16 patches
        pl.BlockSpec((TK, TN), lambda i, j, k: (k, j)),    # B: bf16 weights (BN folded)
        pl.BlockSpec((1, TN), lambda i, j, k: (0, j)),     # bias (f32)
    ]
    if has_res:
        in_specs.append(pl.BlockSpec((TM, TN), lambda i, j, k: (i, j)))  # residual bf16
    return pl.pallas_call(
        kernel,
        out_shape=jax.ShapeDtypeStruct((Mp, Np), out_dtype),
        grid_spec=pltpu.PrefetchScalarGridSpec(
            num_scalar_prefetch=0,
            grid=grid,
            in_specs=in_specs,
            out_specs=pl.BlockSpec((TM, TN), lambda i, j, k: (i, j)),
            scratch_shapes=[pltpu.VMEM((TM, TN), jnp.float32)],
        ),
        compiler_params=pltpu.CompilerParams(
            dimension_semantics=("parallel", "parallel", "arbitrary")),
    )


def fused_matmul(a, b, bias, res, relu, out_dtype=ACT_DTYPE):
    """Pad to tile multiples, run fused Pallas matmul, slice back."""
    M, K = a.shape
    N = b.shape[1]
    TM = _pick_tile(M, (256, 128, 64, 32, 16, 8))
    TN = _pick_tile(N, (256, 128))
    TK = _pick_tile(K, (1024, 768, 640, 512, 384, 256, 128))
    Mp, Kp, Np = _round_up(M, TM), _round_up(K, TK), _round_up(N, TN)
    a_p = _maybe_pad2(a.astype(jnp.bfloat16), Mp, Kp)
    b_p = _maybe_pad2(b.astype(jnp.bfloat16), Kp, Np)
    c_p = _maybe_pad2(bias.astype(jnp.float32), 1, Np)
    args = [a_p, b_p, c_p]
    has_res = res is not None
    if has_res:
        args.append(_maybe_pad2(res.astype(jnp.bfloat16), Mp, Np))
    out = _fused_matmul_fn(Mp, Kp, Np, TM, TN, TK, bool(relu), has_res,
                           jnp.dtype(out_dtype).name)(*args)
    if Mp != M or Np != N:
        out = out[:M, :N]
    return out


# --------------------------------------------------------------------------
# Tiled pooling kernels
# --------------------------------------------------------------------------
def _maxpool_kernel(x_ref, o_ref):
    # (TMp, window, C) -> max over the pooling window axis (bf16 in/out)
    o_ref[...] = jnp.max(x_ref[...], axis=1)


@functools.lru_cache(maxsize=None)
def _maxpool_fn(Mp, KK, C, TMp, dtype_name):
    dt = jnp.dtype(dtype_name)
    return pl.pallas_call(
        _maxpool_kernel,
        out_shape=jax.ShapeDtypeStruct((Mp, C), dt),
        grid=(Mp // TMp,),
        in_specs=[pl.BlockSpec((TMp, KK, C), lambda i: (i, 0, 0))],
        out_specs=pl.BlockSpec((TMp, C), lambda i: (i, 0)),
        compiler_params=pltpu.CompilerParams(dimension_semantics=("parallel",)),
    )


def _avgpool_kernel(x_ref, o_ref):
    # (N, H*W, TC) -> global spatial mean for a channel tile (f32 accumulation)
    o_ref[...] = jnp.mean(x_ref[...].astype(jnp.float32), axis=1)


@functools.lru_cache(maxsize=None)
def _avgpool_fn(N, HW, Cp, TC):
    return pl.pallas_call(
        _avgpool_kernel,
        out_shape=jax.ShapeDtypeStruct((N, Cp), jnp.float32),
        grid=(Cp // TC,),
        in_specs=[pl.BlockSpec((N, HW, TC), lambda c: (0, 0, c))],
        out_specs=pl.BlockSpec((N, TC), lambda c: (0, c)),
        compiler_params=pltpu.CompilerParams(dimension_semantics=("parallel",)),
    )


# --------------------------------------------------------------------------
# JAX glue: im2col, conv+bn wrapper, pooling wrappers, bottleneck
# --------------------------------------------------------------------------
def im2col(x, kh, kw, stride, pad):
    """x: (N,H,W,C) NHWC -> patches (N*Ho*Wo, kh*kw*C), plus (N,Ho,Wo)."""
    N, H, W, C = x.shape
    if pad:
        x = jnp.pad(x, ((0, 0), (pad, pad), (pad, pad), (0, 0)))
    Ho = (H + 2 * pad - kh) // stride + 1
    Wo = (W + 2 * pad - kw) // stride + 1
    cols = []
    for i in range(kh):
        for j in range(kw):
            cols.append(x[:, i:i + stride * Ho:stride, j:j + stride * Wo:stride, :])
    patches = jnp.stack(cols, axis=3)                    # (N,Ho,Wo,kh*kw,C)
    return patches.reshape(N * Ho * Wo, kh * kw * C), (N, Ho, Wo)


def conv_bn(x, w, bias, kh, kw, stride, pad, relu, residual=None):
    """Conv (im2col matmul) with BN folded into weights (+residual)(+ReLU)."""
    patches, (N, Ho, Wo) = im2col(x, kh, kw, stride, pad)
    cout = w.shape[1]
    res = None if residual is None else residual.reshape(N * Ho * Wo, cout)
    y = fused_matmul(patches, w, bias, res, relu, out_dtype=ACT_DTYPE)
    return y.reshape(N, Ho, Wo, cout)


def maxpool_3x3_s2(x):
    """nn.MaxPool2d(kernel_size=3, stride=2, padding=1) in NHWC (bf16)."""
    N, H, W, C = x.shape
    k, s, pad = 3, 2, 1
    neg = jnp.finfo(x.dtype).min
    xp = jnp.pad(x, ((0, 0), (pad, pad), (pad, pad), (0, 0)), constant_values=neg)
    Ho = (H + 2 * pad - k) // s + 1
    Wo = (W + 2 * pad - k) // s + 1
    cols = []
    for i in range(k):
        for j in range(k):
            cols.append(xp[:, i:i + s * Ho:s, j:j + s * Wo:s, :])
    stack = jnp.stack(cols, axis=3).reshape(N * Ho * Wo, k * k, C)
    M = N * Ho * Wo
    TMp = _pick_tile(M, (512, 256, 128, 64, 32, 16, 8))
    Mp = _round_up(M, TMp)
    if Mp != M:
        stack = jnp.pad(stack, ((0, Mp - M), (0, 0), (0, 0)), constant_values=neg)
    out = _maxpool_fn(Mp, k * k, C, TMp, jnp.dtype(x.dtype).name)(stack)
    return out[:M].reshape(N, Ho, Wo, C)


def global_avgpool(x):
    """nn.AdaptiveAvgPool2d((1,1)) + flatten, NHWC -> (N, C) f32."""
    N, H, W, C = x.shape
    TC = _pick_tile(C, (512, 256, 128))
    Cp = _round_up(C, TC)
    xr = x.reshape(N, H * W, C)
    if Cp != C:
        xr = jnp.pad(xr, ((0, 0), (0, 0), (0, Cp - C)))
    out = _avgpool_fn(N, H * W, Cp, TC)(xr)
    return out[:, :C]


# --------------------------------------------------------------------------
# jit-compiled forward pieces (stem / bottleneck / head) so all glue fuses
# --------------------------------------------------------------------------
@jax.jit
def _stem_fwd(x_nchw, w, b):
    x = jnp.transpose(x_nchw, (0, 2, 3, 1)).astype(ACT_DTYPE)        # NCHW -> NHWC
    x = conv_bn(x, w, b, 7, 7, 2, 3, relu=True)                      # conv1+bn1+relu
    return maxpool_3x3_s2(x)


@functools.partial(jax.jit, static_argnames=('stride',))
def _bottleneck_fwd(x, p, stride):
    """torchvision Bottleneck: 1x1 -> 3x3(stride) -> 1x1(x4), residual, ReLU."""
    identity = x
    out = conv_bn(x, p['w1'], p['b1'], 1, 1, 1, 0, relu=True)
    out = conv_bn(out, p['w2'], p['b2'], 3, 3, stride, 1, relu=True)
    if 'wd' in p:
        identity = conv_bn(x, p['wd'], p['bd'], 1, 1, stride, 0, relu=False)
    return conv_bn(out, p['w3'], p['b3'], 1, 1, 1, 0, relu=True, residual=identity)


@jax.jit
def _head_fwd(x, fc_w, fc_b):
    feat = global_avgpool(x)                                         # (N, 2048) f32
    return fused_matmul(feat, fc_w, fc_b, None, relu=False,
                        out_dtype=jnp.float32)                       # fc: 2048 -> 50


def classifier_forward(params, x_nchw):
    x = _stem_fwd(x_nchw, params['conv1_w'], params['conv1_b'])
    for (_, _, stride), blocks in zip(LAYER_CFG, params['layers']):
        for b_idx, p in enumerate(blocks):
            x = _bottleneck_fwd(x, p, stride=(stride if b_idx == 0 else 1))
    return _head_fwd(x, params['fc_w'], params['fc_b'])


# --------------------------------------------------------------------------
# Deterministic synthetic parameters (ResNet-101 topology, fc -> 50 classes)
# BN (eval mode) is folded: w' = w * scale, bias = beta - mean * scale.
# --------------------------------------------------------------------------
def _init_conv_bn(key, kh, kw, cin, cout):
    fan_in = kh * kw * cin
    w = jax.random.normal(key, (kh, kw, cin, cout), jnp.float32)
    w = w * jnp.sqrt(2.0 / fan_in)                       # He init
    w = w.reshape(kh * kw * cin, cout)                   # HWIO flattened
    gamma = jnp.ones((cout,), jnp.float32)
    beta = jnp.zeros((cout,), jnp.float32)
    mean = jnp.zeros((cout,), jnp.float32)
    var = jnp.ones((cout,), jnp.float32)
    scale = gamma / jnp.sqrt(var + BN_EPS)
    bias = beta - mean * scale
    w_folded = (w * scale[None, :]).astype(jnp.bfloat16)
    return w_folded, bias.reshape(1, cout)


def make_resnet101_params(key):
    keys = iter(jax.random.split(key, 512))
    params = {}
    params['conv1_w'], params['conv1_b'] = _init_conv_bn(next(keys), 7, 7, 3, 64)

    in_ch = 64
    layers = []
    for width, nblocks, stride in LAYER_CFG:
        blocks = []
        for b in range(nblocks):
            s = stride if b == 0 else 1
            p = {}
            p['w1'], p['b1'] = _init_conv_bn(next(keys), 1, 1, in_ch, width)
            p['w2'], p['b2'] = _init_conv_bn(next(keys), 3, 3, width, width)
            p['w3'], p['b3'] = _init_conv_bn(next(keys), 1, 1, width, width * 4)
            if s != 1 or in_ch != width * 4:
                p['wd'], p['bd'] = _init_conv_bn(next(keys), 1, 1, in_ch, width * 4)
            blocks.append(p)
            in_ch = width * 4
        layers.append(blocks)
    params['layers'] = layers

    bound = 1.0 / (2048 ** 0.5)                          # nn.Linear default init
    params['fc_w'] = jax.random.uniform(next(keys), (2048, NUM_CLASSES),
                                        jnp.float32, -bound, bound).astype(jnp.bfloat16)
    params['fc_b'] = jax.random.uniform(next(keys), (NUM_CLASSES,),
                                        jnp.float32, -bound, bound).reshape(1, -1)
    return params


if __name__ == "__main__":
    key = jax.random.PRNGKey(0)
    pkey, xkey = jax.random.split(key)
    params = make_resnet101_params(pkey)
    # small, shape-consistent input: batch=2, 3 channels (RGB), 32x32 spatial
    x = jax.random.normal(xkey, (2, 3, 32, 32), jnp.float32)
    logits = classifier_forward(params, x)
    logits = jax.block_until_ready(logits)
    assert logits.shape == (2, NUM_CLASSES), logits.shape
    assert bool(jnp.all(jnp.isfinite(logits)))
    print("KERNEL_OK")
</pallas_src>

<mosaic_0001>
module attributes {stable_mosaic.version = 11 : i64} {
  func.func @kernel(%arg0: i32, %arg1: i32, %arg2: i32, %arg3: memref<256x256xbf16, #tpu.memory_space<vmem>>, %arg4: memref<256x128xbf16, #tpu.memory_space<vmem>>, %arg5: memref<1x128xf32, #tpu.memory_space<vmem>>, %arg6: memref<256x128xbf16, #tpu.memory_space<vmem>>, %arg7: memref<256x128xf32, #tpu.memory_space<vmem>>) attributes {dimension_semantics = [#tpu.dimension_semantics<parallel>, #tpu.dimension_semantics<parallel>, #tpu.dimension_semantics<arbitrary>], iteration_bounds = array<i64: 2, 1, 1>, scalar_prefetch = 0 : i64, scratch_operands = 1 : i64, tpu.core_type = #tpu.core_type<tc>, window_params = [{transform_indices = @transform_0, window_bounds = array<i64: 256, 256>}, {transform_indices = @transform_1, window_bounds = array<i64: 256, 128>}, {transform_indices = @transform_2, window_bounds = array<i64: 1, 128>}, {transform_indices = @transform_3, window_bounds = array<i64: 256, 128>}]} {
    %c0_i32 = arith.constant 0 : i32
    %0 = arith.cmpi eq, %arg2, %c0_i32 : i32
    %1 = arith.extui %0 : i1 to i32
    %c0_i32_0 = arith.constant 0 : i32
    %2 = arith.cmpi ne, %1, %c0_i32_0 : i32
    scf.if %2 {
      %cst_10 = arith.constant 0.000000e+00 : f32
      %12 = vector.broadcast %cst_10 : f32 to vector<256x128xf32>
      %c0_11 = arith.constant 0 : index
      %c0_12 = arith.constant 0 : index
      %13 = vector.load %arg7[%c0_11, %c0_12] : memref<256x128xf32, #tpu.memory_space<vmem>>, vector<256x128xf32>
      tpu.vector_store %arg7[%c0_11, %c0_12], %12 {strides = array<i32>} : memref<256x128xf32, #tpu.memory_space<vmem>>, vector<256x128xf32>,
    } else {
    }
    %c0 = arith.constant 0 : index
    %c0_1 = arith.constant 0 : index
    %3 = vector.load %arg7[%c0, %c0_1] : memref<256x128xf32, #tpu.memory_space<vmem>>, vector<256x128xf32>
    %c0_2 = arith.constant 0 : index
    %c0_3 = arith.constant 0 : index
    %4 = vector.load %arg3[%c0_2, %c0_3] : memref<256x256xbf16, #tpu.memory_space<vmem>>, vector<256x256xbf16>
    %c0_4 = arith.constant 0 : index
    %c0_5 = arith.constant 0 : index
    %5 = vector.load %arg4[%c0_4, %c0_5] : memref<256x128xbf16, #tpu.memory_space<vmem>>, vector<256x128xbf16>
    %cst = arith.constant dense<0.000000e+00> : vector<256x128xf32>
    %6 = tpu.matmul %4, %5, %cst {dimension_numbers = #tpu.dot_dimension_numbers<[1], [0], [0], [1], [0, 0, 1, 1], [], []>} : vector<256x256xbf16>, vector<256x128xbf16>, vector<256x128xf32> -> vector<256x128xf32>
    %7 = arith.addf %3, %6 : vector<256x128xf32>
    %c0_6 = arith.constant 0 : index
    %c0_7 = arith.constant 0 : index
    %8 = vector.load %arg7[%c0_6, %c0_7] : memref<256x128xf32, #tpu.memory_space<vmem>>, vector<256x128xf32>
    tpu.vector_store %arg7[%c0_6, %c0_7], %7 {strides = array<i32>} : memref<256x128xf32, #tpu.memory_space<vmem>>, vector<256x128xf32>,
    %c0_i32_8 = arith.constant 0 : i32
    %9 = arith.cmpi eq, %arg2, %c0_i32_8 : i32
    %10 = arith.extui %9 : i1 to i32
    %c0_i32_9 = arith.constant 0 : i32
    %11 = arith.cmpi ne, %10, %c0_i32_9 : i32
    scf.if %11 {
      %c0_10 = arith.constant 0 : index
      %c0_11 = arith.constant 0 : index
      %12 = vector.load %arg7[%c0_10, %c0_11] : memref<256x128xf32, #tpu.memory_space<vmem>>, vector<256x128xf32>
      %c0_12 = arith.constant 0 : index
      %c0_13 = arith.constant 0 : index
      %13 = vector.load %arg5[%c0_12, %c0_13] : memref<1x128xf32, #tpu.memory_space<vmem>>, vector<1x128xf32>
      %14 = vector.broadcast %13 : vector<1x128xf32> to vector<256x128xf32>
      %15 = arith.addf %12, %14 : vector<256x128xf32>
      %cst_14 = arith.constant 0.000000e+00 : f32
      %16 = vector.broadcast %cst_14 : f32 to vector<256x128xf32>
      %17 = arith.maximumf %15, %16 : vector<256x128xf32>
      %18 = arith.truncf %17 : vector<256x128xf32> to vector<256x128xbf16>
      %c0_15 = arith.constant 0 : index
      %c0_16 = arith.constant 0 : index
      %19 = vector.load %arg6[%c0_15, %c0_16] : memref<256x128xbf16, #tpu.memory_space<vmem>>, vector<256x128xbf16>
      tpu.vector_store %arg6[%c0_15, %c0_16], %18 {strides = array<i32>} : memref<256x128xbf16, #tpu.memory_space<vmem>>, vector<256x128xbf16>,
    } else {
    }
    return
  }
  func.func @transform_0(%arg0: i32, %arg1: i32, %arg2: i32) -> (i32, i32) {
    %c0_i32 = arith.constant 0 : i32
    return %arg0, %arg2 : i32, i32
  }
  func.func @transform_1(%arg0: i32, %arg1: i32, %arg2: i32) -> (i32, i32) {
    %c0_i32 = arith.constant 0 : i32
    return %arg2, %arg1 : i32, i32
  }
  func.func @transform_2(%arg0: i32, %arg1: i32, %arg2: i32) -> (i32, i32) {
    %c0_i32 = arith.constant 0 : i32
    %c0_i32_0 = arith.constant 0 : i32
    return %c0_i32, %arg1 : i32, i32
  }
  func.func @transform_3(%arg0: i32, %arg1: i32, %arg2: i32) -> (i32, i32) {
    %c0_i32 = arith.constant 0 : i32
    return %arg0, %arg1 : i32, i32
  }
}

module attributes {stable_mosaic.version = 11 : i64} {
  func.func @_maxpool_kernel(%arg0: i32, %arg1: memref<128x9x64xbf16, #tpu.memory_space<vmem>>, %arg2: memref<128x64xbf16, #tpu.memory_space<vmem>>) attributes {dimension_semantics = [#tpu.dimension_semantics<parallel>], iteration_bounds = array<i64: 1>, scalar_prefetch = 0 : i64, scratch_operands = 0 : i64, tpu.core_type = #tpu.core_type<tc>, window_params = [{transform_indices = @transform_0, window_bounds = array<i64: 128, 9, 64>}, {transform_indices = @transform_1, window_bounds = array<i64: 128, 64>}]} {
    %c0 = arith.constant 0 : index
    %c0_0 = arith.constant 0 : index
    %c0_1 = arith.constant 0 : index
    %0 = vector.load %arg1[%c0, %c0_0, %c0_1] : memref<128x9x64xbf16, #tpu.memory_space<vmem>>, vector<128x9x64xbf16>
    %cst = arith.constant dense<0xFF80> : vector<128x64xbf16>
    %1 = vector.multi_reduction <maximumf>, %0, %cst [1] : vector<128x9x64xbf16> to vector<128x64xbf16>
    %c0_2 = arith.constant 0 : index
    %c0_3 = arith.constant 0 : index
    %2 = vector.load %arg2[%c0_2, %c0_3] : memref<128x64xbf16, #tpu.memory_space<vmem>>, vector<128x64xbf16>
    tpu.vector_store %arg2[%c0_2, %c0_3], %1 {strides = array<i32>} : memref<128x64xbf16, #tpu.memory_space<vmem>>, vector<128x64xbf16>,
    return
  }
  func.func @transform_0(%arg0: i32) -> (i32, i32, i32) {
    %c0_i32 = arith.constant 0 : i32
    %c0_i32_0 = arith.constant 0 : i32
    %c0_i32_1 = arith.constant 0 : i32
    return %arg0, %c0_i32, %c0_i32_0 : i32, i32, i32
  }
  func.func @transform_1(%arg0: i32) -> (i32, i32) {
    %c0_i32 = arith.constant 0 : i32
    %c0_i32_0 = arith.constant 0 : i32
    return %arg0, %c0_i32 : i32, i32
  }
}

</mosaic_0001>

<bundles_post_ra>
// kernel: _stem_fwd.2
= control target key start
LH: loop header
LB: loop body
LE: loop exit
PB: predicated region body
PF: predicated region fallthrough
CT: control target
= control target key end

     0   :  { %s1744_s12 = smov 0   ;;  %s1746_s13 = smov 0   ;;  %s1918_s0 = inlined_call_operand.vmem [shape: bf16[512,256], index: 0, kind: input, shape index: {}]   ;;  %s1919_s1 = inlined_call_operand.vmem [shape: bf16[256,128], index: 1, kind: input, shape index: {}]   ;;  %s1920_s2 = inlined_call_operand.vmem [shape: f32[1,128], index: 2, kind: input, shape index: {}]   ;;  %s1921_s3 = inlined_call_operand.vmem [shape: bf16[512,128], index: 3, kind: output, shape index: {}]  }
   0x1   :  { %s1748_s14 = smov 0  }
   0x2 LB: > { %s32_s15 = sadd.s32 1, %s1718_s13  ;;  %p1267_p0 = scmp.ge.s32.totalorder %s1722_s14, 1  ;;  %s1722_s14 = sphi %s1748_s14, %s13_s14   ;;  %s1718_s13 = sphi %s1746_s13, %s1923_s13   ;;  %s1714_s12 = sphi %s1744_s12, %s1922_s12  }
   0x3   : > { %p34_p1 = scmp.ge.s32.totalorder %s32_s15, 2  ;;  %p191_p2 = scmp.lt.s32.totalorder %s1722_s14, 3 }
   0x5   : > { %s1925_s15 = smov (%p34_p1, %s32_s15), 0  ;;  %p192_p3 = pnand %p1267_p0, %p191_p2 }
   0x6   : > { %s1268_s18 = sshll.u32 (!%p192_p3), %s1714_s12, 5 }
   0x7   : > { %195 = sbr.rel (%p192_p3) target bundleno = 309 (0x135), region = 32  ;;  %p236_p4 = scmp.lt.s32.totalorder (!%p192_p3), %s1268_s18, 63 }
   0xc   : > { %v1636_v0 = vld [vmem:[%s1919_s1 + $0x78] sm:$0xff]   ;;  %v1638_v2 = vld [vmem:[%s1919_s1 + $0x70] sm:$0xff]   ;;  %v1640_v4 = vld [vmem:[%s1919_s1 + $0x68] sm:$0xff]   ;;  %s1927_s18 = smov (!%p236_p4, %s1268_s18), 63 }
   0xd   : > { %v1637_v1 = vld [vmem:[%s1919_s1 + $0x38] sm:$0xff]   ;;  %1484 = vmatprep.subr.bf16.mxu0 %v1636_v0  ;;  %1596 = vmatprep.subr.bf16.mxu1 %v1636_v0  ;;  %v1639_v3 = vld [vmem:[%s1919_s1 + $0x30] sm:$0xff]   ;;  %v1641_v5 = vld [vmem:[%s1919_s1 + $0x28] sm:$0xff]   ;;  %s1356_s6 = sshll.u32 %s1927_s18, 3  ;;  %s1272_s5 = sshll.u32 %s1927_s18, 2 }
   0xe   : > { %1485 = vmatpush3.bf16.msra.mxu0 %v1637_v1  ;;  %1604 = vmatpush3.bf16.msra.mxu1 %v1637_v1  ;;  %v1642_v6 = vld [vmem:[%s1919_s1 + $0x60] sm:$0xff]   ;;  %v1644_v8 = vld [vmem:[%s1919_s1 + $0x58] sm:$0xff]   ;;  %s1795_s11 = scalar_lea.vmem %s1918_s0, %s1356_s6  ;;  %v1646_v10 = vld [vmem:[%s1919_s1 + $0x50] sm:$0xff]   ;;  %s1863_s8 = scalar_lea.vmem %s1921_s3, %s1272_s5 }
   0xf   : > { %1486 = vmatprep.subr.bf16.mxu0 %v1638_v2  ;;  %1597 = vmatprep.subr.bf16.mxu1 %v1638_v2  ;;  %v1643_v7 = vld [vmem:[%s1919_s1 + $0x20] sm:$0xff]   ;;  %v1645_v9 = vld [vmem:[%s1919_s1 + $0x18] sm:$0xff]   ;;  %v1647_v13 = vld [vmem:[%s1919_s1 + $0x10] sm:$0xff]  }
  0x10   : > { %v1654_v11 = vld [vmem:[%s1795_s11 + $0x4] ss:$8 sps:$4 sm:$0xff]   ;;  %v1652_v18 = vld [vmem:[%s1795_s11] ss:$8 sps:$4 sm:$0xff]   ;;  %v1658_v20 = vld [vmem:[%s1795_s11 + $0x14] ss:$8 sps:$4 sm:$0xff]  }
  0x11   : > { %v1657_v12 = vld [vmem:[%s1795_s11 + $0x84] ss:$8 sps:$4 sm:$0xff]   ;;  %688 = vmatprep.mubr.bf16.mxu0 %v1654_v11  ;;  %v1655_v19 = vld [vmem:[%s1795_s11 + $0x80] ss:$8 sps:$4 sm:$0xff]   ;;  %v1660_v21 = vld [vmem:[%s1795_s11 + $0x94] ss:$8 sps:$4 sm:$0xff]  }
  0x12   : > { %1487 = vmatpush3.bf16.msra.mxu0 %v1639_v3  ;;  %1605 = vmatpush3.bf16.msra.mxu1 %v1639_v3  ;;  %v1648_v14 = vld [vmem:[%s1919_s1 + $0x48] sm:$0xff]   ;;  %v1650_v16 = vld [vmem:[%s1919_s1 + $0x40] sm:$0xff]   ;;  %v1662_v22 = vld [vmem:[%s1795_s11 + $0x10] ss:$8 sps:$4 sm:$0xff]  }
  0x13   : > { %1488 = vmatprep.subr.bf16.mxu0 %v1640_v4  ;;  %1598 = vmatprep.subr.bf16.mxu1 %v1640_v4  ;;  %v1649_v15 = vld [vmem:[%s1919_s1 + $0x8] sm:$0xff]   ;;  %v1651_v17 = vld [vmem:[%s1919_s1] sm:$0xff]   ;;  %v1663_v23 = vld [vmem:[%s1795_s11 + $0x90] ss:$8 sps:$4 sm:$0xff]  }
  0x14   : > { %752 = vmatprep.mubr.bf16.mxu1 %v1657_v12  ;;  %v1664_v24 = vld [vmem:[%s1795_s11 + $0x24] ss:$8 sps:$4 sm:$0xff]   ;;  %v1668_v26 = vld [vmem:[%s1795_s11 + $0x20] ss:$8 sps:$4 sm:$0xff]   ;;  %v1670_v28 = vld [vmem:[%s1795_s11 + $0x34] ss:$8 sps:$4 sm:$0xff]  }
  0x15   : > { %v1666_v25 = vld [vmem:[%s1795_s11 + $0xa4] ss:$8 sps:$4 sm:$0xff]   ;;  %v1669_v27 = vld [vmem:[%s1795_s11 + $0xa0] ss:$8 sps:$4 sm:$0xff]   ;;  %v1672_v29 = vld [vmem:[%s1795_s11 + $0xb4] ss:$8 sps:$4 sm:$0xff]  }
  0x16   : > { %1489 = vmatpush3.bf16.msra.mxu0 %v1641_v5  ;;  %1606 = vmatpush3.bf16.msra.mxu1 %v1641_v5  ;;  %v1674_v30 = vld [vmem:[%s1795_s11 + $0x30] ss:$8 sps:$4 sm:$0xff]   ;;  %v1676_v32 = vld [vmem:[%s1795_s11 + $0x44] ss:$8 sps:$4 sm:$0xff]   ;;  %v1680_v34 = vld [vmem:[%s1795_s11 + $0x40] ss:$8 sps:$4 sm:$0xff]  }
  0x17   : > { %1490 = vmatprep.subr.bf16.mxu0 %v1642_v6  ;;  %1599 = vmatprep.subr.bf16.mxu1 %v1642_v6  ;;  %v1675_v31 = vld [vmem:[%s1795_s11 + $0xb0] ss:$8 sps:$4 sm:$0xff]   ;;  %v1678_v33 = vld [vmem:[%s1795_s11 + $0xc4] ss:$8 sps:$4 sm:$0xff]   ;;  %v1681_v35 = vld [vmem:[%s1795_s11 + $0xc0] ss:$8 sps:$4 sm:$0xff]  }
  0x18   : > { %v1682_v36 = vld [vmem:[%s1795_s11 + $0x54] ss:$8 sps:$4 sm:$0xff]   ;;  %v1686_v38 = vld [vmem:[%s1795_s11 + $0x50] ss:$8 sps:$4 sm:$0xff]   ;;  %v1688_v40 = vld [vmem:[%s1795_s11 + $0x64] ss:$8 sps:$4 sm:$0xff]  }
  0x19   : > { %v1684_v37 = vld [vmem:[%s1795_s11 + $0xd4] ss:$8 sps:$4 sm:$0xff]   ;;  %v1687_v39 = vld [vmem:[%s1795_s11 + $0xd0] ss:$8 sps:$4 sm:$0xff]   ;;  %v1690_v41 = vld [vmem:[%s1795_s11 + $0xe4] ss:$8 sps:$4 sm:$0xff]  }
  0x1a   : > { %1491 = vmatpush3.bf16.msra.mxu0 %v1643_v7  ;;  %1607 = vmatpush3.bf16.msra.mxu1 %v1643_v7  ;;  %v1692_v42 = vld [vmem:[%s1795_s11 + $0x60] ss:$8 sps:$4 sm:$0xff]   ;;  %v1694_v44 = vld [vmem:[%s1795_s11 + $0x74] ss:$8 sps:$4 sm:$0xff]   ;;  %v1698_v46 = vld [vmem:[%s1795_s11 + $0x70] ss:$8 sps:$4 sm:$0xff]  }
  0x1b   : > { %1492 = vmatprep.subr.bf16.mxu0 %v1644_v8  ;;  %1600 = vmatprep.subr.bf16.mxu1 %v1644_v8  ;;  %v1693_v43 = vld [vmem:[%s1795_s11 + $0xe0] ss:$8 sps:$4 sm:$0xff]   ;;  %v1696_v45 = vld [vmem:[%s1795_s11 + $0xf4] ss:$8 sps:$4 sm:$0xff]   ;;  %v1699_v47 = vld [vmem:[%s1795_s11 + $0xf0] ss:$8 sps:$4 sm:$0xff]  }
  0x1c   : > { %v1853_v53 = vld [vmem:[%s1920_s2] ss:$0 sm:$0xff] }
  0x1e   : > { %1493 = vmatpush3.bf16.msra.mxu0 %v1645_v9  ;;  %1608 = vmatpush3.bf16.msra.mxu1 %v1645_v9 }
  0x1f   : > { %1494 = vmatprep.subr.bf16.mxu0 %v1646_v10  ;;  %1601 = vmatprep.subr.bf16.mxu1 %v1646_v10 }
  0x22   : > { %1495 = vmatpush3.bf16.msra.mxu0 %v1647_v13  ;;  %1609 = vmatpush3.bf16.msra.mxu1 %v1647_v13 }
  0x23   : > { %1496 = vmatprep.subr.bf16.mxu0 %v1648_v14  ;;  %1602 = vmatprep.subr.bf16.mxu1 %v1648_v14 }
  0x26   : > { %1497 = vmatpush3.bf16.msra.mxu0 %v1649_v15  ;;  %1610 = vmatpush3.bf16.msra.mxu1 %v1649_v15 }
  0x27   : > { %1498 = vmatprep.subr.bf16.mxu0 %v1650_v16  ;;  %1603 = vmatprep.subr.bf16.mxu1 %v1650_v16 }
  0x2a   : > { %1499 = vmatpush3.bf16.msra.mxu0 %v1651_v17  ;;  %1611 = vmatpush3.bf16.msra.mxu1 %v1651_v17 }
  0x2d   : > { %689 = vmatmul.mubr.bf16.vlgmr.msra.gmra.mxu0 %v1652_v18  ;;  %753 = vmatmul.mubr.bf16.vlgmr.msra.gmra.mxu1 %v1655_v19 }
  0x2e   : > { %696 = vmatprep.mubr.bf16.mxu0 %v1658_v20  ;;  %760 = vmatprep.mubr.bf16.mxu1 %v1660_v21 }
  0x35   : > { %697 = vmatmul.mubr.bf16.gmra.mxu0 %v1662_v22  ;;  %761 = vmatmul.mubr.bf16.gmra.mxu1 %v1663_v23 }
  0x36   : > { %704 = vmatprep.mubr.bf16.mxu0 %v1664_v24  ;;  %768 = vmatprep.mubr.bf16.mxu1 %v1666_v25 }
  0x3d   : > { %705 = vmatmul.mubr.bf16.gmra.mxu0 %v1668_v26  ;;  %769 = vmatmul.mubr.bf16.gmra.mxu1 %v1669_v27 }
  0x3e   : > { %712 = vmatprep.mubr.bf16.mxu0 %v1670_v28  ;;  %776 = vmatprep.mubr.bf16.mxu1 %v1672_v29 }
  0x45   : > { %713 = vmatmul.mubr.bf16.gmra.mxu0 %v1674_v30  ;;  %777 = vmatmul.mubr.bf16.gmra.mxu1 %v1675_v31 }
  0x46   : > { %720 = vmatprep.mubr.bf16.mxu0 %v1676_v32  ;;  %784 = vmatprep.mubr.bf16.mxu1 %v1678_v33 }
  0x4d   : > { %721 = vmatmul.mubr.bf16.gmra.mxu0 %v1680_v34  ;;  %785 = vmatmul.mubr.bf16.gmra.mxu1 %v1681_v35 }
  0x4e   : > { %728 = vmatprep.mubr.bf16.mxu0 %v1682_v36  ;;  %792 = vmatprep.mubr.bf16.mxu1 %v1684_v37 }
  0x55   : > { %729 = vmatmul.mubr.bf16.gmra.mxu0 %v1686_v38  ;;  %793 = vmatmul.mubr.bf16.gmra.mxu1 %v1687_v39 }
  0x56   : > { %736 = vmatprep.mubr.bf16.mxu0 %v1688_v40  ;;  %800 = vmatprep.mubr.bf16.mxu1 %v1690_v41 }
  0x5d   : > { %737 = vmatmul.mubr.bf16.gmra.mxu0 %v1692_v42  ;;  %801 = vmatmul.mubr.bf16.gmra.mxu1 %v1693_v43 }
  0x5e   : > { %744 = vmatprep.mubr.bf16.mxu0 %v1694_v44  ;;  %808 = vmatprep.mubr.bf16.mxu1 %v1696_v45 }
  0x65   : > { %745 = vmatmul.mubr.bf16.gmra.mxu0 %v1698_v46  ;;  %809 = vmatmul.mubr.bf16.gmra.mxu1 %v1699_v47 }
  0xed   : > { %v1500_v48 = vpop.f32.mrf.mxu0  ;;  %v1548_v49 = vpop.f32.mrf.mxu1 }
  0xef   : > { %v1501_v50 = vpop.f32.mrf.mxu0  ;;  %v1549_v51 = vpop.f32.mrf.mxu1 }
  0xf0   : > { %v1502_v52 = vadd.f32 %v1501_v50, %v1500_v48  ;;  %v1550_v54 = vadd.f32 %v1549_v51, %v1548_v49 }
  0xf1   : > { %v1503_v55 = vpop.f32.mrf.mxu0  ;;  %v1551_v56 = vpop.f32.mrf.mxu1 }
  0xf2   : > { %v923_v57 = vadd.f32 %v1502_v52, %v1853_v53  ;;  %v939_v58 = vadd.f32 %v1550_v54, %v1853_v53 }
  0xf3   : > { %v1504_v59 = vpop.f32.mrf.mxu0  ;;  %v1552_v60 = vpop.f32.mrf.mxu1 }
  0xf4   : > { %v1505_v61 = vadd.f32 %v1504_v59, %v1503_v55  ;;  %v1553_v62 = vadd.f32 %v1552_v60, %v1551_v56  ;;  %v955_v3 = vmax.f32 %v923_v57, 0.0  ;;  %v971_v4 = vmax.f32 %v939_v58, 0.0 }
  0xf5   : > { %v1506_v63 = vpop.f32.mrf.mxu0  ;;  %v1554_v0 = vpop.f32.mrf.mxu1 }
  0xf6   : > { %v924_v1 = vadd.f32 %v1505_v61, %v1853_v53  ;;  %v940_v2 = vadd.f32 %v1553_v62, %v1853_v53 }
  0xf7   : > { %v1507_v5 = vpop.f32.mrf.mxu0  ;;  %v1555_v6 = vpop.f32.mrf.mxu1 }
  0xf8   : > { %v956_v7 = vmax.f32 %v924_v1, 0.0  ;;  %v972_v8 = vmax.f32 %v940_v2, 0.0  ;;  %v1508_v9 = vadd.f32 %v1507_v5, %v1506_v63  ;;  %v1556_v10 = vadd.f32 %v1555_v6, %v1554_v0 }
  0xf9   : > { %v1509_v11 = vpop.f32.mrf.mxu0  ;;  %v1557_v12 = vpop.f32.mrf.mxu1 }
  0xfa   : > { %v1392_v13 = vpack.c.bf16 %v956_v7, %v955_v3  ;;  %v1432_v14 = vpack.c.bf16 %v972_v8, %v971_v4  ;;  %v925_v15 = vadd.f32 %v1508_v9, %v1853_v53  ;;  %v941_v16 = vadd.f32 %v1556_v10, %v1853_v53 }
  0xfb   : > { %v1510_v17 = vpop.f32.mrf.mxu0  ;;  %v1558_v18 = vpop.f32.mrf.mxu1 }
  0xfc   : > { %1393 = vst [vmem:[%s1863_s8] sm:$0xff] %v1392_v13   ;;  %1476 = vst [vmem:[%s1863_s8 + $0x40] sm:$0xff] %v1432_v14   ;;  %v1511_v19 = vadd.f32 %v1510_v17, %v1509_v11  ;;  %v1559_v20 = vadd.f32 %v1558_v18, %v1557_v12  ;;  %v957_v25 = vmax.f32 %v925_v15, 0.0  ;;  %v973_v26 = vmax.f32 %v941_v16, 0.0 }
  0xfd   : > { %v1512_v21 = vpop.f32.mrf.mxu0  ;;  %v1560_v22 = vpop.f32.mrf.mxu1 }
  0xfe   : > { %v926_v23 = vadd.f32 %v1511_v19, %v1853_v53  ;;  %v942_v24 = vadd.f32 %v1559_v20, %v1853_v53 }
  0xff   : > { %v1513_v27 = vpop.f32.mrf.mxu0  ;;  %v1561_v28 = vpop.f32.mrf.mxu1 }
 0x100   : > { %v958_v29 = vmax.f32 %v926_v23, 0.0  ;;  %v974_v30 = vmax.f32 %v942_v24, 0.0  ;;  %v1514_v31 = vadd.f32 %v1513_v27, %v1512_v21  ;;  %v1562_v32 = vadd.f32 %v1561_v28, %v1560_v22 }
 0x101   : > { %v1515_v33 = vpop.f32.mrf.mxu0  ;;  %v1563_v34 = vpop.f32.mrf.mxu1 }
 0x102   : > { %v1397_v35 = vpack.c.bf16 %v958_v29, %v957_v25  ;;  %v1437_v36 = vpack.c.bf16 %v974_v30, %v973_v26  ;;  %v927_v37 = vadd.f32 %v1514_v31, %v1853_v53  ;;  %v943_v38 = vadd.f32 %v1562_v32, %v1853_v53 }
 0x103   : > { %v1516_v39 = vpop.f32.mrf.mxu0  ;;  %v1564_v40 = vpop.f32.mrf.mxu1 }
 0x104   : > { %1469 = vst [vmem:[%s1863_s8 + $0x8] sm:$0xff] %v1397_v35   ;;  %1477 = vst [vmem:[%s1863_s8 + $0x48] sm:$0xff] %v1437_v36   ;;  %v1517_v41 = vadd.f32 %v1516_v39, %v1515_v33  ;;  %v1565_v42 = vadd.f32 %v1564_v40, %v1563_v34  ;;  %v959_v47 = vmax.f32 %v927_v37, 0.0  ;;  %v975_v48 = vmax.f32 %v943_v38, 0.0 }
 0x105   : > { %v1518_v43 = vpop.f32.mrf.mxu0  ;;  %v1566_v44 = vpop.f32.mrf.mxu1 }
 0x106   : > { %v928_v45 = vadd.f32 %v1517_v41, %v1853_v53  ;;  %v944_v46 = vadd.f32 %v1565_v42, %v1853_v53 }
 0x107   : > { %v1519_v49 = vpop.f32.mrf.mxu0  ;;  %v1567_v50 = vpop.f32.mrf.mxu1 }
 0x108   : > { %v960_v51 = vmax.f32 %v928_v45, 0.0  ;;  %v976_v52 = vmax.f32 %v944_v46, 0.0  ;;  %v1520_v54 = vadd.f32 %v1519_v49, %v1518_v43  ;;  %v1568_v55 = vadd.f32 %v1567_v50, %v1566_v44 }
 0x109   : > { %v1521_v56 = vpop.f32.mrf.mxu0  ;;  %v1569_v57 = vpop.f32.mrf.mxu1 }
 0x10a   : > { %v1402_v58 = vpack.c.bf16 %v960_v51, %v959_v47  ;;  %v1442_v59 = vpack.c.bf16 %v976_v52, %v975_v48  ;;  %v929_v60 = vadd.f32 %v1520_v54, %v1853_v53  ;;  %v945_v61 = vadd.f32 %v1568_v55, %v1853_v53 }
 0x10b   : > { %v1522_v62 = vpop.f32.mrf.mxu0  ;;  %v1570_v63 = vpop.f32.mrf.mxu1 }
 0x10c   : > { %1470 = vst [vmem:[%s1863_s8 + $0x10] sm:$0xff] %v1402_v58   ;;  %1478 = vst [vmem:[%s1863_s8 + $0x50] sm:$0xff] %v1442_v59   ;;  %v1523_v0 = vadd.f32 %v1522_v62, %v1521_v56  ;;  %v1571_v1 = vadd.f32 %v1570_v63, %v1569_v57  ;;  %v961_v6 = vmax.f32 %v929_v60, 0.0  ;;  %v977_v7 = vmax.f32 %v945_v61, 0.0 }
 0x10d   : > { %v1524_v2 = vpop.f32.mrf.mxu0  ;;  %v1572_v3 = vpop.f32.mrf.mxu1 }
 0x10e   : > { %v930_v4 = vadd.f32 %v1523_v0, %v1853_v53  ;;  %v946_v5 = vadd.f32 %v1571_v1, %v1853_v53 }
 0x10f   : > { %v1525_v8 = vpop.f32.mrf.mxu0  ;;  %v1573_v9 = vpop.f32.mrf.mxu1 }
 0x110   : > { %v962_v10 = vmax.f32 %v930_v4, 0.0  ;;  %v978_v11 = vmax.f32 %v946_v5, 0.0  ;;  %v1526_v12 = vadd.f32 %v1525_v8, %v1524_v2  ;;  %v1574_v13 = vadd.f32 %v1573_v9, %v1572_v3 }
 0x111   : > { %v1527_v14 = vpop.f32.mrf.mxu0  ;;  %v1575_v15 = vpop.f32.mrf.mxu1 }
 0x112   : > { %v1407_v16 = vpack.c.bf16 %v962_v10, %v961_v6  ;;  %v1447_v17 = vpack.c.bf16 %v978_v11, %v977_v7  ;;  %v931_v18 = vadd.f32 %v1526_v12, %v1853_v53  ;;  %v947_v19 = vadd.f32 %v1574_v13, %v1853_v53 }
 0x113   : > { %v1528_v20 = vpop.f32.mrf.mxu0  ;;  %v1576_v21 = vpop.f32.mrf.mxu1 }
 0x114   : > { %1471 = vst [vmem:[%s1863_s8 + $0x18] sm:$0xff] %v1407_v16   ;;  %1479 = vst [vmem:[%s1863_s8 + $0x58] sm:$0xff] %v1447_v17   ;;  %v1529_v22 = vadd.f32 %v1528_v20, %v1527_v14  ;;  %v1577_v23 = vadd.f32 %v1576_v21, %v1575_v15  ;;  %v963_v28 = vmax.f32 %v931_v18, 0.0  ;;  %v979_v29 = vmax.f32 %v947_v19, 0.0 }
 0x115   : > { %v1530_v24 = vpop.f32.mrf.mxu0  ;;  %v1578_v25 = vpop.f32.mrf.mxu1 }
 0x116   : > { %v932_v26 = vadd.f32 %v1529_v22, %v1853_v53  ;;  %v948_v27 = vadd.f32 %v1577_v23, %v1853_v53 }
 0x117   : > { %v1531_v30 = vpop.f32.mrf.mxu0  ;;  %v1579_v31 = vpop.f32.mrf.mxu1 }
 0x118   : > { %v964_v32 = vmax.f32 %v932_v26, 0.0  ;;  %v980_v33 = vmax.f32 %v948_v27, 0.0  ;;  %v1532_v34 = vadd.f32 %v1531_v30, %v1530_v24  ;;  %v1580_v35 = vadd.f32 %v1579_v31, %v1578_v25 }
 0x119   : > { %v1533_v36 = vpop.f32.mrf.mxu0  ;;  %v1581_v37 = vpop.f32.mrf.mxu1 }
 0x11a   : > { %v1412_v38 = vpack.c.bf16 %v964_v32, %v963_v28  ;;  %v1452_v39 = vpack.c.bf16 %v980_v33, %v979_v29  ;;  %v933_v40 = vadd.f32 %v1532_v34, %v1853_v53  ;;  %v949_v41 = vadd.f32 %v1580_v35, %v1853_v53 }
 0x11b   : > { %v1534_v42 = vpop.f32.mrf.mxu0  ;;  %v1582_v43 = vpop.f32.mrf.mxu1 }
 0x11c   : > { %1472 = vst [vmem:[%s1863_s8 + $0x20] sm:$0xff] %v1412_v38   ;;  %1480 = vst [vmem:[%s1863_s8 + $0x60] sm:$0xff] %v1452_v39   ;;  %v1535_v44 = vadd.f32 %v1534_v42, %v1533_v36  ;;  %v1583_v45 = vadd.f32 %v1582_v43, %v1581_v37  ;;  %v965_v50 = vmax.f32 %v933_v40, 0.0  ;;  %v981_v51 = vmax.f32 %v949_v41, 0.0 }
 0x11d   : > { %v1536_v46 = vpop.f32.mrf.mxu0  ;;  %v1584_v47 = vpop.f32.mrf.mxu1 }
 0x11e   : > { %v934_v48 = vadd.f32 %v1535_v44, %v1853_v53  ;;  %v950_v49 = vadd.f32 %v1583_v45, %v1853_v53 }
 0x11f   : > { %v1537_v52 = vpop.f32.mrf.mxu0  ;;  %v1585_v54 = vpop.f32.mrf.mxu1 }
 0x120   : > { %v966_v55 = vmax.f32 %v934_v48, 0.0  ;;  %v982_v56 = vmax.f32 %v950_v49, 0.0  ;;  %v1538_v57 = vadd.f32 %v1537_v52, %v1536_v46  ;;  %v1586_v58 = vadd.f32 %v1585_v54, %v1584_v47 }
 0x121   : > { %v1539_v59 = vpop.f32.mrf.mxu0  ;;  %v1587_v60 = vpop.f32.mrf.mxu1 }
 0x122   : > { %v1417_v61 = vpack.c.bf16 %v966_v55, %v965_v50  ;;  %v1457_v62 = vpack.c.bf16 %v982_v56, %v981_v51  ;;  %v935_v63 = vadd.f32 %v1538_v57, %v1853_v53  ;;  %v951_v0 = vadd.f32 %v1586_v58, %v1853_v53 }
 0x123   : > { %v1540_v1 = vpop.f32.mrf.mxu0  ;;  %v1588_v2 = vpop.f32.mrf.mxu1 }
 0x124   : > { %1473 = vst [vmem:[%s1863_s8 + $0x28] sm:$0xff] %v1417_v61   ;;  %1481 = vst [vmem:[%s1863_s8 + $0x68] sm:$0xff] %v1457_v62   ;;  %v1541_v3 = vadd.f32 %v1540_v1, %v1539_v59  ;;  %v1589_v4 = vadd.f32 %v1588_v2, %v1587_v60  ;;  %v967_v9 = vmax.f32 %v935_v63, 0.0  ;;  %v983_v10 = vmax.f32 %v951_v0, 0.0 }
 0x125   : > { %v1542_v5 = vpop.f32.mrf.mxu0  ;;  %v1590_v6 = vpop.f32.mrf.mxu1 }
 0x126   : > { %v936_v7 = vadd.f32 %v1541_v3, %v1853_v53  ;;  %v952_v8 = vadd.f32 %v1589_v4, %v1853_v53 }
 0x127   : > { %v1543_v11 = vpop.f32.mrf.mxu0  ;;  %v1591_v12 = vpop.f32.mrf.mxu1 }
 0x128   : > { %v968_v13 = vmax.f32 %v936_v7, 0.0  ;;  %v984_v14 = vmax.f32 %v952_v8, 0.0  ;;  %v1544_v15 = vadd.f32 %v1543_v11, %v1542_v5  ;;  %v1592_v16 = vadd.f32 %v1591_v12, %v1590_v6 }
 0x129   : > { %v1545_v17 = vpop.f32.mrf.mxu0  ;;  %v1593_v18 = vpop.f32.mrf.mxu1 }
 0x12a   : > { %v1422_v19 = vpack.c.bf16 %v968_v13, %v967_v9  ;;  %v1462_v20 = vpack.c.bf16 %v984_v14, %v983_v10  ;;  %v937_v23 = vadd.f32 %v1544_v15, %v1853_v53  ;;  %v953_v24 = vadd.f32 %v1592_v16, %v1853_v53 }
 0x12b   : > { %v1546_v21 = vpop.f32.mrf.mxu0  ;;  %v1594_v22 = vpop.f32.mrf.mxu1 }
 0x12c   : > { %1474 = vst [vmem:[%s1863_s8 + $0x30] sm:$0xff] %v1422_v19   ;;  %1482 = vst [vmem:[%s1863_s8 + $0x70] sm:$0xff] %v1462_v20   ;;  %v1547_v25 = vadd.f32 %v1546_v21, %v1545_v17  ;;  %v1595_v26 = vadd.f32 %v1594_v22, %v1593_v18  ;;  %v969_v29 = vmax.f32 %v937_v23, 0.0  ;;  %v985_v30 = vmax.f32 %v953_v24, 0.0 }
 0x12e   : > { %v938_v27 = vadd.f32 %v1547_v25, %v1853_v53  ;;  %v954_v28 = vadd.f32 %v1595_v26, %v1853_v53 }
 0x130   : > { %v970_v31 = vmax.f32 %v938_v27, 0.0  ;;  %v986_v32 = vmax.f32 %v954_v28, 0.0 }
 0x132   : > { %v1427_v33 = vpack.c.bf16 %v970_v31, %v969_v29  ;;  %v1467_v34 = vpack.c.bf16 %v986_v32, %v985_v30 }
 0x134   : > { %1475 = vst [vmem:[%s1863_s8 + $0x38] sm:$0xff] %v1427_v33   ;;  %1483 = vst [vmem:[%s1863_s8 + $0x78] sm:$0xff] %v1467_v34  }
 0x135 PF: > { %s13_s14 = sadd.s32 1, %s1722_s14   ;;  %s1922_s12 = smov %s1718_s13 }
 0x136   : > { %p10_p5 = scmp.ge.s32.totalorder %s13_s14, 4   ;;  %s1923_s13 = smov %s1925_s15 }
 0x138   :  { %12 = sbr.rel (!%p10_p5) target bundleno = 2 (0x2), region = 76 }

// kernel: _stem_fwd.3
= control target key start
LH: loop header
LB: loop body
LE: loop exit
PB: predicated region body
PF: predicated region fallthrough
CT: control target
= control target key end

     0   :  { %6 = vsyncpa [#allocation3], 0  ;;  %vm1034_vm0 = vcmask 520192   ;;  %vm1035_vm1 = vsmask.f32 4352  ;;  %vm2957_vm3 = vcmask 1041409   ;;  %s5661_s0 = inlined_call_operand.vmem [shape: bf16[128,9,64], index: 0, kind: input, shape index: {}]   ;;  %s5662_s1 = inlined_call_operand.hbm [shape: bf16[128,64], index: 1, kind: output, shape index: {}]  }
   0x1   :  { %v3400_v0 = vld [vmem:[%s5661_s0] sm:$0x1f]   ;;  %v3401_v1 = vld [vmem:[%s5661_s0 + $0x8] sm:$0x1f]   ;;  %v3402_v2 = vld [vmem:[%s5661_s0 + $0x10] sm:$0x1f]  }
   0x2   :  { %v3403_v3 = vld [vmem:[%s5661_s0 + $0x18] sm:$0x1f]   ;;  %v3404_v4 = vld [vmem:[%s5661_s0 + $0x20] sm:$0x1f]   ;;  %v3405_v5 = vld [vmem:[%s5661_s0 + $0x28] sm:$0x1f]  }
   0x3   :  { %vm3581_vm2 = vmand %vm1034_vm0, %vm1035_vm1  ;;  %v3406_v14 = vld [vmem:[%s5661_s0 + $0x30] sm:$0x1f]   ;;  %v3407_v27 = vld [vmem:[%s5661_s0 + $0x38] sm:$0x1f]   ;;  %vm2959_vm4 = vcmask 1042434   ;;  %vm2961_vm5 = vcmask 1043459  }
   0x4   :  { %v1037_v7 = vsel %vm3581_vm2, %v3400_v0, 4286644096  ;;  %v1048_v8 = vsel %vm3581_vm2, %v3401_v1, 4286644096  ;;  %v1059_v9 = vsel %vm3581_vm2, %v3402_v2, 4286644096 }
   0x5   :  { %v1038_v10 = vunpack.i.l.bf16 %v1037_v7  ;;  %v1039_v11 = vunpack.i.h.bf16 %v1037_v7  ;;  %v1049_v12 = vunpack.i.l.bf16 %v1048_v8  ;;  %v1050_v13 = vunpack.i.h.bf16 %v1048_v8 }
   0x6   :  { %v1060_v15 = vunpack.i.l.bf16 %v1059_v9  ;;  %v1061_v16 = vunpack.i.h.bf16 %v1059_v9  ;;  %v1070_v17 = vsel %vm3581_vm2, %v3403_v3, 4286644096  ;;  %v1081_v18 = vsel %vm3581_vm2, %v3404_v4, 4286644096  ;;  %v3408_v4 = vld [vmem:[%s5661_s0 + $0x40] sm:$0x1f]  }
   0x7   :  { %v1040_v19 = vmax.f32 %v1038_v10, %v1039_v11  ;;  %v1051_v20 = vmax.f32 %v1049_v12, %v1050_v13  ;;  %v1071_v21 = vunpack.i.l.bf16 %v1070_v17  ;;  %v1072_v22 = vunpack.i.h.bf16 %v1070_v17 }
   0x8   :  { %v1062_v23 = vmax.f32 %v1060_v15, %v1061_v16  ;;  %v1082_v24 = vunpack.i.l.bf16 %v1081_v18  ;;  %v1083_v25 = vunpack.i.h.bf16 %v1081_v18  ;;  %v1092_v26 = vsel %vm3581_vm2, %v3405_v5, 4286644096  ;;  %v3409_v5 = vld [vmem:[%s5661_s0 + $0x48] sm:$0x1f]  }
   0x9   :  { %v1041_v28 = vrot.slane %v1040_v19, 4  ;;  %v1052_v29 = vrot.slane %v1051_v20, 4  ;;  %v1073_v30 = vmax.f32 %v1071_v21, %v1072_v22  ;;  %v1093_v31 = vunpack.i.l.bf16 %v1092_v26 }
   0xa   :  { %v1063_v32 = vrot.slane %v1062_v23, 4  ;;  %v1084_v33 = vmax.f32 %v1082_v24, %v1083_v25  ;;  %v1094_v34 = vunpack.i.h.bf16 %v1092_v26  ;;  %v1103_v35 = vsel %vm3581_vm2, %v3406_v14, 4286644096 }
   0xb   :  { %v1042_v36 = vmax.f32 %v1040_v19, %v1041_v28  ;;  %v1053_v37 = vmax.f32 %v1051_v20, %v1052_v29  ;;  %v1074_v38 = vrot.slane %v1073_v30, 4  ;;  %v1104_v39 = vunpack.i.l.bf16 %v1103_v35  ;;  %v3410_v19 = vld [vmem:[%s5661_s0 + $0x50] sm:$0x1f]   ;;  %v3411_v20 = vld [vmem:[%s5661_s0 + $0x58] sm:$0x1f]  }
   0xc   :  { %v1064_v40 = vmax.f32 %v1062_v23, %v1063_v32  ;;  %v1085_v41 = vrot.slane %v1084_v33, 4  ;;  %v1095_v42 = vmax.f32 %v1093_v31, %v1094_v34  ;;  %v1105_v43 = vunpack.i.h.bf16 %v1103_v35 }
   0xd   :  { %v1043_v44 = vrot.slane %v1042_v36, 2  ;;  %v1054_v45 = vrot.slane %v1053_v37, 2  ;;  %v1075_v46 = vmax.f32 %v1073_v30, %v1074_v38  ;;  %v1114_v47 = vsel %vm3581_vm2, %v3407_v27, 4286644096 }
   0xe   :  { %v1065_v48 = vrot.slane %v1064_v40, 2  ;;  %v1086_v49 = vmax.f32 %v1084_v33, %v1085_v41  ;;  %v1096_v50 = vrot.slane %v1095_v42, 4  ;;  %v1106_v51 = vmax.f32 %v1104_v39, %v1105_v43  ;;  %v3412_v33 = vld [vmem:[%s5661_s0 + $0x60] sm:$0x1f]  }
   0xf   :  { %v1044_v52 = vmax.f32 %v1042_v36, %v1043_v44  ;;  %v1055_v53 = vmax.f32 %v1053_v37, %v1054_v45  ;;  %v1076_v54 = vrot.slane %v1075_v46, 2  ;;  %v1115_v55 = vunpack.i.l.bf16 %v1114_v47 }
  0x10   :  { %v1066_v56 = vmax.f32 %v1064_v40, %v1065_v48  ;;  %v1087_v57 = vrot.slane %v1086_v49, 2  ;;  %v1097_v58 = vmax.f32 %v1095_v42, %v1096_v50  ;;  %v1107_v59 = vrot.slane %v1106_v51, 4  ;;  %v3413_v42 = vld [vmem:[%s5661_s0 + $0x68] sm:$0x1f]  }
  0x11   :  { %v1045_v60 = vrot.slane %v1044_v52, 1  ;;  %v1056_v61 = vrot.slane %v1055_v53, 1  ;;  %v1077_v62 = vmax.f32 %v1075_v46, %v1076_v54  ;;  %v1116_v63 = vunpack.i.h.bf16 %v1114_v47 }
  0x12   :  { %v1067_v0 = vrot.slane %v1066_v56, 1  ;;  %v1088_v1 = vmax.f32 %v1086_v49, %v1087_v57  ;;  %v1098_v2 = vrot.slane %v1097_v58, 2  ;;  %v1108_v3 = vmax.f32 %v1106_v51, %v1107_v59 }
  0x13   :  { %v1046_v7 = vmax.f32 %v1044_v52, %v1045_v60  ;;  %v1057_v8 = vmax.f32 %v1055_v53, %v1056_v61  ;;  %v1078_v9 = vrot.slane %v1077_v62, 1  ;;  %v1117_v10 = vmax.f32 %v1115_v55, %v1116_v63  ;;  %v3414_v55 = vld [vmem:[%s5661_s0 + $0x70] sm:$0x1f]  }
  0x14   :  { %v1068_v11 = vmax.f32 %v1066_v56, %v1067_v0  ;;  %v1089_v12 = vrot.slane %v1088_v1, 1  ;;  %v1099_v13 = vmax.f32 %v1097_v58, %v1098_v2  ;;  %v1109_v14 = vrot.slane %v1108_v3, 2 }
  0x15   :  { %v3613_v15 = vpack.i.bf16 %v1046_v7, %v1046_v7  ;;  %v3615_v16 = vpack.i.bf16 %v1057_v8, %v1057_v8  ;;  %v1079_v17 = vmax.f32 %v1077_v62, %v1078_v9  ;;  %v1118_v18 = vrot.slane %v1117_v10, 4 }
  0x16   :  { %v3623_v21 = vpack.i.bf16 %v1068_v11, %v1068_v11  ;;  %v1090_v22 = vmax.f32 %v1088_v1, %v1089_v12  ;;  %v1100_v23 = vrot.slane %v1099_v13, 1  ;;  %v1110_v24 = vmax.f32 %v1108_v3, %v1109_v14 }
  0x17   :  { %v3625_v25 = vpack.i.bf16 %v1079_v17, %v1079_v17  ;;  %v1119_v26 = vmax.f32 %v1117_v10, %v1118_v18  ;;  %v1125_v27 = vsel %vm3581_vm2, %v3408_v4, 4286644096  ;;  %v1136_v28 = vsel %vm3581_vm2, %v3409_v5, 4286644096  ;;  %v3415_v4 = vld [vmem:[%s5661_s0 + $0x78] sm:$0x1f]  }
  0x18   :  { %v3631_v29 = vpack.i.bf16 %v1090_v22, %v1090_v22  ;;  %v1101_v30 = vmax.f32 %v1099_v13, %v1100_v23  ;;  %v1111_v31 = vrot.slane %v1110_v24, 1  ;;  %v1126_v32 = vunpack.i.l.bf16 %v1125_v27 }
  0x19   :  { %v1120_v34 = vrot.slane %v1119_v26, 2  ;;  %v1127_v35 = vunpack.i.h.bf16 %v1125_v27  ;;  %v1137_v36 = vunpack.i.l.bf16 %v1136_v28  ;;  %v1138_v37 = vunpack.i.h.bf16 %v1136_v28 }
  0x1a   :  { %v3636_v38 = vpack.i.bf16 %v1101_v30, %v1101_v30  ;;  %v1112_v39 = vmax.f32 %v1110_v24, %v1111_v31  ;;  %v1147_v40 = vsel %vm3581_vm2, %v3410_v19, 4286644096  ;;  %v1158_v41 = vsel %vm3581_vm2, %v3411_v20, 4286644096 }
  0x1b   :  { %v1121_v43 = vmax.f32 %v1119_v26, %v1120_v34  ;;  %v1128_v44 = vmax.f32 %v1126_v32, %v1127_v35  ;;  %v1139_v45 = vmax.f32 %v1137_v36, %v1138_v37  ;;  %v1148_v46 = vunpack.i.l.bf16 %v1147_v40  ;;  %v3416_v35 = vld [vmem:[%s5661_s0 + $0x80] sm:$0x1f]   ;;  %v3417_v36 = vld [vmem:[%s5661_s0 + $0x88] sm:$0x1f]  }
  0x1c   :  { %v3645_v47 = vpack.i.bf16 %v1112_v39, %v1112_v39  ;;  %v1149_v48 = vunpack.i.h.bf16 %v1147_v40  ;;  %v1159_v49 = vunpack.i.l.bf16 %v1158_v41  ;;  %v1160_v50 = vunpack.i.h.bf16 %v1158_v41 }
  0x1d   :  { %v1122_v51 = vrot.slane %v1121_v43, 1  ;;  %v1129_v52 = vrot.slane %v1128_v44, 4  ;;  %v1140_v53 = vrot.slane %v1139_v45, 4  ;;  %v1169_v54 = vsel %vm3581_vm2, %v3412_v33, 4286644096 }
  0x1e   :  { %v1150_v56 = vmax.f32 %v1148_v46, %v1149_v48  ;;  %v1161_v57 = vmax.f32 %v1159_v49, %v1160_v50  ;;  %v1170_v58 = vunpack.i.l.bf16 %v1169_v54  ;;  %v1171_v59 = vunpack.i.h.bf16 %v1169_v54 }
  0x1f   :  { %v1123_v60 = vmax.f32 %v1121_v43, %v1122_v51  ;;  %v1130_v61 = vmax.f32 %v1128_v44, %v1129_v52  ;;  %v1141_v62 = vmax.f32 %v1139_v45, %v1140_v53  ;;  %v1180_v63 = vsel %vm3581_vm2, %v3413_v42, 4286644096 }
  0x20   :  { %v1151_v0 = vrot.slane %v1150_v56, 4  ;;  %v1162_v1 = vrot.slane %v1161_v57, 4  ;;  %v1172_v2 = vmax.f32 %v1170_v58, %v1171_v59  ;;  %v1181_v3 = vunpack.i.l.bf16 %v1180_v63 }
  0x21   :  { %v3657_v5 = vpack.i.bf16 %v1123_v60, %v1123_v60  ;;  %v1131_v7 = vrot.slane %v1130_v61, 2  ;;  %v1142_v8 = vrot.slane %v1141_v62, 2  ;;  %v1182_v9 = vunpack.i.h.bf16 %v1180_v63 }
  0x22   :  { %v1152_v10 = vmax.f32 %v1150_v56, %v1151_v0  ;;  %v1163_v11 = vmax.f32 %v1161_v57, %v1162_v1  ;;  %v1173_v12 = vrot.slane %v1172_v2, 4  ;;  %v1191_v13 = vsel %vm3581_vm2, %v3414_v55, 4286644096  ;;  %v3418_v55 = vld [vmem:[%s5661_s0 + $0x90] sm:$0x1f]  }
  0x23   :  { %v1132_v14 = vmax.f32 %v1130_v61, %v1131_v7  ;;  %v1143_v17 = vmax.f32 %v1141_v62, %v1142_v8  ;;  %v1183_v18 = vmax.f32 %v1181_v3, %v1182_v9  ;;  %v1192_v19 = vunpack.i.l.bf16 %v1191_v13  ;;  %v3419_v0 = vld [vmem:[%s5661_s0 + $0x98] sm:$0x1f]  }
  0x24   :  { %v1153_v20 = vrot.slane %v1152_v10, 2  ;;  %v1164_v22 = vrot.slane %v1163_v11, 2  ;;  %v1174_v23 = vmax.f32 %v1172_v2, %v1173_v12  ;;  %v1193_v24 = vunpack.i.h.bf16 %v1191_v13 }
  0x25   :  { %v1133_v26 = vrot.slane %v1132_v14, 1  ;;  %v1144_v27 = vrot.slane %v1143_v17, 1  ;;  %v1184_v28 = vrot.slane %v1183_v18, 4  ;;  %v1202_v30 = vsel %vm3581_vm2, %v3415_v4, 4286644096 }
  0x26   :  { %v1154_v31 = vmax.f32 %v1152_v10, %v1153_v20  ;;  %v1165_v32 = vmax.f32 %v1163_v11, %v1164_v22  ;;  %v1175_v33 = vrot.slane %v1174_v23, 2  ;;  %v1194_v34 = vmax.f32 %v1192_v19, %v1193_v24  ;;  %v3420_v11 = vld [vmem:[%s5661_s0 + $0xa0] sm:$0x1f]  }
  0x27   :  { %v1134_v37 = vmax.f32 %v1132_v14, %v1133_v26  ;;  %v1145_v39 = vmax.f32 %v1143_v17, %v1144_v27  ;;  %v1185_v40 = vmax.f32 %v1183_v18, %v1184_v28  ;;  %v1203_v41 = vunpack.i.l.bf16 %v1202_v30  ;;  %v3421_v28 = vld [vmem:[%s5661_s0 + $0xa8] sm:$0x1f]  }
  0x28   :  { %v1155_v42 = vrot.slane %v1154_v31, 1  ;;  %v1166_v43 = vrot.slane %v1165_v32, 1  ;;  %v1176_v44 = vmax.f32 %v1174_v23, %v1175_v33  ;;  %v1195_v45 = vrot.slane %v1194_v34, 4 }
  0x29   :  { %v3669_v46 = vpack.i.bf16 %v1134_v37, %v1134_v37  ;;  %v3671_v48 = vpack.i.bf16 %v1145_v39, %v1145_v39  ;;  %v1186_v49 = vrot.slane %v1185_v40, 2  ;;  %v1204_v50 = vunpack.i.h.bf16 %v1202_v30  ;;  %v3422_v30 = vld [vmem:[%s5661_s0 + $0xb0] sm:$0x1f]  }
  0x2a   :  { %v1156_v51 = vmax.f32 %v1154_v31, %v1155_v42  ;;  %v1167_v52 = vmax.f32 %v1165_v32, %v1166_v43  ;;  %v1177_v53 = vrot.slane %v1176_v44, 1  ;;  %v1196_v54 = vmax.f32 %v1194_v34, %v1195_v45 }
  0x2b   :  { %v1187_v56 = vmax.f32 %v1185_v40, %v1186_v49  ;;  %v1205_v57 = vmax.f32 %v1203_v41, %v1204_v50  ;;  %v1213_v58 = vsel %vm3581_vm2, %v3416_v35, 4286644096  ;;  %v1224_v59 = vsel %vm3581_vm2, %v3417_v36, 4286644096 }
  0x2c   :  { %v3680_v60 = vpack.i.bf16 %v1156_v51, %v1156_v51  ;;  %v3682_v61 = vpack.i.bf16 %v1167_v52, %v1167_v52  ;;  %v1178_v62 = vmax.f32 %v1176_v44, %v1177_v53  ;;  %v1197_v63 = vrot.slane %v1196_v54, 2 }
  0x2d   :  { %v1188_v1 = vrot.slane %v1187_v56, 1  ;;  %v1206_v2 = vrot.slane %v1205_v57, 4  ;;  %v1214_v3 = vunpack.i.l.bf16 %v1213_v58  ;;  %v1215_v4 = vunpack.i.h.bf16 %v1213_v58 }
  0x2e   :  { %v3687_v7 = vpack.i.bf16 %v1178_v62, %v1178_v62  ;;  %v1198_v8 = vmax.f32 %v1196_v54, %v1197_v63  ;;  %v1225_v9 = vunpack.i.l.bf16 %v1224_v59  ;;  %v1226_v10 = vunpack.i.h.bf16 %v1224_v59  ;;  %v3423_v59 = vld [vmem:[%s5661_s0 + $0xb8] sm:$0x1f]  }
  0x2f   :  { %v1189_v12 = vmax.f32 %v1187_v56, %v1188_v1  ;;  %v1207_v13 = vmax.f32 %v1205_v57, %v1206_v2  ;;  %v1216_v14 = vmax.f32 %v1214_v3, %v1215_v4  ;;  %v1235_v17 = vsel %vm3581_vm2, %v3418_v55, 4286644096 }
  0x30   :  { %v1199_v18 = vrot.slane %v1198_v8, 1  ;;  %v1227_v19 = vmax.f32 %v1225_v9, %v1226_v10  ;;  %v1236_v20 = vunpack.i.l.bf16 %v1235_v17  ;;  %v1237_v22 = vunpack.i.h.bf16 %v1235_v17 }
  0x31   :  { %v3694_v23 = vpack.i.bf16 %v1189_v12, %v1189_v12  ;;  %v1208_v24 = vrot.slane %v1207_v13, 2  ;;  %v1217_v26 = vrot.slane %v1216_v14, 4  ;;  %v1246_v27 = vsel %vm3581_vm2, %v3419_v0, 4286644096 }
  0x32   :  { %v1200_v31 = vmax.f32 %v1198_v8, %v1199_v18  ;;  %v1228_v32 = vrot.slane %v1227_v19, 4  ;;  %v1238_v33 = vmax.f32 %v1236_v20, %v1237_v22  ;;  %v1247_v34 = vunpack.i.l.bf16 %v1246_v27  ;;  %v3425_v20 = vld [vmem:[%s5661_s0 + $0xc8] sm:$0x1f]  }
  0x33   :  { %v1209_v35 = vmax.f32 %v1207_v13, %v1208_v24  ;;  %v1218_v36 = vmax.f32 %v1216_v14, %v1217_v26  ;;  %v1248_v37 = vunpack.i.h.bf16 %v1246_v27  ;;  %v1257_v39 = vsel %vm3581_vm2, %v3420_v11, 4286644096  ;;  %v3424_v13 = vld [vmem:[%s5661_s0 + $0xc0] sm:$0x1f]  }
  0x34   :  { %v3706_v40 = vpack.i.bf16 %v1200_v31, %v1200_v31  ;;  %v1229_v41 = vmax.f32 %v1227_v19, %v1228_v32  ;;  %v1239_v42 = vrot.slane %v1238_v33, 4  ;;  %v1258_v43 = vunpack.i.l.bf16 %v1257_v39 }
  0x35   :  { %v1210_v44 = vrot.slane %v1209_v35, 1  ;;  %v1219_v45 = vrot.slane %v1218_v36, 2  ;;  %v1249_v49 = vmax.f32 %v1247_v34, %v1248_v37  ;;  %v1259_v50 = vunpack.i.h.bf16 %v1257_v39  ;;  %v3426_v37 = vld [vmem:[%s5661_s0 + $0xd0] sm:$0x1f]  }
  0x36   :  { %v1230_v51 = vrot.slane %v1229_v41, 2  ;;  %v1240_v52 = vmax.f32 %v1238_v33, %v1239_v42  ;;  %v1268_v53 = vsel %vm3581_vm2, %v3421_v28, 4286644096  ;;  %v1279_v54 = vsel %vm3581_vm2, %v3422_v30, 4286644096 }
  0x37   :  { %v1211_v55 = vmax.f32 %v1209_v35, %v1210_v44  ;;  %v1220_v56 = vmax.f32 %v1218_v36, %v1219_v45  ;;  %v1250_v57 = vrot.slane %v1249_v49, 4  ;;  %v1260_v58 = vmax.f32 %v1258_v43, %v1259_v50 }
  0x38   :  { %v1231_v62 = vmax.f32 %v1229_v41, %v1230_v51  ;;  %v1241_v63 = vrot.slane %v1240_v52, 2  ;;  %v1269_v0 = vunpack.i.l.bf16 %v1268_v53  ;;  %v1270_v1 = vunpack.i.h.bf16 %v1268_v53 }
  0x39   :  { %v3715_v2 = vpack.i.bf16 %v1211_v55, %v1211_v55  ;;  %v1221_v3 = vrot.slane %v1220_v56, 1  ;;  %v1251_v4 = vmax.f32 %v1249_v49, %v1250_v57  ;;  %v1261_v8 = vrot.slane %v1260_v58, 4 }
  0x3a   :  { %v1232_v9 = vrot.slane %v1231_v62, 1  ;;  %v1242_v10 = vmax.f32 %v1240_v52, %v1241_v63  ;;  %v1271_v11 = vmax.f32 %v1269_v0, %v1270_v1  ;;  %v1280_v12 = vunpack.i.l.bf16 %v1279_v54 }
  0x3b   :  { %v1222_v14 = vmax.f32 %v1220_v56, %v1221_v3  ;;  %v1252_v17 = vrot.slane %v1251_v4, 2  ;;  %v1262_v18 = vmax.f32 %v1260_v58, %v1261_v8  ;;  %v1281_v19 = vunpack.i.h.bf16 %v1279_v54 }
  0x3c   :  { %v1233_v22 = vmax.f32 %v1231_v62, %v1232_v9  ;;  %v1243_v24 = vrot.slane %v1242_v10, 1  ;;  %v1272_v26 = vrot.slane %v1271_v11, 4  ;;  %v1290_v27 = vsel %vm3581_vm2, %v3423_v59, 4286644096  ;;  %v3427_v59 = vld [vmem:[%s5661_s0 + $0xd8] sm:$0x1f]  }
  0x3d   :  { %v3725_v28 = vpack.i.bf16 %v1222_v14, %v1222_v14  ;;  %v1253_v30 = vmax.f32 %v1251_v4, %v1252_v17  ;;  %v1263_v31 = vrot.slane %v1262_v18, 2  ;;  %v1282_v32 = vmax.f32 %v1280_v12, %v1281_v19  ;;  %v3428_v62 = vld [vmem:[%s5661_s0 + $0xe0] sm:$0x1f]  }
  0x3e   :  { %v3727_v33 = vpack.i.bf16 %v1233_v22, %v1233_v22  ;;  %v1244_v34 = vmax.f32 %v1242_v10, %v1243_v24  ;;  %v1273_v35 = vmax.f32 %v1271_v11, %v1272_v26  ;;  %v1291_v36 = vunpack.i.l.bf16 %v1290_v27 }
  0x3f   :  { %v1254_v39 = vrot.slane %v1253_v30, 1  ;;  %v1264_v41 = vmax.f32 %v1262_v18, %v1263_v31  ;;  %v1283_v42 = vrot.slane %v1282_v32, 4  ;;  %v1292_v43 = vunpack.i.h.bf16 %v1290_v27 }
  0x40   :  { %v3732_v44 = vpack.i.bf16 %v1244_v34, %v1244_v34  ;;  %v1274_v45 = vrot.slane %v1273_v35, 2  ;;  %v1301_v49 = vsel %vm3581_vm2, %v3424_v13, 4286644096  ;;  %v1312_v50 = vsel %vm3581_vm2, %v3425_v20, 4286644096 }
  0x41   :  { %v1255_v51 = vmax.f32 %v1253_v30, %v1254_v39  ;;  %v1265_v52 = vrot.slane %v1264_v41, 1  ;;  %v1284_v53 = vmax.f32 %v1282_v32, %v1283_v42  ;;  %v1293_v54 = vmax.f32 %v1291_v36, %v1292_v43  ;;  %v3429_v30 = vld [vmem:[%s5661_s0 + $0xe8] sm:$0x1f]  }
  0x42   :  { %v1275_v55 = vmax.f32 %v1273_v35, %v1274_v45  ;;  %v1302_v56 = vunpack.i.l.bf16 %v1301_v49  ;;  %v1303_v57 = vunpack.i.h.bf16 %v1301_v49  ;;  %v1313_v58 = vunpack.i.l.bf16 %v1312_v50 }
  0x43   :  { %v3744_v63 = vpack.i.bf16 %v1255_v51, %v1255_v51  ;;  %v1266_v0 = vmax.f32 %v1264_v41, %v1265_v52  ;;  %v1285_v1 = vrot.slane %v1284_v53, 2  ;;  %v1294_v3 = vrot.slane %v1293_v54, 4 }
  0x44   :  { %v1276_v4 = vrot.slane %v1275_v55, 1  ;;  %v1304_v8 = vmax.f32 %v1302_v56, %v1303_v57  ;;  %v1314_v9 = vunpack.i.h.bf16 %v1312_v50  ;;  %v1323_v10 = vsel %vm3581_vm2, %v3426_v37, 4286644096  ;;  %v3430_v50 = vld [vmem:[%s5661_s0 + $0xf0] sm:$0x1f]  }
  0x45   :  { %v3748_v11 = vpack.i.bf16 %v1266_v0, %v1266_v0  ;;  %v1286_v12 = vmax.f32 %v1284_v53, %v1285_v1  ;;  %v1295_v13 = vmax.f32 %v1293_v54, %v1294_v3  ;;  %v1324_v14 = vunpack.i.l.bf16 %v1323_v10 }
  0x46   :  { %v1277_v17 = vmax.f32 %v1275_v55, %v1276_v4  ;;  %v1305_v18 = vrot.slane %v1304_v8, 4  ;;  %v1315_v19 = vmax.f32 %v1313_v58, %v1314_v9  ;;  %v1325_v20 = vunpack.i.h.bf16 %v1323_v10  ;;  %v3431_v10 = vld [vmem:[%s5661_s0 + $0xf8] sm:$0x1f]  }
  0x47   :  { %v1287_v22 = vrot.slane %v1286_v12, 1  ;;  %v1296_v24 = vrot.slane %v1295_v13, 2  ;;  %v1334_v26 = vsel %vm3581_vm2, %v3427_v59, 4286644096  ;;  %v1345_v27 = vsel %vm3581_vm2, %v3428_v62, 4286644096 }
  0x48   :  { %v3757_v31 = vpack.i.bf16 %v1277_v17, %v1277_v17  ;;  %v1306_v32 = vmax.f32 %v1304_v8, %v1305_v18  ;;  %v1316_v34 = vrot.slane %v1315_v19, 4  ;;  %v1326_v35 = vmax.f32 %v1324_v14, %v1325_v20 }
  0x49   :  { %v1288_v36 = vmax.f32 %v1286_v12, %v1287_v22  ;;  %v1297_v37 = vmax.f32 %v1295_v13, %v1296_v24  ;;  %v1335_v39 = vunpack.i.l.bf16 %v1334_v26  ;;  %v1336_v41 = vunpack.i.h.bf16 %v1334_v26 }
  0x4a   :  { %v1307_v42 = vrot.slane %v1306_v32, 2  ;;  %v1317_v43 = vmax.f32 %v1315_v19, %v1316_v34  ;;  %v1327_v45 = vrot.slane %v1326_v35, 4  ;;  %v1346_v49 = vunpack.i.l.bf16 %v1345_v27  ;;  %v3433_v34 = vld [vmem:[%s5661_s0 + $0x108] sm:$0x1f]  }
  0x4b   :  { %v3762_v51 = vpack.i.bf16 %v1288_v36, %v1288_v36  ;;  %v1298_v52 = vrot.slane %v1297_v37, 1  ;;  %v1337_v53 = vmax.f32 %v1335_v39, %v1336_v41  ;;  %v1347_v54 = vunpack.i.h.bf16 %v1345_v27 }
  0x4c   :  { %v1308_v55 = vmax.f32 %v1306_v32, %v1307_v42  ;;  %v1318_v56 = vrot.slane %v1317_v43, 2  ;;  %v1328_v57 = vmax.f32 %v1326_v35, %v1327_v45  ;;  %v1356_v58 = vsel %vm3581_vm2, %v3429_v30, 4286644096  ;;  %v3432_v32 = vld [vmem:[%s5661_s0 + $0x100] sm:$0x1f]  }
  0x4d   :  { %v1299_v59 = vmax.f32 %v1297_v37, %v1298_v52  ;;  %v1338_v62 = vrot.slane %v1337_v53, 4  ;;  %v1348_v0 = vmax.f32 %v1346_v49, %v1347_v54  ;;  %v1357_v1 = vunpack.i.l.bf16 %v1356_v58  ;;  %v3434_v54 = vld [vmem:[%s5661_s0 + $0x110] sm:$0x1f]  }
  0x4e   :  { %v1309_v3 = vrot.slane %v1308_v55, 1  ;;  %v1319_v4 = vmax.f32 %v1317_v43, %v1318_v56  ;;  %v1329_v8 = vrot.slane %v1328_v57, 2  ;;  %v1358_v9 = vunpack.i.h.bf16 %v1356_v58 }
  0x4f   :  { %v3769_v12 = vpack.i.bf16 %v1299_v59, %v1299_v59  ;;  %v1339_v13 = vmax.f32 %v1337_v53, %v1338_v62  ;;  %v1349_v14 = vrot.slane %v1348_v0, 4  ;;  %v1367_v17 = vsel %vm3581_vm2, %v3430_v50, 4286644096 }
  0x50   :  { %v1310_v18 = vmax.f32 %v1308_v55, %v1309_v3  ;;  %v1320_v19 = vrot.slane %v1319_v4, 1  ;;  %v1330_v20 = vmax.f32 %v1328_v57, %v1329_v8  ;;  %v1359_v22 = vmax.f32 %v1357_v1, %v1358_v9 }
  0x51   :  { %v1340_v24 = vrot.slane %v1339_v13, 2  ;;  %v1350_v26 = vmax.f32 %v1348_v0, %v1349_v14  ;;  %v1368_v27 = vunpack.i.l.bf16 %v1367_v17  ;;  %v1369_v30 = vunpack.i.h.bf16 %v1367_v17 }
  0x52   :  { %v3779_v35 = vpack.i.bf16 %v1310_v18, %v1310_v18  ;;  %v1321_v36 = vmax.f32 %v1319_v4, %v1320_v19  ;;  %v1331_v37 = vrot.slane %v1330_v20, 1  ;;  %v1360_v39 = vrot.slane %v1359_v22, 4  ;;  %v3435_v18 = vld [vmem:[%s5661_s0 + $0x118] sm:$0x1f]   ;;  %v3436_v19 = vld [vmem:[%s5661_s0 + $0x120] sm:$0x1f]  }
  0x53   :  { %v1341_v41 = vmax.f32 %v1339_v13, %v1340_v24  ;;  %v1351_v42 = vrot.slane %v1350_v26, 2  ;;  %v1370_v43 = vmax.f32 %v1368_v27, %v1369_v30  ;;  %v1378_v45 = vsel %vm3581_vm2, %v3431_v10, 4286644096 }
  0x54   :  { %v3783_v49 = vpack.i.bf16 %v1321_v36, %v1321_v36  ;;  %v1332_v50 = vmax.f32 %v1330_v20, %v1331_v37  ;;  %v1361_v52 = vmax.f32 %v1359_v22, %v1360_v39  ;;  %v1379_v53 = vunpack.i.l.bf16 %v1378_v45 }
  0x55   :  { %v1342_v55 = vrot.slane %v1341_v41, 1  ;;  %v1352_v56 = vmax.f32 %v1350_v26, %v1351_v42  ;;  %v1371_v57 = vrot.slane %v1370_v43, 4  ;;  %v1380_v58 = vunpack.i.h.bf16 %v1378_v45 }
  0x56   :  { %v3788_v59 = vpack.i.bf16 %v1332_v50, %v1332_v50  ;;  %v1362_v62 = vrot.slane %v1361_v52, 2  ;;  %v1389_v0 = vsel %vm3581_vm2, %v3432_v32, 4286644096  ;;  %v1400_v1 = vsel %vm3581_vm2, %v3433_v34, 4286644096 }
  0x57   :  { %v1343_v3 = vmax.f32 %v1341_v41, %v1342_v55  ;;  %v1353_v4 = vrot.slane %v1352_v56, 1  ;;  %v1372_v8 = vmax.f32 %v1370_v43, %v1371_v57  ;;  %v1381_v9 = vmax.f32 %v1379_v53, %v1380_v58 }
  0x58   :  { %v1363_v10 = vmax.f32 %v1361_v52, %v1362_v62  ;;  %v1390_v13 = vunpack.i.l.bf16 %v1389_v0  ;;  %v1391_v14 = vunpack.i.h.bf16 %v1389_v0  ;;  %v1401_v17 = vunpack.i.l.bf16 %v1400_v1 }
  0x59   :  { %v3800_v20 = vpack.i.bf16 %v1343_v3, %v1343_v3  ;;  %v1354_v22 = vmax.f32 %v1352_v56, %v1353_v4  ;;  %v1373_v24 = vrot.slane %v1372_v8, 2  ;;  %v1382_v26 = vrot.slane %v1381_v9, 4 }
  0x5a   :  { %v1364_v27 = vrot.slane %v1363_v10, 1  ;;  %v1392_v30 = vmax.f32 %v1390_v13, %v1391_v14  ;;  %v1402_v32 = vunpack.i.h.bf16 %v1400_v1  ;;  %v1411_v34 = vsel %vm3581_vm2, %v3434_v54, 4286644096  ;;  %v3437_v54 = vld [vmem:[%s5661_s0 + $0x128] sm:$0x1f]  }
  0x5b   :  { %v3804_v36 = vpack.i.bf16 %v1354_v22, %v1354_v22  ;;  %v1374_v37 = vmax.f32 %v1372_v8, %v1373_v24  ;;  %v1383_v39 = vmax.f32 %v1381_v9, %v1382_v26  ;;  %v1412_v41 = vunpack.i.l.bf16 %v1411_v34 }
  0x5c   :  { %v1365_v42 = vmax.f32 %v1363_v10, %v1364_v27  ;;  %v1393_v43 = vrot.slane %v1392_v30, 4  ;;  %v1403_v45 = vmax.f32 %v1401_v17, %v1402_v32  ;;  %v1413_v50 = vunpack.i.h.bf16 %v1411_v34  ;;  %v3438_v17 = vld [vmem:[%s5661_s0 + $0x130] sm:$0x1f]  }
  0x5d   :  { %v1375_v52 = vrot.slane %v1374_v37, 1  ;;  %v1384_v53 = vrot.slane %v1383_v39, 2  ;;  %v1422_v55 = vsel %vm3581_vm2, %v3435_v18, 4286644096  ;;  %v1433_v56 = vsel %vm3581_vm2, %v3436_v19, 4286644096 }
  0x5e   :  { %v3813_v57 = vpack.i.bf16 %v1365_v42, %v1365_v42  ;;  %v1394_v58 = vmax.f32 %v1392_v30, %v1393_v43  ;;  %v1404_v62 = vrot.slane %v1403_v45, 4  ;;  %v1414_v0 = vmax.f32 %v1412_v41, %v1413_v50 }
  0x5f   :  { %v1376_v1 = vmax.f32 %v1374_v37, %v1375_v52  ;;  %v1385_v3 = vmax.f32 %v1383_v39, %v1384_v53  ;;  %v1423_v4 = vunpack.i.l.bf16 %v1422_v55  ;;  %v1424_v8 = vunpack.i.h.bf16 %v1422_v55  ;;  %v3439_v52 = vld [vmem:[%s5661_s0 + $0x138] sm:$0x1f]  }
  0x60   :  { %v1395_v9 = vrot.slane %v1394_v58, 2  ;;  %v1405_v10 = vmax.f32 %v1403_v45, %v1404_v62  ;;  %v1415_v13 = vrot.slane %v1414_v0, 4  ;;  %v1434_v14 = vunpack.i.l.bf16 %v1433_v56 }
  0x61   :  { %v3818_v18 = vpack.i.bf16 %v1376_v1, %v1376_v1  ;;  %v1386_v19 = vrot.slane %v1385_v3, 1  ;;  %v1425_v22 = vmax.f32 %v1423_v4, %v1424_v8  ;;  %v1435_v24 = vunpack.i.h.bf16 %v1433_v56 }
  0x62   :  { %v1396_v26 = vmax.f32 %v1394_v58, %v1395_v9  ;;  %v1406_v27 = vrot.slane %v1405_v10, 2  ;;  %v1416_v30 = vmax.f32 %v1414_v0, %v1415_v13  ;;  %v1444_v32 = vsel %vm3581_vm2, %v3437_v54, 4286644096  ;;  %v3441_v13 = vld [vmem:[%s5661_s0 + $0x148] sm:$0x1f]  }
  0x63   :  { %v1387_v34 = vmax.f32 %v1385_v3, %v1386_v19  ;;  %v1426_v37 = vrot.slane %v1425_v22, 4  ;;  %v1436_v39 = vmax.f32 %v1434_v14, %v1435_v24  ;;  %v1445_v41 = vunpack.i.l.bf16 %v1444_v32 }
  0x64   :  { %v1397_v42 = vrot.slane %v1396_v26, 1  ;;  %v1407_v43 = vmax.f32 %v1405_v10, %v1406_v27  ;;  %v1417_v45 = vrot.slane %v1416_v30, 2  ;;  %v1446_v50 = vunpack.i.h.bf16 %v1444_v32  ;;  %v3440_v10 = vld [vmem:[%s5661_s0 + $0x140] sm:$0x1f]  }
  0x65   :  { %v3825_v53 = vpack.i.bf16 %v1387_v34, %v1387_v34  ;;  %v1427_v55 = vmax.f32 %v1425_v22, %v1426_v37  ;;  %v1437_v56 = vrot.slane %v1436_v39, 4  ;;  %v1455_v58 = vsel %vm3581_vm2, %v3438_v17, 4286644096 }
  0x66   :  { %v1398_v54 = vmax.f32 %v1396_v26, %v1397_v42  ;;  %v1408_v62 = vrot.slane %v1407_v43, 1  ;;  %v1418_v0 = vmax.f32 %v1416_v30, %v1417_v45  ;;  %v1447_v1 = vmax.f32 %v1445_v41, %v1446_v50  ;;  %v3442_v41 = vld [vmem:[%s5661_s0 + $0x150] sm:$0x1f]  }
  0x67   :  { %v1428_v3 = vrot.slane %v1427_v55, 2  ;;  %v1438_v4 = vmax.f32 %v1436_v39, %v1437_v56  ;;  %v1456_v8 = vunpack.i.l.bf16 %v1455_v58  ;;  %v1457_v9 = vunpack.i.h.bf16 %v1455_v58 }
  0x68   :  { %v3835_v14 = vpack.i.bf16 %v1398_v54, %v1398_v54  ;;  %v1409_v19 = vmax.f32 %v1407_v43, %v1408_v62  ;;  %v1419_v17 = vrot.slane %v1418_v0, 1  ;;  %v1448_v22 = vrot.slane %v1447_v1, 4 }
  0x69   :  { %v1429_v24 = vmax.f32 %v1427_v55, %v1428_v3  ;;  %v1439_v26 = vrot.slane %v1438_v4, 2  ;;  %v1458_v27 = vmax.f32 %v1456_v8, %v1457_v9  ;;  %v1466_v30 = vsel %vm3581_vm2, %v3439_v52, 4286644096 }
  0x6a   :  { %v3839_v32 = vpack.i.bf16 %v1409_v19, %v1409_v19  ;;  %v1420_v34 = vmax.f32 %v1418_v0, %v1419_v17  ;;  %v1449_v37 = vmax.f32 %v1447_v1, %v1448_v22  ;;  %v1467_v39 = vunpack.i.l.bf16 %v1466_v30  ;;  %v3444_v17 = vld [vmem:[%s5661_s0 + $0x160] sm:$0x1f]  }
  0x6b   :  { %v1430_v42 = vrot.slane %v1429_v24, 1  ;;  %v1440_v45 = vmax.f32 %v1438_v4, %v1439_v26  ;;  %v1459_v43 = vrot.slane %v1458_v27, 4  ;;  %v1468_v50 = vunpack.i.h.bf16 %v1466_v30  ;;  %v3443_v4 = vld [vmem:[%s5661_s0 + $0x158] sm:$0x1f]  }
  0x6c   :  { %v3844_v56 = vpack.i.bf16 %v1420_v34, %v1420_v34  ;;  %v1450_v55 = vrot.slane %v1449_v37, 2  ;;  %v1477_v58 = vsel %vm3581_vm2, %v3440_v10, 4286644096  ;;  %v1488_v52 = vsel %vm3581_vm2, %v3441_v13, 4286644096 }
  0x6d   :  { %v1431_v54 = vmax.f32 %v1429_v24, %v1430_v42  ;;  %v1441_v62 = vrot.slane %v1440_v45, 1  ;;  %v1460_v0 = vmax.f32 %v1458_v27, %v1459_v43  ;;  %v1469_v1 = vmax.f32 %v1467_v39, %v1468_v50 }
  0x6e   :  { %5755 = vst [vmem:[#allocation5_spill] sm:$0xff] %v3844_v56  ;;  %v1451_v3 = vmax.f32 %v1449_v37, %v1450_v55  ;;  %v1478_v8 = vunpack.i.l.bf16 %v1477_v58  ;;  %v1479_v9 = vunpack.i.h.bf16 %v1477_v58  ;;  %v1489_v19 = vunpack.i.l.bf16 %v1488_v52 }
  0x6f   :  { %v3856_v10 = vpack.i.bf16 %v1431_v54, %v1431_v54  ;;  %v1442_v22 = vmax.f32 %v1440_v45, %v1441_v62  ;;  %v1461_v13 = vrot.slane %v1460_v0, 2  ;;  %v1470_v24 = vrot.slane %v1469_v1, 4 }
  0x70   :  { %v1452_v26 = vrot.slane %v1451_v3, 1  ;;  %v1480_v27 = vmax.f32 %v1478_v8, %v1479_v9  ;;  %v1490_v30 = vunpack.i.h.bf16 %v1488_v52  ;;  %v1499_v34 = vsel %vm3581_vm2, %v3442_v41, 4286644096  ;;  %v3445_v41 = vld [vmem:[%s5661_s0 + $0x168] sm:$0x1f]  }
  0x71   :  { %5756 = vst [vmem:[#allocation6_spill] sm:$0xff] %v3856_v10  ;;  %v3860_v37 = vpack.i.bf16 %v1442_v22, %v1442_v22  ;;  %v1462_v39 = vmax.f32 %v1460_v0, %v1461_v13  ;;  %v1471_v42 = vmax.f32 %v1469_v1, %v1470_v24  ;;  %v1500_v43 = vunpack.i.l.bf16 %v1499_v34 }
  0x72   :  { %v1453_v50 = vmax.f32 %v1451_v3, %v1452_v26  ;;  %v1481_v55 = vrot.slane %v1480_v27, 4  ;;  %v1491_v58 = vmax.f32 %v1489_v19, %v1490_v30  ;;  %v1501_v56 = vunpack.i.h.bf16 %v1499_v34 }
  0x73   :  { %5757 = vst [vmem:[#allocation7_spill] sm:$0xff] %v3860_v37  ;;  %v1463_v54 = vrot.slane %v1462_v39, 1  ;;  %v1472_v10 = vrot.slane %v1471_v42, 2  ;;  %v1510_v45 = vsel %vm3581_vm2, %v3443_v4, 4286644096  ;;  %vm2963_vm6 = vcmask 1044484  }
  0x74   :  { %v1521_v52 = vsel %vm3581_vm2, %v3444_v17, 4286644096  ;;  %v3869_v62 = vpack.i.bf16 %v1453_v50, %v1453_v50  ;;  %v1482_v0 = vmax.f32 %v1480_v27, %v1481_v55  ;;  %v1492_v1 = vrot.slane %v1491_v58, 4  ;;  %v3446_v17 = vld [vmem:[%s5661_s0 + $0x170] sm:$0x1f]  }
  0x75   :  { %v1502_v3 = vmax.f32 %v1500_v43, %v1501_v56  ;;  %v1464_v8 = vmax.f32 %v1462_v39, %v1463_v54  ;;  %v1473_v9 = vmax.f32 %v1471_v42, %v1472_v10  ;;  %v1511_v19 = vunpack.i.l.bf16 %v1510_v45 }
  0x76   :  { %5758 = vst [vmem:[#allocation8_spill] sm:$0xff] %v3869_v62  ;;  %v1512_v22 = vunpack.i.h.bf16 %v1510_v45  ;;  %v1483_v13 = vrot.slane %v1482_v0, 2  ;;  %v1493_v24 = vmax.f32 %v1491_v58, %v1492_v1  ;;  %v1522_v4 = vunpack.i.l.bf16 %v1521_v52 }
  0x77   :  { %v1503_v26 = vrot.slane %v1502_v3, 4  ;;  %v3874_v30 = vpack.i.bf16 %v1464_v8, %v1464_v8  ;;  %v1474_v34 = vrot.slane %v1473_v9, 1  ;;  %v1523_v62 = vunpack.i.h.bf16 %v1521_v52  ;;  %v3447_v8 = vld [vmem:[%s5661_s0 + $0x178] sm:$0x1f]  }
  0x78   :  { %v1513_v50 = vmax.f32 %v1511_v19, %v1512_v22  ;;  %v1484_v27 = vmax.f32 %v1482_v0, %v1483_v13  ;;  %v1494_v55 = vrot.slane %v1493_v24, 2  ;;  %v1532_v10 = vsel %vm3581_vm2, %v3445_v41, 4286644096 }
  0x79   :  { %5759 = vst [vmem:[#allocation9_spill] sm:$0xff] %v3874_v30  ;;  %v1504_v56 = vmax.f32 %v1502_v3, %v1503_v26  ;;  %v1475_v39 = vmax.f32 %v1473_v9, %v1474_v34  ;;  %v1524_v43 = vmax.f32 %v1522_v4, %v1523_v62  ;;  %v1533_v58 = vunpack.i.l.bf16 %v1532_v10  ;;  %v3448_v34 = vld [vmem:[%s5661_s0 + $0x180] sm:$0x1f]  }
  0x7a   :  { %v1514_v42 = vrot.slane %v1513_v50, 4  ;;  %v1485_v54 = vrot.slane %v1484_v27, 1  ;;  %v1495_v45 = vmax.f32 %v1493_v24, %v1494_v55  ;;  %v1534_v37 = vunpack.i.h.bf16 %v1532_v10 }
  0x7b   :  { %v1505_v1 = vrot.slane %v1504_v56, 2  ;;  %v3881_v19 = vpack.i.bf16 %v1475_v39, %v1475_v39  ;;  %v1525_v0 = vrot.slane %v1524_v43, 4  ;;  %v1543_v3 = vsel %vm3581_vm2, %v3446_v17, 4286644096 }
  0x7c   :  { %v1515_v52 = vmax.f32 %v1513_v50, %v1514_v42  ;;  %v1486_v41 = vmax.f32 %v1484_v27, %v1485_v54  ;;  %v1496_v9 = vrot.slane %v1495_v45, 1  ;;  %v1535_v62 = vmax.f32 %v1533_v58, %v1534_v37  ;;  %v3449_v50 = vld [vmem:[%s5661_s0 + $0x188] sm:$0x1f]  }
  0x7d   :  { %5760 = vst [vmem:[#allocation10_spill] sm:$0xff] %v3881_v19  ;;  %v1506_v22 = vmax.f32 %v1504_v56, %v1505_v1  ;;  %v1526_v26 = vmax.f32 %v1524_v43, %v1525_v0  ;;  %v1544_v24 = vunpack.i.l.bf16 %v1543_v3  ;;  %v1545_v4 = vunpack.i.h.bf16 %v1543_v3  ;;  %v3450_v0 = vld [vmem:[%s5661_s0 + $0x190] sm:$0x1f]  }
  0x7e   :  { %v1516_v13 = vrot.slane %v1515_v52, 2  ;;  %v3891_v55 = vpack.i.bf16 %v1486_v41, %v1486_v41  ;;  %v1497_v10 = vmax.f32 %v1495_v45, %v1496_v9  ;;  %v1536_v27 = vrot.slane %v1535_v62, 4 }
  0x7f   :  { %v1507_v17 = vrot.slane %v1506_v22, 1  ;;  %v1527_v56 = vrot.slane %v1526_v26, 2  ;;  %v1546_v37 = vmax.f32 %v1544_v24, %v1545_v4  ;;  %v1554_v42 = vsel %vm3581_vm2, %v3447_v8, 4286644096 }
  0x80   :  { %5761 = vst [vmem:[#allocation11_spill] sm:$0xff] %v3891_v55  ;;  %v1517_v39 = vmax.f32 %v1515_v52, %v1516_v13  ;;  %v3895_v43 = vpack.i.bf16 %v1497_v10, %v1497_v10  ;;  %v1537_v54 = vmax.f32 %v1535_v62, %v1536_v27  ;;  %v1555_v1 = vunpack.i.l.bf16 %v1554_v42 }
  0x81   :  { %v1508_v58 = vmax.f32 %v1506_v22, %v1507_v17  ;;  %v1528_v41 = vmax.f32 %v1526_v26, %v1527_v56  ;;  %v1547_v45 = vrot.slane %v1546_v37, 4  ;;  %v1556_v9 = vunpack.i.h.bf16 %v1554_v42  ;;  %v3451_v26 = vld [vmem:[%s5661_s0 + $0x198] sm:$0x1f]   ;;  %v3452_v56 = vld [vmem:[%s5661_s0 + $0x1a0] sm:$0x1f]  }
  0x82   :  { %5762 = vst [vmem:[#allocation12_spill] sm:$0xff] %v3895_v43  ;;  %v1518_v3 = vrot.slane %v1517_v39, 1  ;;  %v1538_v52 = vrot.slane %v1537_v54, 2  ;;  %v1565_v13 = vsel %vm3581_vm2, %v3448_v34, 4286644096  ;;  %vm2965_vm7 = vcmask 1045509  }
  0x83   :  { %v3900_v55 = vpack.i.bf16 %v1508_v58, %v1508_v58  ;;  %v1576_v8 = vsel %vm3581_vm2, %v3449_v50, 4286644096  ;;  %v1529_v62 = vrot.slane %v1528_v41, 1  ;;  %v1548_v24 = vmax.f32 %v1546_v37, %v1547_v45 }
  0x84   :  { %v1519_v22 = vmax.f32 %v1517_v39, %v1518_v3  ;;  %v1557_v4 = vmax.f32 %v1555_v1, %v1556_v9  ;;  %v1539_v10 = vmax.f32 %v1537_v54, %v1538_v52  ;;  %v1566_v17 = vunpack.i.l.bf16 %v1565_v13 }
  0x85   :  { %5763 = vst [vmem:[#allocation13_spill] sm:$0xff] %v3900_v55  ;;  %v1567_v27 = vunpack.i.h.bf16 %v1565_v13  ;;  %v1577_v43 = vunpack.i.l.bf16 %v1576_v8  ;;  %v1530_v42 = vmax.f32 %v1528_v41, %v1529_v62  ;;  %v1549_v50 = vrot.slane %v1548_v24, 2 }
  0x86   :  { %v3912_v34 = vpack.i.bf16 %v1519_v22, %v1519_v22  ;;  %v1558_v39 = vrot.slane %v1557_v4, 4  ;;  %v1540_v58 = vrot.slane %v1539_v10, 1  ;;  %v1578_v1 = vunpack.i.h.bf16 %v1576_v8 }
  0x87   :  { %v1568_v37 = vmax.f32 %v1566_v17, %v1567_v27  ;;  %v1587_v54 = vsel %vm3581_vm2, %v3450_v0, 4286644096  ;;  %v3916_v3 = vpack.i.bf16 %v1530_v42, %v1530_v42  ;;  %v1550_v45 = vmax.f32 %v1548_v24, %v1549_v50  ;;  %v3453_v0 = vld [vmem:[%s5661_s0 + $0x1a8] sm:$0x1f]  }
  0x88   :  { %5764 = vst [vmem:[#allocation14_spill] sm:$0xff] %v3912_v34  ;;  %v1559_v9 = vmax.f32 %v1557_v4, %v1558_v39  ;;  %v1588_v52 = vunpack.i.l.bf16 %v1587_v54  ;;  %v1541_v13 = vmax.f32 %v1539_v10, %v1540_v58  ;;  %v1579_v19 = vmax.f32 %v1577_v43, %v1578_v1 }
  0x89   :  { %5765 = vst [vmem:[#allocation15_spill] sm:$0xff] %v3916_v3  ;;  %v1569_v55 = vrot.slane %v1568_v37, 4  ;;  %v1589_v30 = vunpack.i.h.bf16 %v1587_v54  ;;  %v1551_v22 = vrot.slane %v1550_v45, 1  ;;  %v1598_v41 = vsel %vm3581_vm2, %v3451_v26, 4286644096 }
  0x8a   :  { %v1560_v34 = vrot.slane %v1559_v9, 2  ;;  %v1609_v8 = vsel %vm3581_vm2, %v3452_v56, 4286644096  ;;  %v3925_v62 = vpack.i.bf16 %v1541_v13, %v1541_v13  ;;  %v1580_v4 = vrot.slane %v1579_v19, 4  ;;  %v3454_v56 = vld [vmem:[%s5661_s0 + $0x1b0] sm:$0x1f]  }
  0x8b   :  { %v1570_v24 = vmax.f32 %v1568_v37, %v1569_v55  ;;  %v1590_v10 = vmax.f32 %v1588_v52, %v1589_v30  ;;  %v1552_v17 = vmax.f32 %v1550_v45, %v1551_v22  ;;  %v1599_v27 = vunpack.i.l.bf16 %v1598_v41 }
  0x8c   :  { %5766 = vst [vmem:[#allocation16_spill] sm:$0xff] %v3925_v62  ;;  %v1561_v43 = vmax.f32 %v1559_v9, %v1560_v34  ;;  %v1600_v42 = vunpack.i.h.bf16 %v1598_v41  ;;  %v1581_v39 = vmax.f32 %v1579_v19, %v1580_v4  ;;  %v1610_v26 = vunpack.i.l.bf16 %v1609_v8 }
  0x8d   :  { %v1571_v50 = vrot.slane %v1570_v24, 2  ;;  %v1591_v58 = vrot.slane %v1590_v10, 4  ;;  %v3930_v1 = vpack.i.bf16 %v1552_v17, %v1552_v17  ;;  %v1611_v62 = vunpack.i.h.bf16 %v1609_v8  ;;  %v3455_v17 = vld [vmem:[%s5661_s0 + $0x1b8] sm:$0x1f]  }
  0x8e   :  { %v1562_v54 = vrot.slane %v1561_v43, 1  ;;  %v1601_v13 = vmax.f32 %v1599_v27, %v1600_v42  ;;  %v1582_v37 = vrot.slane %v1581_v39, 2  ;;  %v1620_v34 = vsel %vm3581_vm2, %v3453_v0, 4286644096 }
  0x8f   :  { %5767 = vst [vmem:[#allocation17_spill] sm:$0xff] %v3930_v1  ;;  %v1572_v55 = vmax.f32 %v1570_v24, %v1571_v50  ;;  %v1592_v30 = vmax.f32 %v1590_v10, %v1591_v58  ;;  %v1612_v19 = vmax.f32 %v1610_v26, %v1611_v62  ;;  %v1621_v52 = vunpack.i.l.bf16 %v1620_v34 }
  0x90   :  { %v1563_v45 = vmax.f32 %v1561_v43, %v1562_v54  ;;  %v1602_v9 = vrot.slane %v1601_v13, 4  ;;  %v1583_v41 = vmax.f32 %v1581_v39, %v1582_v37  ;;  %v1622_v3 = vunpack.i.h.bf16 %v1620_v34  ;;  %v3456_v54 = vld [vmem:[%s5661_s0 + $0x1c0] sm:$0x1f]  }
  0x91   :  { %v1573_v22 = vrot.slane %v1572_v55, 1  ;;  %v1593_v4 = vrot.slane %v1592_v30, 2  ;;  %v1613_v24 = vrot.slane %v1612_v19, 4  ;;  %v1631_v10 = vsel %vm3581_vm2, %v3454_v56, 4286644096 }
  0x92   :  { %v3937_v27 = vpack.i.bf16 %v1563_v45, %v1563_v45  ;;  %v1603_v8 = vmax.f32 %v1601_v13, %v1602_v9  ;;  %v1584_v43 = vrot.slane %v1583_v41, 1  ;;  %v1623_v62 = vmax.f32 %v1621_v52, %v1622_v3  ;;  %v3457_v13 = vld [vmem:[%s5661_s0 + $0x1c8] sm:$0x1f]  }
  0x93   :  { %v1574_v0 = vmax.f32 %v1572_v55, %v1573_v22  ;;  %v1594_v42 = vmax.f32 %v1592_v30, %v1593_v4  ;;  %v1614_v58 = vmax.f32 %v1612_v19, %v1613_v24  ;;  %v1632_v39 = vunpack.i.l.bf16 %v1631_v10  ;;  %v3458_v24 = vld [vmem:[%s5661_s0 + $0x1d0] sm:$0x1f]  }
  0x94   :  { %5768 = vst [vmem:[#allocation18_spill] sm:$0xff] %v3937_v27  ;;  %v1604_v50 = vrot.slane %v1603_v8, 2  ;;  %v1633_v26 = vunpack.i.h.bf16 %v1631_v10  ;;  %v1585_v34 = vmax.f32 %v1583_v41, %v1584_v43  ;;  %v1624_v55 = vrot.slane %v1623_v62, 4 }
  0x95   :  { %v3947_v37 = vpack.i.bf16 %v1574_v0, %v1574_v0  ;;  %v1595_v56 = vrot.slane %v1594_v42, 1  ;;  %v1615_v30 = vrot.slane %v1614_v58, 2  ;;  %v1642_v9 = vsel %vm3581_vm2, %v3455_v17, 4286644096 }
  0x96   :  { %v1605_v45 = vmax.f32 %v1603_v8, %v1604_v50  ;;  %v1634_v3 = vmax.f32 %v1632_v39, %v1633_v26  ;;  %v3951_v19 = vpack.i.bf16 %v1585_v34, %v1585_v34  ;;  %v1625_v22 = vmax.f32 %v1623_v62, %v1624_v55 }
  0x97   :  { %5769 = vst [vmem:[#allocation19_spill] sm:$0xff] %v3947_v37  ;;  %v1596_v52 = vmax.f32 %v1594_v42, %v1595_v56  ;;  %v1643_v4 = vunpack.i.l.bf16 %v1642_v9  ;;  %v1616_v0 = vmax.f32 %v1614_v58, %v1615_v30  ;;  %v1644_v43 = vunpack.i.h.bf16 %v1642_v9  ;;  %v3459_v58 = vld [vmem:[%s5661_s0 + $0x1d8] sm:$0x1f]   ;;  %v3460_v30 = vld [vmem:[%s5661_s0 + $0x1e0] sm:$0x1f]  }
  0x98   :  { %5770 = vst [vmem:[#allocation20_spill] sm:$0xff] %v3951_v19  ;;  %v1606_v10 = vrot.slane %v1605_v45, 1  ;;  %v1635_v41 = vrot.slane %v1634_v3, 4  ;;  %v1626_v8 = vrot.slane %v1625_v22, 2  ;;  %v1653_v50 = vsel %vm3581_vm2, %v3456_v54, 4286644096 }
  0x99   :  { %v3956_v37 = vpack.i.bf16 %v1596_v52, %v1596_v52  ;;  %v1664_v17 = vsel %vm3581_vm2, %v3457_v13, 4286644096  ;;  %v1617_v62 = vrot.slane %v1616_v0, 1  ;;  %v1645_v26 = vmax.f32 %v1643_v4, %v1644_v43 }
  0x9a   :  { %v1607_v42 = vmax.f32 %v1605_v45, %v1606_v10  ;;  %v1636_v39 = vmax.f32 %v1634_v3, %v1635_v41  ;;  %v1627_v34 = vmax.f32 %v1625_v22, %v1626_v8  ;;  %v1654_v56 = vunpack.i.l.bf16 %v1653_v50 }
  0x9b   :  { %5771 = vst [vmem:[#allocation21_spill] sm:$0xff] %v3956_v37  ;;  %v1655_v55 = vunpack.i.h.bf16 %v1653_v50  ;;  %v1665_v19 = vunpack.i.l.bf16 %v1664_v17  ;;  %v1618_v9 = vmax.f32 %v1616_v0, %v1617_v62  ;;  %v1646_v45 = vrot.slane %v1645_v26, 4 }
  0x9c   :  { %v3968_v54 = vpack.i.bf16 %v1607_v42, %v1607_v42  ;;  %v1637_v13 = vrot.slane %v1636_v39, 2  ;;  %v1628_v52 = vrot.slane %v1627_v34, 1  ;;  %v1666_v4 = vunpack.i.h.bf16 %v1664_v17 }
  0x9d   :  { %v1656_v3 = vmax.f32 %v1654_v56, %v1655_v55  ;;  %v1675_v22 = vsel %vm3581_vm2, %v3458_v24, 4286644096  ;;  %v3972_v10 = vpack.i.bf16 %v1618_v9, %v1618_v9  ;;  %v1647_v43 = vmax.f32 %v1645_v26, %v1646_v45  ;;  %v3461_v24 = vld [vmem:[%s5661_s0 + $0x1e8] sm:$0x1f]  }
  0x9e   :  { %5772 = vst [vmem:[#allocation22_spill] sm:$0xff] %v3968_v54  ;;  %v1638_v41 = vmax.f32 %v1636_v39, %v1637_v13  ;;  %v1676_v8 = vunpack.i.l.bf16 %v1675_v22  ;;  %v1629_v50 = vmax.f32 %v1627_v34, %v1628_v52  ;;  %v1667_v27 = vmax.f32 %v1665_v19, %v1666_v4 }
  0x9f   :  { %5773 = vst [vmem:[#allocation23_spill] sm:$0xff] %v3972_v10  ;;  %v1657_v37 = vrot.slane %v1656_v3, 4  ;;  %v1677_v1 = vunpack.i.h.bf16 %v1675_v22  ;;  %v1648_v54 = vrot.slane %v1647_v43, 2  ;;  %v1686_v0 = vsel %vm3581_vm2, %v3459_v58, 4286644096 }
  0xa0   :  { %v1639_v42 = vrot.slane %v1638_v41, 1  ;;  %v1697_v17 = vsel %vm3581_vm2, %v3460_v30, 4286644096  ;;  %v3981_v62 = vpack.i.bf16 %v1629_v50, %v1629_v50  ;;  %v1668_v26 = vrot.slane %v1667_v27, 4  ;;  %v3462_v30 = vld [vmem:[%s5661_s0 + $0x1f0] sm:$0x1f]  }
  0xa1   :  { %v1658_v39 = vmax.f32 %v1656_v3, %v1657_v37  ;;  %v1678_v34 = vmax.f32 %v1676_v8, %v1677_v1  ;;  %v1649_v19 = vmax.f32 %v1647_v43, %v1648_v54  ;;  %v1687_v55 = vunpack.i.l.bf16 %v1686_v0 }
  0xa2   :  { %5774 = vst [vmem:[#allocation24_spill] sm:$0xff] %v3981_v62  ;;  %v1640_v56 = vmax.f32 %v1638_v41, %v1639_v42  ;;  %v1688_v9 = vunpack.i.h.bf16 %v1686_v0  ;;  %v1669_v45 = vmax.f32 %v1667_v27, %v1668_v26  ;;  %v1698_v58 = vunpack.i.l.bf16 %v1697_v17 }
  0xa3   :  { %v1659_v13 = vrot.slane %v1658_v39, 2  ;;  %v1679_v52 = vrot.slane %v1678_v34, 4  ;;  %v1650_v22 = vrot.slane %v1649_v19, 1  ;;  %v1699_v62 = vunpack.i.h.bf16 %v1697_v17 }
  0xa4   :  { %v3986_v4 = vpack.i.bf16 %v1640_v56, %v1640_v56  ;;  %v1689_v50 = vmax.f32 %v1687_v55, %v1688_v9  ;;  %v1670_v3 = vrot.slane %v1669_v45, 2  ;;  %v1708_v54 = vsel %vm3581_vm2, %v3461_v24, 4286644096  ;;  %v3463_v56 = vld [vmem:[%s5661_s0 + $0x1f8] sm:$0x1f]  }
  0xa5   :  { %v1660_v37 = vmax.f32 %v1658_v39, %v1659_v13  ;;  %v1680_v1 = vmax.f32 %v1678_v34, %v1679_v52  ;;  %v1651_v41 = vmax.f32 %v1649_v19, %v1650_v22  ;;  %v1700_v27 = vmax.f32 %v1698_v58, %v1699_v62  ;;  %v3464_v22 = vld [vmem:[%s5661_s0 + $0x200] sm:$0x1f]  }
  0xa6   :  { %5775 = vst [vmem:[#allocation25_spill] sm:$0xff] %v3986_v4  ;;  %v1690_v43 = vrot.slane %v1689_v50, 4  ;;  %v1709_v8 = vunpack.i.l.bf16 %v1708_v54  ;;  %v1671_v0 = vmax.f32 %v1669_v45, %v1670_v3  ;;  %v1710_v10 = vunpack.i.h.bf16 %v1708_v54 }
  0xa7   :  { %v1661_v42 = vrot.slane %v1660_v37, 1  ;;  %v1681_v26 = vrot.slane %v1680_v1, 2  ;;  %v3993_v55 = vpack.i.bf16 %v1651_v41, %v1651_v41  ;;  %v1701_v39 = vrot.slane %v1700_v27, 4 }
  0xa8   :  { %v1691_v17 = vmax.f32 %v1689_v50, %v1690_v43  ;;  %v1719_v34 = vsel %vm3581_vm2, %v3462_v30, 4286644096  ;;  %v1672_v19 = vrot.slane %v1671_v0, 1  ;;  %v1711_v62 = vmax.f32 %v1709_v8, %v1710_v10  ;;  %v3465_v50 = vld [vmem:[%s5661_s0 + $0x208] sm:$0x1f]  }
  0xa9   :  { %5776 = vst [vmem:[#allocation26_spill] sm:$0xff] %v3993_v55  ;;  %v1662_v24 = vmax.f32 %v1660_v37, %v1661_v42  ;;  %v1682_v9 = vmax.f32 %v1680_v1, %v1681_v26  ;;  %v1702_v52 = vmax.f32 %v1700_v27, %v1701_v39  ;;  %v1720_v45 = vunpack.i.l.bf16 %v1719_v34  ;;  %v3466_v39 = vld [vmem:[%s5661_s0 + $0x210] sm:$0x1f]  }
  0xaa   :  { %v1692_v13 = vrot.slane %v1691_v17, 2  ;;  %v1721_v58 = vunpack.i.h.bf16 %v1719_v34  ;;  %v1673_v54 = vmax.f32 %v1671_v0, %v1672_v19  ;;  %v1712_v37 = vrot.slane %v1711_v62, 4 }
  0xab   :  { %v4003_v3 = vpack.i.bf16 %v1662_v24, %v1662_v24  ;;  %v1683_v30 = vrot.slane %v1682_v9, 1  ;;  %v1703_v1 = vrot.slane %v1702_v52, 2  ;;  %v1730_v43 = vsel %vm3581_vm2, %v3463_v56, 4286644096 }
  0xac   :  { %v1693_v41 = vmax.f32 %v1691_v17, %v1692_v13  ;;  %v1722_v10 = vmax.f32 %v1720_v45, %v1721_v58  ;;  %v4007_v27 = vpack.i.bf16 %v1673_v54, %v1673_v54  ;;  %v1713_v42 = vmax.f32 %v1711_v62, %v1712_v37 }
  0xad   :  { %5777 = vst [vmem:[#allocation27_spill] sm:$0xff] %v4003_v3  ;;  %v1684_v8 = vmax.f32 %v1682_v9, %v1683_v30  ;;  %v1731_v26 = vunpack.i.l.bf16 %v1730_v43  ;;  %v1704_v24 = vmax.f32 %v1702_v52, %v1703_v1  ;;  %v1732_v19 = vunpack.i.h.bf16 %v1730_v43  ;;  %v3467_v52 = vld [vmem:[%s5661_s0 + $0x218] sm:$0x1f]   ;;  %v3468_v1 = vld [vmem:[%s5661_s0 + $0x220] sm:$0x1f]  }
  0xae   :  { %5778 = vst [vmem:[#allocation28_spill] sm:$0xff] %v4007_v27  ;;  %v1694_v34 = vrot.slane %v1693_v41, 1  ;;  %v1723_v0 = vrot.slane %v1722_v10, 4  ;;  %v1714_v17 = vrot.slane %v1713_v42, 2  ;;  %v1741_v13 = vsel %vm3581_vm2, %v3464_v22, 4286644096 }
  0xaf   :  { %v4012_v3 = vpack.i.bf16 %v1684_v8, %v1684_v8  ;;  %v1752_v56 = vsel %vm3581_vm2, %v3465_v50, 4286644096  ;;  %v1705_v62 = vrot.slane %v1704_v24, 1  ;;  %v1733_v58 = vmax.f32 %v1731_v26, %v1732_v19 }
  0xb0   :  { %v1695_v9 = vmax.f32 %v1693_v41, %v1694_v34  ;;  %v1724_v45 = vmax.f32 %v1722_v10, %v1723_v0  ;;  %v1715_v54 = vmax.f32 %v1713_v42, %v1714_v17  ;;  %v1742_v30 = vunpack.i.l.bf16 %v1741_v13 }
  0xb1   :  { %5779 = vst [vmem:[#allocation29_spill] sm:$0xff] %v4012_v3  ;;  %v1743_v37 = vunpack.i.h.bf16 %v1741_v13  ;;  %v1753_v27 = vunpack.i.l.bf16 %v1752_v56  ;;  %v1706_v43 = vmax.f32 %v1704_v24, %v1705_v62  ;;  %v1734_v41 = vrot.slane %v1733_v58, 4 }
  0xb2   :  { %v4024_v22 = vpack.i.bf16 %v1695_v9, %v1695_v9  ;;  %v1725_v50 = vrot.slane %v1724_v45, 2  ;;  %v1716_v8 = vrot.slane %v1715_v54, 1  ;;  %v1754_v26 = vunpack.i.h.bf16 %v1752_v56 }
  0xb3   :  { %v1744_v10 = vmax.f32 %v1742_v30, %v1743_v37  ;;  %v1763_v42 = vsel %vm3581_vm2, %v3466_v39, 4286644096  ;;  %v4028_v34 = vpack.i.bf16 %v1706_v43, %v1706_v43  ;;  %v1735_v19 = vmax.f32 %v1733_v58, %v1734_v41  ;;  %v3469_v39 = vld [vmem:[%s5661_s0 + $0x228] sm:$0x1f]  }
  0xb4   :  { %5780 = vst [vmem:[#allocation30_spill] sm:$0xff] %v4024_v22  ;;  %v1726_v0 = vmax.f32 %v1724_v45, %v1725_v50  ;;  %v1764_v17 = vunpack.i.l.bf16 %v1763_v42  ;;  %v1717_v13 = vmax.f32 %v1715_v54, %v1716_v8  ;;  %v1755_v55 = vmax.f32 %v1753_v27, %v1754_v26 }
  0xb5   :  { %5781 = vst [vmem:[#allocation31_spill] sm:$0xff] %v4028_v34  ;;  %v1745_v3 = vrot.slane %v1744_v10, 4  ;;  %v1765_v4 = vunpack.i.h.bf16 %v1763_v42  ;;  %v1736_v22 = vrot.slane %v1735_v19, 2  ;;  %v1774_v24 = vsel %vm3581_vm2, %v3467_v52, 4286644096 }
  0xb6   :  { %v1727_v9 = vrot.slane %v1726_v0, 1  ;;  %v1785_v56 = vsel %vm3581_vm2, %v3468_v1, 4286644096  ;;  %v4037_v62 = vpack.i.bf16 %v1717_v13, %v1717_v13  ;;  %v1756_v58 = vrot.slane %v1755_v55, 4  ;;  %v3470_v1 = vld [vmem:[%s5661_s0 + $0x230] sm:$0x1f]  }
  0xb7   :  { %v1746_v45 = vmax.f32 %v1744_v10, %v1745_v3  ;;  %v1766_v54 = vmax.f32 %v1764_v17, %v1765_v4  ;;  %v1737_v27 = vmax.f32 %v1735_v19, %v1736_v22  ;;  %v1775_v37 = vunpack.i.l.bf16 %v1774_v24 }
  0xb8   :  { %5782 = vst [vmem:[#allocation32_spill] sm:$0xff] %v4037_v62  ;;  %v1728_v30 = vmax.f32 %v1726_v0, %v1727_v9  ;;  %v1776_v43 = vunpack.i.h.bf16 %v1774_v24  ;;  %v1757_v41 = vmax.f32 %v1755_v55, %v1756_v58  ;;  %v1786_v52 = vunpack.i.l.bf16 %v1785_v56 }
  0xb9   :  { %v1747_v50 = vrot.slane %v1746_v45, 2  ;;  %v1767_v8 = vrot.slane %v1766_v54, 4  ;;  %v1738_v42 = vrot.slane %v1737_v27, 1  ;;  %v1787_v62 = vunpack.i.h.bf16 %v1785_v56 }
  0xba   :  { %v4042_v26 = vpack.i.bf16 %v1728_v30, %v1728_v30  ;;  %v1777_v13 = vmax.f32 %v1775_v37, %v1776_v43  ;;  %v1758_v10 = vrot.slane %v1757_v41, 2  ;;  %v1796_v22 = vsel %vm3581_vm2, %v3469_v39, 4286644096  ;;  %v3471_v30 = vld [vmem:[%s5661_s0 + $0x238] sm:$0x1f]  }
  0xbb   :  { %v1748_v3 = vmax.f32 %v1746_v45, %v1747_v50  ;;  %v1768_v4 = vmax.f32 %v1766_v54, %v1767_v8  ;;  %v1739_v0 = vmax.f32 %v1737_v27, %v1738_v42  ;;  %v1788_v55 = vmax.f32 %v1786_v52, %v1787_v62  ;;  %v3472_v42 = vld [vmem:[%s5661_s0 + $0x240] sm:$0x1f]  }
  0xbc   :  { %5783 = vst [vmem:[#allocation33_spill] sm:$0xff] %v4042_v26  ;;  %v1778_v19 = vrot.slane %v1777_v13, 4  ;;  %v1797_v17 = vunpack.i.l.bf16 %v1796_v22  ;;  %v1759_v24 = vmax.f32 %v1757_v41, %v1758_v10  ;;  %v1798_v34 = vunpack.i.h.bf16 %v1796_v22 }
  0xbd   :  { %v1749_v9 = vrot.slane %v1748_v3, 1  ;;  %v1769_v58 = vrot.slane %v1768_v4, 2  ;;  %v4049_v37 = vpack.i.bf16 %v1739_v0, %v1739_v0  ;;  %v1789_v45 = vrot.slane %v1788_v55, 4 }
  0xbe   :  { %v1779_v56 = vmax.f32 %v1777_v13, %v1778_v19  ;;  %v1807_v54 = vsel %vm3581_vm2, %v3470_v1, 4286644096  ;;  %v1760_v27 = vrot.slane %v1759_v24, 1  ;;  %v1799_v62 = vmax.f32 %v1797_v17, %v1798_v34  ;;  %v3473_v13 = vld [vmem:[%s5661_s0 + $0x248] sm:$0x1f]  }
  0xbf   :  { %5784 = vst [vmem:[#allocation34_spill] sm:$0xff] %v4049_v37  ;;  %v1750_v39 = vmax.f32 %v1748_v3, %v1749_v9  ;;  %v1770_v43 = vmax.f32 %v1768_v4, %v1769_v58  ;;  %v1790_v8 = vmax.f32 %v1788_v55, %v1789_v45  ;;  %v1808_v41 = vunpack.i.l.bf16 %v1807_v54  ;;  %v3474_v45 = vld [vmem:[%s5661_s0 + $0x250] sm:$0x1f]  }
  0xc0   :  { %v1780_v50 = vrot.slane %v1779_v56, 2  ;;  %v1809_v52 = vunpack.i.h.bf16 %v1807_v54  ;;  %v1761_v22 = vmax.f32 %v1759_v24, %v1760_v27  ;;  %v1800_v3 = vrot.slane %v1799_v62, 4 }
  0xc1   :  { %v4059_v10 = vpack.i.bf16 %v1750_v39, %v1750_v39  ;;  %v1771_v1 = vrot.slane %v1770_v43, 1  ;;  %v1791_v4 = vrot.slane %v1790_v8, 2  ;;  %v1818_v19 = vsel %vm3581_vm2, %v3471_v30, 4286644096 }
  0xc2   :  { %v1781_v0 = vmax.f32 %v1779_v56, %v1780_v50  ;;  %v1810_v34 = vmax.f32 %v1808_v41, %v1809_v52  ;;  %v4063_v55 = vpack.i.bf16 %v1761_v22, %v1761_v22  ;;  %v1801_v9 = vmax.f32 %v1799_v62, %v1800_v3 }
  0xc3   :  { %5785 = vst [vmem:[#allocation35_spill] sm:$0xff] %v4059_v10  ;;  %v1772_v17 = vmax.f32 %v1770_v43, %v1771_v1  ;;  %v1819_v58 = vunpack.i.l.bf16 %v1818_v19  ;;  %v1792_v39 = vmax.f32 %v1790_v8, %v1791_v4  ;;  %v1820_v27 = vunpack.i.h.bf16 %v1818_v19  ;;  %v3475_v8 = vld [vmem:[%s5661_s0 + $0x258] sm:$0x1f]   ;;  %v3476_v4 = vld [vmem:[%s5661_s0 + $0x260] sm:$0x1f]  }
  0xc4   :  { %5786 = vst [vmem:[#allocation36_spill] sm:$0xff] %v4063_v55  ;;  %v1782_v54 = vrot.slane %v1781_v0, 1  ;;  %v1811_v24 = vrot.slane %v1810_v34, 4  ;;  %v1802_v56 = vrot.slane %v1801_v9, 2  ;;  %v1829_v50 = vsel %vm3581_vm2, %v3472_v42, 4286644096 }
  0xc5   :  { %v4068_v10 = vpack.i.bf16 %v1772_v17, %v1772_v17  ;;  %v1840_v30 = vsel %vm3581_vm2, %v3473_v13, 4286644096  ;;  %v1793_v62 = vrot.slane %v1792_v39, 1  ;;  %v1821_v52 = vmax.f32 %v1819_v58, %v1820_v27 }
  0xc6   :  { %v1783_v43 = vmax.f32 %v1781_v0, %v1782_v54  ;;  %v1812_v41 = vmax.f32 %v1810_v34, %v1811_v24  ;;  %v1803_v22 = vmax.f32 %v1801_v9, %v1802_v56  ;;  %v1830_v1 = vunpack.i.l.bf16 %v1829_v50 }
  0xc7   :  { %5787 = vst [vmem:[#allocation37_spill] sm:$0xff] %v4068_v10  ;;  %v1831_v3 = vunpack.i.h.bf16 %v1829_v50  ;;  %v1841_v55 = vunpack.i.l.bf16 %v1840_v30  ;;  %v1794_v19 = vmax.f32 %v1792_v39, %v1793_v62  ;;  %v1822_v0 = vrot.slane %v1821_v52, 4 }
  0xc8   :  { %v4080_v42 = vpack.i.bf16 %v1783_v43, %v1783_v43  ;;  %v1813_v13 = vrot.slane %v1812_v41, 2  ;;  %v1804_v17 = vrot.slane %v1803_v22, 1  ;;  %v1842_v58 = vunpack.i.h.bf16 %v1840_v30 }
  0xc9   :  { %v1832_v34 = vmax.f32 %v1830_v1, %v1831_v3  ;;  %v1851_v9 = vsel %vm3581_vm2, %v3474_v45, 4286644096  ;;  %v4084_v54 = vpack.i.bf16 %v1794_v19, %v1794_v19  ;;  %v1823_v27 = vmax.f32 %v1821_v52, %v1822_v0  ;;  %v3477_v45 = vld [vmem:[%s5661_s0 + $0x268] sm:$0x1f]  }
  0xca   :  { %5788 = vst [vmem:[#allocation38_spill] sm:$0xff] %v4080_v42  ;;  %v1814_v24 = vmax.f32 %v1812_v41, %v1813_v13  ;;  %v1852_v56 = vunpack.i.l.bf16 %v1851_v9  ;;  %v1805_v50 = vmax.f32 %v1803_v22, %v1804_v17  ;;  %v1843_v37 = vmax.f32 %v1841_v55, %v1842_v58 }
  0xcb   :  { %5789 = vst [vmem:[#allocation39_spill] sm:$0xff] %v4084_v54  ;;  %v1833_v10 = vrot.slane %v1832_v34, 4  ;;  %v1853_v26 = vunpack.i.h.bf16 %v1851_v9  ;;  %v1824_v42 = vrot.slane %v1823_v27, 2  ;;  %v1862_v39 = vsel %vm3581_vm2, %v3475_v8, 4286644096 }
  0xcc   :  { %v1815_v43 = vrot.slane %v1814_v24, 1  ;;  %v1873_v30 = vsel %vm3581_vm2, %v3476_v4, 4286644096  ;;  %v4093_v62 = vpack.i.bf16 %v1805_v50, %v1805_v50  ;;  %v1844_v52 = vrot.slane %v1843_v37, 4  ;;  %v3478_v4 = vld [vmem:[%s5661_s0 + $0x270] sm:$0x1f]  }
  0xcd   :  { %v1834_v41 = vmax.f32 %v1832_v34, %v1833_v10  ;;  %v1854_v22 = vmax.f32 %v1852_v56, %v1853_v26  ;;  %v1825_v55 = vmax.f32 %v1823_v27, %v1824_v42  ;;  %v1863_v3 = vunpack.i.l.bf16 %v1862_v39 }
  0xce   :  { %5790 = vst [vmem:[#allocation40_spill] sm:$0xff] %v4093_v62  ;;  %v1816_v1 = vmax.f32 %v1814_v24, %v1815_v43  ;;  %v1864_v19 = vunpack.i.h.bf16 %v1862_v39  ;;  %v1845_v0 = vmax.f32 %v1843_v37, %v1844_v52  ;;  %v1874_v8 = vunpack.i.l.bf16 %v1873_v30 }
  0xcf   :  { %v1835_v13 = vrot.slane %v1834_v41, 2  ;;  %v1855_v17 = vrot.slane %v1854_v22, 4  ;;  %v1826_v9 = vrot.slane %v1825_v55, 1  ;;  %v1875_v62 = vunpack.i.h.bf16 %v1873_v30 }
  0xd0   :  { %v4098_v58 = vpack.i.bf16 %v1816_v1, %v1816_v1  ;;  %v1865_v50 = vmax.f32 %v1863_v3, %v1864_v19  ;;  %v1846_v34 = vrot.slane %v1845_v0, 2  ;;  %v1884_v42 = vsel %vm3581_vm2, %v3477_v45, 4286644096  ;;  %v3479_v1 = vld [vmem:[%s5661_s0 + $0x278] sm:$0x1f]  }
  0xd1   :  { %v1836_v10 = vmax.f32 %v1834_v41, %v1835_v13  ;;  %v1856_v26 = vmax.f32 %v1854_v22, %v1855_v17  ;;  %v1827_v24 = vmax.f32 %v1825_v55, %v1826_v9  ;;  %v1876_v37 = vmax.f32 %v1874_v8, %v1875_v62  ;;  %v3480_v9 = vld [vmem:[%s5661_s0 + $0x280] sm:$0x1f]  }
  0xd2   :  { %5791 = vst [vmem:[#allocation41_spill] sm:$0xff] %v4098_v58  ;;  %v1866_v27 = vrot.slane %v1865_v50, 4  ;;  %v1885_v56 = vunpack.i.l.bf16 %v1884_v42  ;;  %v1847_v39 = vmax.f32 %v1845_v0, %v1846_v34  ;;  %v1886_v54 = vunpack.i.h.bf16 %v1884_v42 }
  0xd3   :  { %v1837_v43 = vrot.slane %v1836_v10, 1  ;;  %v1857_v52 = vrot.slane %v1856_v26, 2  ;;  %v4105_v3 = vpack.i.bf16 %v1827_v24, %v1827_v24  ;;  %v1877_v41 = vrot.slane %v1876_v37, 4 }
  0xd4   :  { %v1867_v30 = vmax.f32 %v1865_v50, %v1866_v27  ;;  %v1895_v22 = vsel %vm3581_vm2, %v3478_v4, 4286644096  ;;  %v1848_v55 = vrot.slane %v1847_v39, 1  ;;  %v1887_v62 = vmax.f32 %v1885_v56, %v1886_v54  ;;  %v3481_v50 = vld [vmem:[%s5661_s0 + $0x288] sm:$0x1f]  }
  0xd5   :  { %5792 = vst [vmem:[#allocation42_spill] sm:$0xff] %v4105_v3  ;;  %v1838_v45 = vmax.f32 %v1836_v10, %v1837_v43  ;;  %v1858_v19 = vmax.f32 %v1856_v26, %v1857_v52  ;;  %v1878_v17 = vmax.f32 %v1876_v37, %v1877_v41  ;;  %v1896_v0 = vunpack.i.l.bf16 %v1895_v22  ;;  %v3482_v41 = vld [vmem:[%s5661_s0 + $0x290] sm:$0x1f]  }
  0xd6   :  { %v1868_v13 = vrot.slane %v1867_v30, 2  ;;  %v1897_v8 = vunpack.i.h.bf16 %v1895_v22  ;;  %v1849_v42 = vmax.f32 %v1847_v39, %v1848_v55  ;;  %v1888_v10 = vrot.slane %v1887_v62, 4 }
  0xd7   :  { %v4115_v34 = vpack.i.bf16 %v1838_v45, %v1838_v45  ;;  %v1859_v4 = vrot.slane %v1858_v19, 1  ;;  %v1879_v26 = vrot.slane %v1878_v17, 2  ;;  %v1906_v27 = vsel %vm3581_vm2, %v3479_v1, 4286644096 }
  0xd8   :  { %v1869_v24 = vmax.f32 %v1867_v30, %v1868_v13  ;;  %v1898_v54 = vmax.f32 %v1896_v0, %v1897_v8  ;;  %v4119_v37 = vpack.i.bf16 %v1849_v42, %v1849_v42  ;;  %v1889_v43 = vmax.f32 %v1887_v62, %v1888_v10 }
  0xd9   :  { %5793 = vst [vmem:[#allocation43_spill] sm:$0xff] %v4115_v34  ;;  %v1860_v56 = vmax.f32 %v1858_v19, %v1859_v4  ;;  %v1907_v52 = vunpack.i.l.bf16 %v1906_v27  ;;  %v1880_v45 = vmax.f32 %v1878_v17, %v1879_v26  ;;  %v1908_v55 = vunpack.i.h.bf16 %v1906_v27  ;;  %v3483_v17 = vld [vmem:[%s5661_s0 + $0x298] sm:$0x1f]   ;;  %v3484_v26 = vld [vmem:[%s5661_s0 + $0x2a0] sm:$0x1f]  }
  0xda   :  { %5794 = vst [vmem:[#allocation44_spill] sm:$0xff] %v4119_v37  ;;  %v1870_v22 = vrot.slane %v1869_v24, 1  ;;  %v1899_v39 = vrot.slane %v1898_v54, 4  ;;  %v1890_v30 = vrot.slane %v1889_v43, 2  ;;  %v1917_v13 = vsel %vm3581_vm2, %v3480_v9, 4286644096 }
  0xdb   :  { %v4124_v34 = vpack.i.bf16 %v1860_v56, %v1860_v56  ;;  %v1928_v1 = vsel %vm3581_vm2, %v3481_v50, 4286644096  ;;  %v1881_v62 = vrot.slane %v1880_v45, 1  ;;  %v1909_v8 = vmax.f32 %v1907_v52, %v1908_v55 }
  0xdc   :  { %v1871_v19 = vmax.f32 %v1869_v24, %v1870_v22  ;;  %v1900_v0 = vmax.f32 %v1898_v54, %v1899_v39  ;;  %v1891_v42 = vmax.f32 %v1889_v43, %v1890_v30  ;;  %v1918_v4 = vunpack.i.l.bf16 %v1917_v13 }
  0xdd   :  { %5795 = vst [vmem:[#allocation45_spill] sm:$0xff] %v4124_v34  ;;  %v1919_v10 = vunpack.i.h.bf16 %v1917_v13  ;;  %v1929_v37 = vunpack.i.l.bf16 %v1928_v1  ;;  %v1882_v27 = vmax.f32 %v1880_v45, %v1881_v62  ;;  %v1910_v24 = vrot.slane %v1909_v8, 4 }
  0xde   :  { %v4136_v9 = vpack.i.bf16 %v1871_v19, %v1871_v19  ;;  %v1901_v50 = vrot.slane %v1900_v0, 2  ;;  %v1892_v56 = vrot.slane %v1891_v42, 1  ;;  %v1930_v52 = vunpack.i.h.bf16 %v1928_v1 }
  0xdf   :  { %v1920_v54 = vmax.f32 %v1918_v4, %v1919_v10  ;;  %v1939_v43 = vsel %vm3581_vm2, %v3482_v41, 4286644096  ;;  %v4140_v22 = vpack.i.bf16 %v1882_v27, %v1882_v27  ;;  %v1911_v55 = vmax.f32 %v1909_v8, %v1910_v24  ;;  %v3485_v41 = vld [vmem:[%s5661_s0 + $0x2a8] sm:$0x1f]  }
  0xe0   :  { %5796 = vst [vmem:[#allocation46_spill] sm:$0xff] %v4136_v9  ;;  %v1902_v39 = vmax.f32 %v1900_v0, %v1901_v50  ;;  %v1940_v30 = vunpack.i.l.bf16 %v1939_v43  ;;  %v1893_v13 = vmax.f32 %v1891_v42, %v1892_v56  ;;  %v1931_v3 = vmax.f32 %v1929_v37, %v1930_v52 }
  0xe1   :  { %5797 = vst [vmem:[#allocation47_spill] sm:$0xff] %v4140_v22  ;;  %v1921_v34 = vrot.slane %v1920_v54, 4  ;;  %v1941_v58 = vunpack.i.h.bf16 %v1939_v43  ;;  %v1912_v9 = vrot.slane %v1911_v55, 2  ;;  %v1950_v45 = vsel %vm3581_vm2, %v3483_v17, 4286644096 }
  0xe2   :  { %v1903_v19 = vrot.slane %v1902_v39, 1  ;;  %v1961_v1 = vsel %vm3581_vm2, %v3484_v26, 4286644096  ;;  %v4149_v62 = vpack.i.bf16 %v1893_v13, %v1893_v13  ;;  %v1932_v8 = vrot.slane %v1931_v3, 4  ;;  %v3486_v26 = vld [vmem:[%s5661_s0 + $0x2b0] sm:$0x1f]  }
  0xe3   :  { %v1922_v0 = vmax.f32 %v1920_v54, %v1921_v34  ;;  %v1942_v42 = vmax.f32 %v1940_v30, %v1941_v58  ;;  %v1913_v37 = vmax.f32 %v1911_v55, %v1912_v9  ;;  %v1951_v10 = vunpack.i.l.bf16 %v1950_v45 }
  0xe4   :  { %5798 = vst [vmem:[#allocation48_spill] sm:$0xff] %v4149_v62  ;;  %v1904_v4 = vmax.f32 %v1902_v39, %v1903_v19  ;;  %v1952_v27 = vunpack.i.h.bf16 %v1950_v45  ;;  %v1933_v24 = vmax.f32 %v1931_v3, %v1932_v8  ;;  %v1962_v17 = vunpack.i.l.bf16 %v1961_v1 }
  0xe5   :  { %v1923_v50 = vrot.slane %v1922_v0, 2  ;;  %v1943_v56 = vrot.slane %v1942_v42, 4  ;;  %v1914_v43 = vrot.slane %v1913_v37, 1  ;;  %v1963_v62 = vunpack.i.h.bf16 %v1961_v1 }
  0xe6   :  { %v4154_v52 = vpack.i.bf16 %v1904_v4, %v1904_v4  ;;  %v1953_v13 = vmax.f32 %v1951_v10, %v1952_v27  ;;  %v1934_v54 = vrot.slane %v1933_v24, 2  ;;  %v1972_v9 = vsel %vm3581_vm2, %v3485_v41, 4286644096  ;;  %v3487_v4 = vld [vmem:[%s5661_s0 + $0x2b8] sm:$0x1f]  }
  0xe7   :  { %v1924_v34 = vmax.f32 %v1922_v0, %v1923_v50  ;;  %v1944_v58 = vmax.f32 %v1942_v42, %v1943_v56  ;;  %v1915_v39 = vmax.f32 %v1913_v37, %v1914_v43  ;;  %v1964_v3 = vmax.f32 %v1962_v17, %v1963_v62  ;;  %v3488_v43 = vld [vmem:[%s5661_s0 + $0x2c0] sm:$0x1f]  }
  0xe8   :  { %5799 = vst [vmem:[#allocation49_spill] sm:$0xff] %v4154_v52  ;;  %v1954_v55 = vrot.slane %v1953_v13, 4  ;;  %v1973_v30 = vunpack.i.l.bf16 %v1972_v9  ;;  %v1935_v45 = vmax.f32 %v1933_v24, %v1934_v54  ;;  %v1974_v22 = vunpack.i.h.bf16 %v1972_v9 }
  0xe9   :  { %v1925_v19 = vrot.slane %v1924_v34, 1  ;;  %v1945_v8 = vrot.slane %v1944_v58, 2  ;;  %v4161_v10 = vpack.i.bf16 %v1915_v39, %v1915_v39  ;;  %v1965_v0 = vrot.slane %v1964_v3, 4 }
  0xea   :  { %v1955_v1 = vmax.f32 %v1953_v13, %v1954_v55  ;;  %v1983_v42 = vsel %vm3581_vm2, %v3486_v26, 4286644096  ;;  %v1936_v37 = vrot.slane %v1935_v45, 1  ;;  %v1975_v62 = vmax.f32 %v1973_v30, %v1974_v22  ;;  %v3489_v13 = vld [vmem:[%s5661_s0 + $0x2c8] sm:$0x1f]  }
  0xeb   :  { %5800 = vst [vmem:[#allocation50_spill] sm:$0xff] %v4161_v10  ;;  %v1926_v41 = vmax.f32 %v1924_v34, %v1925_v19  ;;  %v1946_v27 = vmax.f32 %v1944_v58, %v1945_v8  ;;  %v1966_v56 = vmax.f32 %v1964_v3, %v1965_v0  ;;  %v1984_v24 = vunpack.i.l.bf16 %v1983_v42  ;;  %v3490_v0 = vld [vmem:[%s5661_s0 + $0x2d0] sm:$0x1f]  }
  0xec   :  { %v1956_v50 = vrot.slane %v1955_v1, 2  ;;  %v1985_v17 = vunpack.i.h.bf16 %v1983_v42  ;;  %v1937_v9 = vmax.f32 %v1935_v45, %v1936_v37  ;;  %v1976_v34 = vrot.slane %v1975_v62, 4 }
  0xed   :  { %v4171_v54 = vpack.i.bf16 %v1926_v41, %v1926_v41  ;;  %v1947_v26 = vrot.slane %v1946_v27, 1  ;;  %v1967_v58 = vrot.slane %v1966_v56, 2  ;;  %v1994_v55 = vsel %vm3581_vm2, %v3487_v4, 4286644096 }
  0xee   :  { %v1957_v39 = vmax.f32 %v1955_v1, %v1956_v50  ;;  %v1986_v22 = vmax.f32 %v1984_v24, %v1985_v17  ;;  %v4175_v3 = vpack.i.bf16 %v1937_v9, %v1937_v9  ;;  %v1977_v19 = vmax.f32 %v1975_v62, %v1976_v34 }
  0xef   :  { %5801 = vst [vmem:[#allocation51_spill] sm:$0xff] %v4171_v54  ;;  %v1948_v30 = vmax.f32 %v1946_v27, %v1947_v26  ;;  %v1995_v8 = vunpack.i.l.bf16 %v1994_v55  ;;  %v1968_v41 = vmax.f32 %v1966_v56, %v1967_v58  ;;  %v1996_v37 = vunpack.i.h.bf16 %v1994_v55  ;;  %v3491_v56 = vld [vmem:[%s5661_s0 + $0x2d8] sm:$0x1f]   ;;  %v3492_v58 = vld [vmem:[%s5661_s0 + $0x2e0] sm:$0x1f]  }
  0xf0   :  { %5802 = vst [vmem:[#allocation52_spill] sm:$0xff] %v4175_v3  ;;  %v1958_v42 = vrot.slane %v1957_v39, 1  ;;  %v1987_v45 = vrot.slane %v1986_v22, 4  ;;  %v1978_v1 = vrot.slane %v1977_v19, 2  ;;  %v2005_v50 = vsel %vm3581_vm2, %v3488_v43, 4286644096 }
  0xf1   :  { %v4180_v54 = vpack.i.bf16 %v1948_v30, %v1948_v30  ;;  %v2016_v4 = vsel %vm3581_vm2, %v3489_v13, 4286644096  ;;  %v1969_v62 = vrot.slane %v1968_v41, 1  ;;  %v1997_v17 = vmax.f32 %v1995_v8, %v1996_v37 }
  0xf2   :  { %v1959_v27 = vmax.f32 %v1957_v39, %v1958_v42  ;;  %v1988_v24 = vmax.f32 %v1986_v22, %v1987_v45  ;;  %v1979_v9 = vmax.f32 %v1977_v19, %v1978_v1  ;;  %v2006_v26 = vunpack.i.l.bf16 %v2005_v50 }
  0xf3   :  { %5803 = vst [vmem:[#allocation53_spill] sm:$0xff] %v4180_v54  ;;  %v2007_v34 = vunpack.i.h.bf16 %v2005_v50  ;;  %v2017_v3 = vunpack.i.l.bf16 %v2016_v4  ;;  %v1970_v55 = vmax.f32 %v1968_v41, %v1969_v62  ;;  %v1998_v39 = vrot.slane %v1997_v17, 4 }
  0xf4   :  { %v4192_v43 = vpack.i.bf16 %v1959_v27, %v1959_v27  ;;  %v1989_v13 = vrot.slane %v1988_v24, 2  ;;  %v1980_v30 = vrot.slane %v1979_v9, 1  ;;  %v2018_v8 = vunpack.i.h.bf16 %v2016_v4 }
  0xf5   :  { %v2008_v22 = vmax.f32 %v2006_v26, %v2007_v34  ;;  %v2027_v19 = vsel %vm3581_vm2, %v3490_v0, 4286644096  ;;  %v4196_v42 = vpack.i.bf16 %v1970_v55, %v1970_v55  ;;  %v1999_v37 = vmax.f32 %v1997_v17, %v1998_v39  ;;  %v3493_v0 = vld [vmem:[%s5661_s0 + $0x2e8] sm:$0x1f]  }
  0xf6   :  { %5804 = vst [vmem:[#allocation54_spill] sm:$0xff] %v4192_v43  ;;  %v1990_v45 = vmax.f32 %v1988_v24, %v1989_v13  ;;  %v2028_v1 = vunpack.i.l.bf16 %v2027_v19  ;;  %v1981_v50 = vmax.f32 %v1979_v9, %v1980_v30  ;;  %v2019_v10 = vmax.f32 %v2017_v3, %v2018_v8 }
  0xf7   :  { %5805 = vst [vmem:[#allocation55_spill] sm:$0xff] %v4196_v42  ;;  %v2009_v54 = vrot.slane %v2008_v22, 4  ;;  %v2029_v52 = vunpack.i.h.bf16 %v2027_v19  ;;  %v2000_v43 = vrot.slane %v1999_v37, 2  ;;  %v2038_v41 = vsel %vm3581_vm2, %v3491_v56, 4286644096 }
  0xf8   :  { %v1991_v27 = vrot.slane %v1990_v45, 1  ;;  %v2049_v4 = vsel %vm3581_vm2, %v3492_v58, 4286644096  ;;  %v4205_v62 = vpack.i.bf16 %v1981_v50, %v1981_v50  ;;  %v2020_v17 = vrot.slane %v2019_v10, 4  ;;  %v3494_v58 = vld [vmem:[%s5661_s0 + $0x2f0] sm:$0x1f]  }
  0xf9   :  { %v2010_v24 = vmax.f32 %v2008_v22, %v2009_v54  ;;  %v2030_v9 = vmax.f32 %v2028_v1, %v2029_v52  ;;  %v2001_v3 = vmax.f32 %v1999_v37, %v2000_v43  ;;  %v2039_v34 = vunpack.i.l.bf16 %v2038_v41 }
  0xfa   :  { %5806 = vst [vmem:[#allocation56_spill] sm:$0xff] %v4205_v62  ;;  %v1992_v26 = vmax.f32 %v1990_v45, %v1991_v27  ;;  %v2040_v55 = vunpack.i.h.bf16 %v2038_v41  ;;  %v2021_v39 = vmax.f32 %v2019_v10, %v2020_v17  ;;  %v2050_v56 = vunpack.i.l.bf16 %v2049_v4 }
  0xfb   :  { %v2011_v13 = vrot.slane %v2010_v24, 2  ;;  %v2031_v30 = vrot.slane %v2030_v9, 4  ;;  %v2002_v19 = vrot.slane %v2001_v3, 1  ;;  %v2051_v62 = vunpack.i.h.bf16 %v2049_v4 }
  0xfc   :  { %v4210_v8 = vpack.i.bf16 %v1992_v26, %v1992_v26  ;;  %v2041_v50 = vmax.f32 %v2039_v34, %v2040_v55  ;;  %v2022_v22 = vrot.slane %v2021_v39, 2  ;;  %v2060_v43 = vsel %vm3581_vm2, %v3493_v0, 4286644096  ;;  %v3495_v26 = vld [vmem:[%s5661_s0 + $0x2f8] sm:$0x1f]  }
  0xfd   :  { %v2012_v54 = vmax.f32 %v2010_v24, %v2011_v13  ;;  %v2032_v52 = vmax.f32 %v2030_v9, %v2031_v30  ;;  %v2003_v45 = vmax.f32 %v2001_v3, %v2002_v19  ;;  %v2052_v10 = vmax.f32 %v2050_v56, %v2051_v62  ;;  %v3496_v19 = vld [vmem:[%s5661_s0 + $0x300] sm:$0x1f]  }
  0xfe   :  { %5807 = vst [vmem:[#allocation57_spill] sm:$0xff] %v4210_v8  ;;  %v2042_v37 = vrot.slane %v2041_v50, 4  ;;  %v2061_v1 = vunpack.i.l.bf16 %v2060_v43  ;;  %v2023_v41 = vmax.f32 %v2021_v39, %v2022_v22  ;;  %v2062_v42 = vunpack.i.h.bf16 %v2060_v43 }
  0xff   :  { %v2013_v27 = vrot.slane %v2012_v54, 1  ;;  %v2033_v17 = vrot.slane %v2032_v52, 2  ;;  %v4217_v34 = vpack.i.bf16 %v2003_v45, %v2003_v45  ;;  %v2053_v24 = vrot.slane %v2052_v10, 4 }
 0x100   :  { %v2043_v4 = vmax.f32 %v2041_v50, %v2042_v37  ;;  %v2071_v9 = vsel %vm3581_vm2, %v3494_v58, 4286644096  ;;  %v2024_v3 = vrot.slane %v2023_v41, 1  ;;  %v2063_v62 = vmax.f32 %v2061_v1, %v2062_v42  ;;  %v3497_v50 = vld [vmem:[%s5661_s0 + $0x308] sm:$0x1f]  }
 0x101   :  { %5808 = vst [vmem:[#allocation58_spill] sm:$0xff] %v4217_v34  ;;  %v2014_v0 = vmax.f32 %v2012_v54, %v2013_v27  ;;  %v2034_v55 = vmax.f32 %v2032_v52, %v2033_v17  ;;  %v2054_v30 = vmax.f32 %v2052_v10, %v2053_v24  ;;  %v2072_v39 = vunpack.i.l.bf16 %v2071_v9  ;;  %v3498_v24 = vld [vmem:[%s5661_s0 + $0x310] sm:$0x1f]  }
 0x102   :  { %v2044_v13 = vrot.slane %v2043_v4, 2  ;;  %v2073_v56 = vunpack.i.h.bf16 %v2071_v9  ;;  %v2025_v43 = vmax.f32 %v2023_v41, %v2024_v3  ;;  %v2064_v54 = vrot.slane %v2063_v62, 4 }
 0x103   :  { %v4227_v22 = vpack.i.bf16 %v2014_v0, %v2014_v0  ;;  %v2035_v58 = vrot.slane %v2034_v55, 1  ;;  %v2055_v52 = vrot.slane %v2054_v30, 2  ;;  %v2082_v37 = vsel %vm3581_vm2, %v3495_v26, 4286644096 }
 0x104   :  { %v2045_v45 = vmax.f32 %v2043_v4, %v2044_v13  ;;  %v2074_v42 = vmax.f32 %v2072_v39, %v2073_v56  ;;  %v4231_v10 = vpack.i.bf16 %v2025_v43, %v2025_v43  ;;  %v2065_v27 = vmax.f32 %v2063_v62, %v2064_v54 }
 0x105   :  { %5809 = vst [vmem:[#allocation59_spill] sm:$0xff] %v4227_v22  ;;  %v2036_v1 = vmax.f32 %v2034_v55, %v2035_v58  ;;  %v2083_v17 = vunpack.i.l.bf16 %v2082_v37  ;;  %v2056_v0 = vmax.f32 %v2054_v30, %v2055_v52  ;;  %v2084_v3 = vunpack.i.h.bf16 %v2082_v37  ;;  %v3499_v30 = vld [vmem:[%s5661_s0 + $0x318] sm:$0x1f]   ;;  %v3500_v52 = vld [vmem:[%s5661_s0 + $0x320] sm:$0x1f]  }
 0x106   :  { %5810 = vst [vmem:[#allocation60_spill] sm:$0xff] %v4231_v10  ;;  %v2046_v9 = vrot.slane %v2045_v45, 1  ;;  %v2075_v41 = vrot.slane %v2074_v42, 4  ;;  %v2066_v4 = vrot.slane %v2065_v27, 2  ;;  %v2093_v13 = vsel %vm3581_vm2, %v3496_v19, 4286644096 }
 0x107   :  { %v4236_v22 = vpack.i.bf16 %v2036_v1, %v2036_v1  ;;  %v2104_v26 = vsel %vm3581_vm2, %v3497_v50, 4286644096  ;;  %v2057_v62 = vrot.slane %v2056_v0, 1  ;;  %v2085_v56 = vmax.f32 %v2083_v17, %v2084_v3 }
 0x108   :  { %v2047_v55 = vmax.f32 %v2045_v45, %v2046_v9  ;;  %v2076_v39 = vmax.f32 %v2074_v42, %v2075_v41  ;;  %v2067_v43 = vmax.f32 %v2065_v27, %v2066_v4  ;;  %v2094_v58 = vunpack.i.l.bf16 %v2093_v13 }
 0x109   :  { %5811 = vst [vmem:[#allocation61_spill] sm:$0xff] %v4236_v22  ;;  %v2095_v54 = vunpack.i.h.bf16 %v2093_v13  ;;  %v2105_v10 = vunpack.i.l.bf16 %v2104_v26  ;;  %v2058_v37 = vmax.f32 %v2056_v0, %v2057_v62  ;;  %v2086_v45 = vrot.slane %v2085_v56, 4 }
 0x10a   :  { %v4248_v19 = vpack.i.bf16 %v2047_v55, %v2047_v55  ;;  %v2077_v50 = vrot.slane %v2076_v39, 2  ;;  %v2068_v1 = vrot.slane %v2067_v43, 1  ;;  %v2106_v17 = vunpack.i.h.bf16 %v2104_v26 }
 0x10b   :  { %v2096_v42 = vmax.f32 %v2094_v58, %v2095_v54  ;;  %v2115_v27 = vsel %vm3581_vm2, %v3498_v24, 4286644096  ;;  %v4252_v9 = vpack.i.bf16 %v2058_v37, %v2058_v37  ;;  %v2087_v3 = vmax.f32 %v2085_v56, %v2086_v45  ;;  %v3501_v24 = vld [vmem:[%s5661_s0 + $0x328] sm:$0x1f]  }
 0x10c   :  { %5812 = vst [vmem:[#allocation62_spill] sm:$0xff] %v4248_v19  ;;  %v2078_v41 = vmax.f32 %v2076_v39, %v2077_v50  ;;  %v2116_v4 = vunpack.i.l.bf16 %v2115_v27  ;;  %v2069_v13 = vmax.f32 %v2067_v43, %v2068_v1  ;;  %v2107_v34 = vmax.f32 %v2105_v10, %v2106_v17 }
 0x10d   :  { %5813 = vst [vmem:[#allocation63_spill] sm:$0xff] %v4252_v9  ;;  %v2097_v22 = vrot.slane %v2096_v42, 4  ;;  %v2117_v8 = vunpack.i.h.bf16 %v2115_v27  ;;  %v2088_v19 = vrot.slane %v2087_v3, 2  ;;  %v2126_v0 = vsel %vm3581_vm2, %v3499_v30, 4286644096 }
 0x10e   :  { %v2079_v55 = vrot.slane %v2078_v41, 1  ;;  %v2137_v26 = vsel %vm3581_vm2, %v3500_v52, 4286644096  ;;  %v4261_v62 = vpack.i.bf16 %v2069_v13, %v2069_v13  ;;  %v2108_v56 = vrot.slane %v2107_v34, 4  ;;  %v3502_v52 = vld [vmem:[%s5661_s0 + $0x330] sm:$0x1f]  }
 0x10f   :  { %v2098_v39 = vmax.f32 %v2096_v42, %v2097_v22  ;;  %v2118_v43 = vmax.f32 %v2116_v4, %v2117_v8  ;;  %v2089_v10 = vmax.f32 %v2087_v3, %v2088_v19  ;;  %v2127_v54 = vunpack.i.l.bf16 %v2126_v0 }
 0x110   :  { %5814 = vst [vmem:[#allocation64_spill] sm:$0xff] %v4261_v62  ;;  %v2080_v58 = vmax.f32 %v2078_v41, %v2079_v55  ;;  %v2128_v37 = vunpack.i.h.bf16 %v2126_v0  ;;  %v2109_v45 = vmax.f32 %v2107_v34, %v2108_v56  ;;  %v2138_v30 = vunpack.i.l.bf16 %v2137_v26 }
 0x111   :  { %v2099_v50 = vrot.slane %v2098_v39, 2  ;;  %v2119_v1 = vrot.slane %v2118_v43, 4  ;;  %v2090_v27 = vrot.slane %v2089_v10, 1  ;;  %v2139_v62 = vunpack.i.h.bf16 %v2137_v26 }
 0x112   :  { %v4266_v17 = vpack.i.bf16 %v2080_v58, %v2080_v58  ;;  %v2129_v13 = vmax.f32 %v2127_v54, %v2128_v37  ;;  %v2110_v42 = vrot.slane %v2109_v45, 2  ;;  %v2148_v19 = vsel %vm3581_vm2, %v3501_v24, 4286644096  ;;  %v3503_v58 = vld [vmem:[%s5661_s0 + $0x338] sm:$0x1f]  }
 0x113   :  { %v2100_v22 = vmax.f32 %v2098_v39, %v2099_v50  ;;  %v2120_v8 = vmax.f32 %v2118_v43, %v2119_v1  ;;  %v2091_v41 = vmax.f32 %v2089_v10, %v2090_v27  ;;  %v2140_v34 = vmax.f32 %v2138_v30, %v2139_v62  ;;  %v3504_v27 = vld [vmem:[%s5661_s0 + $0x340] sm:$0x1f]  }
 0x114   :  { %5815 = vst [vmem:[#allocation65_spill] sm:$0xff] %v4266_v17  ;;  %v2130_v3 = vrot.slane %v2129_v13, 4  ;;  %v2149_v4 = vunpack.i.l.bf16 %v2148_v19  ;;  %v2111_v0 = vmax.f32 %v2109_v45, %v2110_v42  ;;  %v2150_v9 = vunpack.i.h.bf16 %v2148_v19 }
 0x115   :  { %v2101_v55 = vrot.slane %v2100_v22, 1  ;;  %v2121_v56 = vrot.slane %v2120_v8, 2  ;;  %v4273_v54 = vpack.i.bf16 %v2091_v41, %v2091_v41  ;;  %v2141_v39 = vrot.slane %v2140_v34, 4 }
 0x116   :  { %v2131_v26 = vmax.f32 %v2129_v13, %v2130_v3  ;;  %v2159_v43 = vsel %vm3581_vm2, %v3502_v52, 4286644096  ;;  %v2112_v10 = vrot.slane %v2111_v0, 1  ;;  %v2151_v62 = vmax.f32 %v2149_v4, %v2150_v9  ;;  %v3505_v13 = vld [vmem:[%s5661_s0 + $0x348] sm:$0x1f]  }
 0x117   :  { %5816 = vst [vmem:[#allocation66_spill] sm:$0xff] %v4273_v54  ;;  %v2102_v24 = vmax.f32 %v2100_v22, %v2101_v55  ;;  %v2122_v37 = vmax.f32 %v2120_v8, %v2121_v56  ;;  %v2142_v1 = vmax.f32 %v2140_v34, %v2141_v39  ;;  %v2160_v45 = vunpack.i.l.bf16 %v2159_v43  ;;  %v3506_v39 = vld [vmem:[%s5661_s0 + $0x350] sm:$0x1f]  }
 0x118   :  { %v2132_v50 = vrot.slane %v2131_v26, 2  ;;  %v2161_v30 = vunpack.i.h.bf16 %v2159_v43  ;;  %v2113_v19 = vmax.f32 %v2111_v0, %v2112_v10  ;;  %v2152_v22 = vrot.slane %v2151_v62, 4 }
 0x119   :  { %v4283_v42 = vpack.i.bf16 %v2102_v24, %v2102_v24  ;;  %v2123_v52 = vrot.slane %v2122_v37, 1  ;;  %v2143_v8 = vrot.slane %v2142_v1, 2  ;;  %v2170_v3 = vsel %vm3581_vm2, %v3503_v58, 4286644096 }
 0x11a   :  { %v2133_v41 = vmax.f32 %v2131_v26, %v2132_v50  ;;  %v2162_v9 = vmax.f32 %v2160_v45, %v2161_v30  ;;  %v4287_v34 = vpack.i.bf16 %v2113_v19, %v2113_v19  ;;  %v2153_v55 = vmax.f32 %v2151_v62, %v2152_v22 }
 0x11b   :  { %5817 = vst [vmem:[#allocation67_spill] sm:$0xff] %v4283_v42  ;;  %v2124_v4 = vmax.f32 %v2122_v37, %v2123_v52  ;;  %v2171_v56 = vunpack.i.l.bf16 %v2170_v3  ;;  %v2144_v24 = vmax.f32 %v2142_v1, %v2143_v8  ;;  %v2172_v10 = vunpack.i.h.bf16 %v2170_v3  ;;  %v3507_v1 = vld [vmem:[%s5661_s0 + $0x358] sm:$0x1f]   ;;  %v3508_v8 = vld [vmem:[%s5661_s0 + $0x360] sm:$0x1f]  }
 0x11c   :  { %5818 = vst [vmem:[#allocation68_spill] sm:$0xff] %v4287_v34  ;;  %v2134_v43 = vrot.slane %v2133_v41, 1  ;;  %v2163_v0 = vrot.slane %v2162_v9, 4  ;;  %v2154_v26 = vrot.slane %v2153_v55, 2  ;;  %v2181_v50 = vsel %vm3581_vm2, %v3504_v27, 4286644096 }
 0x11d   :  { %v4292_v42 = vpack.i.bf16 %v2124_v4, %v2124_v4  ;;  %v2192_v58 = vsel %vm3581_vm2, %v3505_v13, 4286644096  ;;  %v2145_v62 = vrot.slane %v2144_v24, 1  ;;  %v2173_v30 = vmax.f32 %v2171_v56, %v2172_v10 }
 0x11e   :  { %v2135_v37 = vmax.f32 %v2133_v41, %v2134_v43  ;;  %v2164_v45 = vmax.f32 %v2162_v9, %v2163_v0  ;;  %v2155_v19 = vmax.f32 %v2153_v55, %v2154_v26  ;;  %v2182_v52 = vunpack.i.l.bf16 %v2181_v50 }
 0x11f   :  { %5819 = vst [vmem:[#allocation69_spill] sm:$0xff] %v4292_v42  ;;  %v2183_v22 = vunpack.i.h.bf16 %v2181_v50  ;;  %v2193_v34 = vunpack.i.l.bf16 %v2192_v58  ;;  %v2146_v3 = vmax.f32 %v2144_v24, %v2145_v62  ;;  %v2174_v41 = vrot.slane %v2173_v30, 4 }
 0x120   :  { %v4304_v27 = vpack.i.bf16 %v2135_v37, %v2135_v37  ;;  %v2165_v13 = vrot.slane %v2164_v45, 2  ;;  %v2156_v4 = vrot.slane %v2155_v19, 1  ;;  %v2194_v56 = vunpack.i.h.bf16 %v2192_v58 }
 0x121   :  { %v2184_v9 = vmax.f32 %v2182_v52, %v2183_v22  ;;  %v2203_v55 = vsel %vm3581_vm2, %v3506_v39, 4286644096  ;;  %v4308_v43 = vpack.i.bf16 %v2146_v3, %v2146_v3  ;;  %v2175_v10 = vmax.f32 %v2173_v30, %v2174_v41  ;;  %v3509_v39 = vld [vmem:[%s5661_s0 + $0x368] sm:$0x1f]  }
 0x122   :  { %5820 = vst [vmem:[#allocation70_spill] sm:$0xff] %v4304_v27  ;;  %v2166_v0 = vmax.f32 %v2164_v45, %v2165_v13  ;;  %v2204_v26 = vunpack.i.l.bf16 %v2203_v55  ;;  %v2157_v50 = vmax.f32 %v2155_v19, %v2156_v4  ;;  %v2195_v54 = vmax.f32 %v2193_v34, %v2194_v56 }
 0x123   :  { %5821 = vst [vmem:[#allocation71_spill] sm:$0xff] %v4308_v43  ;;  %v2185_v42 = vrot.slane %v2184_v9, 4  ;;  %v2205_v17 = vunpack.i.h.bf16 %v2203_v55  ;;  %v2176_v27 = vrot.slane %v2175_v10, 2  ;;  %v2214_v24 = vsel %vm3581_vm2, %v3507_v1, 4286644096 }
 0x124   :  { %v2167_v37 = vrot.slane %v2166_v0, 1  ;;  %v2225_v58 = vsel %vm3581_vm2, %v3508_v8, 4286644096  ;;  %v4317_v62 = vpack.i.bf16 %v2157_v50, %v2157_v50  ;;  %v2196_v30 = vrot.slane %v2195_v54, 4  ;;  %v3510_v8 = vld [vmem:[%s5661_s0 + $0x370] sm:$0x1f]  }
 0x125   :  { %v2186_v45 = vmax.f32 %v2184_v9, %v2185_v42  ;;  %v2206_v19 = vmax.f32 %v2204_v26, %v2205_v17  ;;  %v2177_v34 = vmax.f32 %v2175_v10, %v2176_v27  ;;  %v2215_v22 = vunpack.i.l.bf16 %v2214_v24 }
 0x126   :  { %5822 = vst [vmem:[#allocation72_spill] sm:$0xff] %v4317_v62  ;;  %v2168_v52 = vmax.f32 %v2166_v0, %v2167_v37  ;;  %v2216_v3 = vunpack.i.h.bf16 %v2214_v24  ;;  %v2197_v41 = vmax.f32 %v2195_v54, %v2196_v30  ;;  %v2226_v1 = vunpack.i.l.bf16 %v2225_v58 }
 0x127   :  { %v2187_v13 = vrot.slane %v2186_v45, 2  ;;  %v2207_v4 = vrot.slane %v2206_v19, 4  ;;  %v2178_v55 = vrot.slane %v2177_v34, 1  ;;  %v2227_v62 = vunpack.i.h.bf16 %v2225_v58 }
 0x128   :  { %v4322_v56 = vpack.i.bf16 %v2168_v52, %v2168_v52  ;;  %v2217_v50 = vmax.f32 %v2215_v22, %v2216_v3  ;;  %v2198_v9 = vrot.slane %v2197_v41, 2  ;;  %v2236_v27 = vsel %vm3581_vm2, %v3509_v39, 4286644096  ;;  %v3511_v52 = vld [vmem:[%s5661_s0 + $0x378] sm:$0x1f]  }
 0x129   :  { %v2188_v42 = vmax.f32 %v2186_v45, %v2187_v13  ;;  %v2208_v17 = vmax.f32 %v2206_v19, %v2207_v4  ;;  %v2179_v0 = vmax.f32 %v2177_v34, %v2178_v55  ;;  %v2228_v54 = vmax.f32 %v2226_v1, %v2227_v62  ;;  %v3512_v55 = vld [vmem:[%s5661_s0 + $0x380] sm:$0x1f]  }
 0x12a   :  { %5823 = vst [vmem:[#allocation73_spill] sm:$0xff] %v4322_v56  ;;  %v2218_v10 = vrot.slane %v2217_v50, 4  ;;  %v2237_v26 = vunpack.i.l.bf16 %v2236_v27  ;;  %v2199_v24 = vmax.f32 %v2197_v41, %v2198_v9  ;;  %v2238_v43 = vunpack.i.h.bf16 %v2236_v27 }
 0x12b   :  { %v2189_v37 = vrot.slane %v2188_v42, 1  ;;  %v2209_v30 = vrot.slane %v2208_v17, 2  ;;  %v4329_v22 = vpack.i.bf16 %v2179_v0, %v2179_v0  ;;  %v2229_v45 = vrot.slane %v2228_v54, 4 }
 0x12c   :  { %v2219_v58 = vmax.f32 %v2217_v50, %v2218_v10  ;;  %v2247_v19 = vsel %vm3581_vm2, %v3510_v8, 4286644096  ;;  %v2200_v34 = vrot.slane %v2199_v24, 1  ;;  %v2239_v62 = vmax.f32 %v2237_v26, %v2238_v43  ;;  %v3513_v50 = vld [vmem:[%s5661_s0 + $0x388] sm:$0x1f]  }
 0x12d   :  { %5824 = vst [vmem:[#allocation74_spill] sm:$0xff] %v4329_v22  ;;  %v2190_v39 = vmax.f32 %v2188_v42, %v2189_v37  ;;  %v2210_v3 = vmax.f32 %v2208_v17, %v2209_v30  ;;  %v2230_v4 = vmax.f32 %v2228_v54, %v2229_v45  ;;  %v2248_v41 = vunpack.i.l.bf16 %v2247_v19  ;;  %v3514_v45 = vld [vmem:[%s5661_s0 + $0x390] sm:$0x1f]  }
 0x12e   :  { %v2220_v13 = vrot.slane %v2219_v58, 2  ;;  %v2249_v1 = vunpack.i.h.bf16 %v2247_v19  ;;  %v2201_v27 = vmax.f32 %v2199_v24, %v2200_v34  ;;  %v2240_v42 = vrot.slane %v2239_v62, 4 }
 0x12f   :  { %v4339_v9 = vpack.i.bf16 %v2190_v39, %v2190_v39  ;;  %v2211_v8 = vrot.slane %v2210_v3, 1  ;;  %v2231_v17 = vrot.slane %v2230_v4, 2  ;;  %v2258_v10 = vsel %vm3581_vm2, %v3511_v52, 4286644096 }
 0x130   :  { %v2221_v0 = vmax.f32 %v2219_v58, %v2220_v13  ;;  %v2250_v43 = vmax.f32 %v2248_v41, %v2249_v1  ;;  %v4343_v54 = vpack.i.bf16 %v2201_v27, %v2201_v27  ;;  %v2241_v37 = vmax.f32 %v2239_v62, %v2240_v42 }
 0x131   :  { %5825 = vst [vmem:[#allocation75_spill] sm:$0xff] %v4339_v9  ;;  %v2212_v26 = vmax.f32 %v2210_v3, %v2211_v8  ;;  %v2259_v30 = vunpack.i.l.bf16 %v2258_v10  ;;  %v2232_v39 = vmax.f32 %v2230_v4, %v2231_v17  ;;  %v2260_v34 = vunpack.i.h.bf16 %v2258_v10  ;;  %v3515_v4 = vld [vmem:[%s5661_s0 + $0x398] sm:$0x1f]   ;;  %v3516_v17 = vld [vmem:[%s5661_s0 + $0x3a0] sm:$0x1f]  }
 0x132   :  { %5826 = vst [vmem:[#allocation76_spill] sm:$0xff] %v4343_v54  ;;  %v2222_v19 = vrot.slane %v2221_v0, 1  ;;  %v2251_v24 = vrot.slane %v2250_v43, 4  ;;  %v2242_v58 = vrot.slane %v2241_v37, 2  ;;  %v2269_v13 = vsel %vm3581_vm2, %v3512_v55, 4286644096 }
 0x133   :  { %v4348_v9 = vpack.i.bf16 %v2212_v26, %v2212_v26  ;;  %v2280_v52 = vsel %vm3581_vm2, %v3513_v50, 4286644096  ;;  %v2233_v62 = vrot.slane %v2232_v39, 1  ;;  %v2261_v1 = vmax.f32 %v2259_v30, %v2260_v34 }
 0x134   :  { %v2223_v3 = vmax.f32 %v2221_v0, %v2222_v19  ;;  %v2252_v41 = vmax.f32 %v2250_v43, %v2251_v24  ;;  %v2243_v27 = vmax.f32 %v2241_v37, %v2242_v58  ;;  %v2270_v8 = vunpack.i.l.bf16 %v2269_v13 }
 0x135   :  { %5827 = vst [vmem:[#allocation77_spill] sm:$0xff] %v4348_v9  ;;  %v2271_v42 = vunpack.i.h.bf16 %v2269_v13  ;;  %v2281_v54 = vunpack.i.l.bf16 %v2280_v52  ;;  %v2234_v10 = vmax.f32 %v2232_v39, %v2233_v62  ;;  %v2262_v0 = vrot.slane %v2261_v1, 4 }
 0x136   :  { %v4360_v55 = vpack.i.bf16 %v2223_v3, %v2223_v3  ;;  %v2253_v50 = vrot.slane %v2252_v41, 2  ;;  %v2244_v26 = vrot.slane %v2243_v27, 1  ;;  %v2282_v30 = vunpack.i.h.bf16 %v2280_v52 }
 0x137   :  { %v2272_v43 = vmax.f32 %v2270_v8, %v2271_v42  ;;  %v2291_v37 = vsel %vm3581_vm2, %v3514_v45, 4286644096  ;;  %v4364_v19 = vpack.i.bf16 %v2234_v10, %v2234_v10  ;;  %v2263_v34 = vmax.f32 %v2261_v1, %v2262_v0  ;;  %v3517_v45 = vld [vmem:[%s5661_s0 + $0x3a8] sm:$0x1f]  }
 0x138   :  { %5828 = vst [vmem:[#allocation78_spill] sm:$0xff] %v4360_v55  ;;  %v2254_v24 = vmax.f32 %v2252_v41, %v2253_v50  ;;  %v2292_v58 = vunpack.i.l.bf16 %v2291_v37  ;;  %v2245_v13 = vmax.f32 %v2243_v27, %v2244_v26  ;;  %v2283_v22 = vmax.f32 %v2281_v54, %v2282_v30 }
 0x139   :  { %5829 = vst [vmem:[#allocation79_spill] sm:$0xff] %v4364_v19  ;;  %v2273_v9 = vrot.slane %v2272_v43, 4  ;;  %v2293_v56 = vunpack.i.h.bf16 %v2291_v37  ;;  %v2264_v55 = vrot.slane %v2263_v34, 2  ;;  %v2302_v39 = vsel %vm3581_vm2, %v3515_v4, 4286644096 }
 0x13a   :  { %v2255_v3 = vrot.slane %v2254_v24, 1  ;;  %v2313_v52 = vsel %vm3581_vm2, %v3516_v17, 4286644096  ;;  %v4373_v62 = vpack.i.bf16 %v2245_v13, %v2245_v13  ;;  %v2284_v1 = vrot.slane %v2283_v22, 4  ;;  %v3518_v17 = vld [vmem:[%s5661_s0 + $0x3b0] sm:$0x1f]  }
 0x13b   :  { %v2274_v41 = vmax.f32 %v2272_v43, %v2273_v9  ;;  %v2294_v27 = vmax.f32 %v2292_v58, %v2293_v56  ;;  %v2265_v54 = vmax.f32 %v2263_v34, %v2264_v55  ;;  %v2303_v42 = vunpack.i.l.bf16 %v2302_v39 }
 0x13c   :  { %5830 = vst [vmem:[#allocation80_spill] sm:$0xff] %v4373_v62  ;;  %v2256_v8 = vmax.f32 %v2254_v24, %v2255_v3  ;;  %v2304_v10 = vunpack.i.h.bf16 %v2302_v39  ;;  %v2285_v0 = vmax.f32 %v2283_v22, %v2284_v1  ;;  %v2314_v4 = vunpack.i.l.bf16 %v2313_v52 }
 0x13d   :  { %v2275_v50 = vrot.slane %v2274_v41, 2  ;;  %v2295_v26 = vrot.slane %v2294_v27, 4  ;;  %v2266_v37 = vrot.slane %v2265_v54, 1  ;;  %v2315_v62 = vunpack.i.h.bf16 %v2313_v52 }
 0x13e   :  { %v4378_v30 = vpack.i.bf16 %v2256_v8, %v2256_v8  ;;  %v2305_v13 = vmax.f32 %v2303_v42, %v2304_v10  ;;  %v2286_v43 = vrot.slane %v2285_v0, 2  ;;  %v2324_v55 = vsel %vm3581_vm2, %v3517_v45, 4286644096  ;;  %v3519_v8 = vld [vmem:[%s5661_s0 + $0x3b8] sm:$0x1f]  }
 0x13f   :  { %v2276_v9 = vmax.f32 %v2274_v41, %v2275_v50  ;;  %v2296_v56 = vmax.f32 %v2294_v27, %v2295_v26  ;;  %v2267_v24 = vmax.f32 %v2265_v54, %v2266_v37  ;;  %v2316_v22 = vmax.f32 %v2314_v4, %v2315_v62  ;;  %v3520_v37 = vld [vmem:[%s5661_s0 + $0x3c0] sm:$0x1f]  }
 0x140   :  { %5831 = vst [vmem:[#allocation81_spill] sm:$0xff] %v4378_v30  ;;  %v2306_v34 = vrot.slane %v2305_v13, 4  ;;  %v2325_v58 = vunpack.i.l.bf16 %v2324_v55  ;;  %v2287_v39 = vmax.f32 %v2285_v0, %v2286_v43  ;;  %v2326_v19 = vunpack.i.h.bf16 %v2324_v55 }
 0x141   :  { %v2277_v3 = vrot.slane %v2276_v9, 1  ;;  %v2297_v1 = vrot.slane %v2296_v56, 2  ;;  %v4385_v42 = vpack.i.bf16 %v2267_v24, %v2267_v24  ;;  %v2317_v41 = vrot.slane %v2316_v22, 4 }
 0x142   :  { %v2307_v52 = vmax.f32 %v2305_v13, %v2306_v34  ;;  %v2335_v27 = vsel %vm3581_vm2, %v3518_v17, 4286644096  ;;  %v2288_v54 = vrot.slane %v2287_v39, 1  ;;  %v2327_v62 = vmax.f32 %v2325_v58, %v2326_v19  ;;  %v3521_v13 = vld [vmem:[%s5661_s0 + $0x3c8] sm:$0x1f]  }
 0x143   :  { %5832 = vst [vmem:[#allocation82_spill] sm:$0xff] %v4385_v42  ;;  %v2278_v45 = vmax.f32 %v2276_v9, %v2277_v3  ;;  %v2298_v10 = vmax.f32 %v2296_v56, %v2297_v1  ;;  %v2318_v26 = vmax.f32 %v2316_v22, %v2317_v41  ;;  %v2336_v0 = vunpack.i.l.bf16 %v2335_v27  ;;  %v3522_v41 = vld [vmem:[%s5661_s0 + $0x3d0] sm:$0x1f]  }
 0x144   :  { %v2308_v50 = vrot.slane %v2307_v52, 2  ;;  %v2337_v4 = vunpack.i.h.bf16 %v2335_v27  ;;  %v2289_v55 = vmax.f32 %v2287_v39, %v2288_v54  ;;  %v2328_v9 = vrot.slane %v2327_v62, 4 }
 0x145   :  { %v4395_v43 = vpack.i.bf16 %v2278_v45, %v2278_v45  ;;  %v2299_v17 = vrot.slane %v2298_v10, 1  ;;  %v2319_v56 = vrot.slane %v2318_v26, 2  ;;  %v2346_v34 = vsel %vm3581_vm2, %v3519_v8, 4286644096 }
 0x146   :  { %v2309_v24 = vmax.f32 %v2307_v52, %v2308_v50  ;;  %v2338_v19 = vmax.f32 %v2336_v0, %v2337_v4  ;;  %v4399_v22 = vpack.i.bf16 %v2289_v55, %v2289_v55  ;;  %v2329_v3 = vmax.f32 %v2327_v62, %v2328_v9 }
 0x147   :  { %5833 = vst [vmem:[#allocation83_spill] sm:$0xff] %v4395_v43  ;;  %v2300_v58 = vmax.f32 %v2298_v10, %v2299_v17  ;;  %v2347_v1 = vunpack.i.l.bf16 %v2346_v34  ;;  %v2320_v45 = vmax.f32 %v2318_v26, %v2319_v56  ;;  %v2348_v54 = vunpack.i.h.bf16 %v2346_v34  ;;  %v3523_v26 = vld [vmem:[%s5661_s0 + $0x3d8] sm:$0x1f]   ;;  %v3524_v56 = vld [vmem:[%s5661_s0 + $0x3e0] sm:$0x1f]  }
 0x148   :  { %5834 = vst [vmem:[#allocation84_spill] sm:$0xff] %v4399_v22  ;;  %v2310_v27 = vrot.slane %v2309_v24, 1  ;;  %v2339_v39 = vrot.slane %v2338_v19, 4  ;;  %v2330_v52 = vrot.slane %v2329_v3, 2  ;;  %v2357_v50 = vsel %vm3581_vm2, %v3520_v37, 4286644096 }
 0x149   :  { %v4404_v43 = vpack.i.bf16 %v2300_v58, %v2300_v58  ;;  %v2368_v8 = vsel %vm3581_vm2, %v3521_v13, 4286644096  ;;  %v2321_v62 = vrot.slane %v2320_v45, 1  ;;  %v2349_v4 = vmax.f32 %v2347_v1, %v2348_v54 }
 0x14a   :  { %v2311_v10 = vmax.f32 %v2309_v24, %v2310_v27  ;;  %v2340_v0 = vmax.f32 %v2338_v19, %v2339_v39  ;;  %v2331_v55 = vmax.f32 %v2329_v3, %v2330_v52  ;;  %v2358_v17 = vunpack.i.l.bf16 %v2357_v50 }
 0x14b   :  { %5835 = vst [vmem:[#allocation85_spill] sm:$0xff] %v4404_v43  ;;  %v2359_v9 = vunpack.i.h.bf16 %v2357_v50  ;;  %v2369_v22 = vunpack.i.l.bf16 %v2368_v8  ;;  %v2322_v34 = vmax.f32 %v2320_v45, %v2321_v62  ;;  %v2350_v24 = vrot.slane %v2349_v4, 4 }
 0x14c   :  { %v4416_v37 = vpack.i.bf16 %v2311_v10, %v2311_v10  ;;  %v2341_v13 = vrot.slane %v2340_v0, 2  ;;  %v2332_v58 = vrot.slane %v2331_v55, 1  ;;  %v2370_v1 = vunpack.i.h.bf16 %v2368_v8 }
 0x14d   :  { %v2360_v19 = vmax.f32 %v2358_v17, %v2359_v9  ;;  %v2379_v3 = vsel %vm3581_vm2, %v3522_v41, 4286644096  ;;  %v4420_v27 = vpack.i.bf16 %v2322_v34, %v2322_v34  ;;  %v2351_v54 = vmax.f32 %v2349_v4, %v2350_v24  ;;  %v3525_v41 = vld [vmem:[%s5661_s0 + $0x3e8] sm:$0x1f]  }
 0x14e   :  { %5836 = vst [vmem:[#allocation86_spill] sm:$0xff] %v4416_v37  ;;  %v2342_v39 = vmax.f32 %v2340_v0, %v2341_v13  ;;  %v2380_v52 = vunpack.i.l.bf16 %v2379_v3  ;;  %v2333_v50 = vmax.f32 %v2331_v55, %v2332_v58  ;;  %v2371_v42 = vmax.f32 %v2369_v22, %v2370_v1 }
 0x14f   :  { %5837 = vst [vmem:[#allocation87_spill] sm:$0xff] %v4420_v27  ;;  %v2361_v43 = vrot.slane %v2360_v19, 4  ;;  %v2381_v30 = vunpack.i.h.bf16 %v2379_v3  ;;  %v2352_v37 = vrot.slane %v2351_v54, 2  ;;  %v2390_v45 = vsel %vm3581_vm2, %v3523_v26, 4286644096 }
 0x150   :  { %v2343_v10 = vrot.slane %v2342_v39, 1  ;;  %v2401_v8 = vsel %vm3581_vm2, %v3524_v56, 4286644096  ;;  %v4429_v62 = vpack.i.bf16 %v2333_v50, %v2333_v50  ;;  %v2372_v4 = vrot.slane %v2371_v42, 4  ;;  %v3526_v56 = vld [vmem:[%s5661_s0 + $0x3f0] sm:$0x1f]  }
 0x151   :  { %v2362_v0 = vmax.f32 %v2360_v19, %v2361_v43  ;;  %v2382_v55 = vmax.f32 %v2380_v52, %v2381_v30  ;;  %v2353_v22 = vmax.f32 %v2351_v54, %v2352_v37  ;;  %v2391_v9 = vunpack.i.l.bf16 %v2390_v45 }
 0x152   :  { %5838 = vst [vmem:[#allocation88_spill] sm:$0xff] %v4429_v62  ;;  %v2344_v17 = vmax.f32 %v2342_v39, %v2343_v10  ;;  %v2392_v34 = vunpack.i.h.bf16 %v2390_v45  ;;  %v2373_v24 = vmax.f32 %v2371_v42, %v2372_v4  ;;  %v2402_v26 = vunpack.i.l.bf16 %v2401_v8 }
 0x153   :  { %v2363_v13 = vrot.slane %v2362_v0, 2  ;;  %v2383_v58 = vrot.slane %v2382_v55, 4  ;;  %v2354_v3 = vrot.slane %v2353_v22, 1  ;;  %v2403_v62 = vunpack.i.h.bf16 %v2401_v8 }
 0x154   :  { %v4434_v1 = vpack.i.bf16 %v2344_v17, %v2344_v17  ;;  %v2393_v50 = vmax.f32 %v2391_v9, %v2392_v34  ;;  %v2374_v19 = vrot.slane %v2373_v24, 2  ;;  %v2412_v37 = vsel %vm3581_vm2, %v3525_v41, 4286644096  ;;  %v3527_v17 = vld [vmem:[%s5661_s0 + $0x3f8] sm:$0x1f]   ;;  %s3550_s0 = smov [#allocation2]  }
 0x155   :  { %v2364_v43 = vmax.f32 %v2362_v0, %v2363_v13  ;;  %v2384_v30 = vmax.f32 %v2382_v55, %v2383_v58  ;;  %v2355_v39 = vmax.f32 %v2353_v22, %v2354_v3  ;;  %v2404_v42 = vmax.f32 %v2402_v26, %v2403_v62  ;;  %s3130_s30 = sshll.u32 %s3550_s0, 4  ;;  %s5635_s30 = int_to_ptr.vmem [resolvable:$true] %s3130_s30 }
 0x156   :  { %5839 = vst [vmem:[#allocation89_spill] sm:$0xff] %v4434_v1  ;;  %v2394_v54 = vrot.slane %v2393_v50, 4  ;;  %v2413_v52 = vunpack.i.l.bf16 %v2412_v37  ;;  %v2375_v45 = vmax.f32 %v2373_v24, %v2374_v19  ;;  %v2414_v27 = vunpack.i.h.bf16 %v2412_v37  ;;  %s3528_s2 = scalar_lea.vmem %s5635_s30, 1024  ;;  %p3533_p1 = scmp.lt.s32.totalorder %s5635_s30, %s5635_s30 }
 0x157   :  { %v2365_v10 = vrot.slane %v2364_v43, 1  ;;  %v2385_v4 = vrot.slane %v2384_v30, 2  ;;  %v4441_v9 = vpack.i.bf16 %v2355_v39, %v2355_v39  ;;  %v2405_v0 = vrot.slane %v2404_v42, 4  ;;  %p3529_p0 = scmp.ne.s32.totalorder %s5635_s30, %s3528_s2  ;;  %p3534_p2 = scmp.lt.s32.totalorder %s3528_s2, %s3528_s2 }
 0x158   :  { %v2395_v8 = vmax.f32 %v2393_v50, %v2394_v54  ;;  %v2423_v55 = vsel %vm3581_vm2, %v3526_v56, 4286644096  ;;  %v2376_v22 = vrot.slane %v2375_v45, 1  ;;  %v2415_v62 = vmax.f32 %v2413_v52, %v2414_v27 }
 0x159   :  { %5840 = vst [vmem:[#allocation90_spill] sm:$0xff] %v4441_v9  ;;  %v2366_v41 = vmax.f32 %v2364_v43, %v2365_v10  ;;  %v2386_v34 = vmax.f32 %v2384_v30, %v2385_v4  ;;  %v2406_v58 = vmax.f32 %v2404_v42, %v2405_v0  ;;  %v2424_v24 = vunpack.i.l.bf16 %v2423_v55  ;;  %p3535_p3 = por %p3534_p2, %p3533_p1 }
 0x15a   :  { %v2396_v13 = vrot.slane %v2395_v8, 2  ;;  %v2425_v26 = vunpack.i.h.bf16 %v2423_v55  ;;  %v2377_v19 = vmax.f32 %v2375_v45, %v2376_v22  ;;  %v2416_v1 = vrot.slane %v2415_v62, 4 }
 0x15b   :  { %v4445_v3 = vpack.i.bf16 %v2366_v41, %v2366_v41  ;;  %v2387_v37 = vrot.slane %v2386_v34, 1  ;;  %v2407_v9 = vrot.slane %v2406_v58, 2  ;;  %v2434_v54 = vsel %vm3581_vm2, %v3527_v17, 4286644096  ;;  %p3536_p4 = pnand %p3535_p3, %p3529_p0 }
 0x15c   :  { %v2397_v39 = vmax.f32 %v2395_v8, %v2396_v13  ;;  %v2426_v50 = vmax.f32 %v2424_v24, %v2425_v26  ;;  %v4449_v56 = vpack.i.bf16 %v2377_v19, %v2377_v19  ;;  %v2417_v30 = vmax.f32 %v2415_v62, %v2416_v1  ;;  %v5921_v8 = vld [vmem:[#allocation83_spill] sm:$0xff] }
 0x15d   :  { %v2388_v43 = vmax.f32 %v2386_v34, %v2387_v37  ;;  %v2435_v27 = vunpack.i.l.bf16 %v2434_v54  ;;  %v2408_v42 = vmax.f32 %v2406_v58, %v2407_v9  ;;  %v2436_v4 = vunpack.i.h.bf16 %v2434_v54  ;;  %v5924_v37 = vld [vmem:[#allocation86_spill] sm:$0xff]  ;;  %v5925_v62 = vld [vmem:[#allocation87_spill] sm:$0xff]  ;;  %v5926_v9 = vld [vmem:[#allocation88_spill] sm:$0xff] }
 0x15e   :  { %5841 = vst [vmem:[#allocation91_spill] sm:$0xff] %v4449_v56  ;;  %v2398_v52 = vrot.slane %v2397_v39, 1  ;;  %v2427_v10 = vrot.slane %v2426_v50, 4  ;;  %v2418_v45 = vrot.slane %v2417_v30, 2  ;;  %v5927_v1 = vld [vmem:[#allocation89_spill] sm:$0xff]  ;;  %vm2967_vm8 = vcmask 1046534  }
 0x15f   :  { %v4451_v0 = vpack.i.bf16 %v2388_v43, %v2388_v43  ;;  %v2409_v17 = vrot.slane %v2408_v42, 1  ;;  %v2437_v22 = vmax.f32 %v2435_v27, %v2436_v4  ;;  %v5849_v27 = vld [vmem:[#allocation11_spill] sm:$0xff]  ;;  %v5931_v4 = vcombine.low %v3623_v21, %v3623_v21 }
 0x160   :  { %v2399_v6 = vmax.f32 %v2397_v39, %v2398_v52  ;;  %v2428_v41 = vmax.f32 %v2426_v50, %v2427_v10  ;;  %v2419_v34 = vmax.f32 %v2417_v30, %v2418_v45  ;;  %v5847_v10 = vld [vmem:[#allocation9_spill] sm:$0xff]  ;;  %v5922_v50 = vld [vmem:[#allocation84_spill] sm:$0xff]  ;;  %v5928_v55 = vld [vmem:[#allocation90_spill] sm:$0xff]  ;;  %v5932_v39 = vcombine.low %v3625_v25, %v3625_v25 }
 0x161   :  { %v2410_v58 = vmax.f32 %v2408_v42, %v2409_v17  ;;  %v2438_v26 = vrot.slane %v2437_v22, 4  ;;  %v5845_v17 = vld [vmem:[#allocation7_spill] sm:$0xff]  ;;  %v5848_v42 = vld [vmem:[#allocation10_spill] sm:$0xff]  ;;  %v5935_v21 = vcombine.low %v3645_v47, %v3645_v47  ;;  %v5936_v25 = vcombine.low %v3657_v5, %v3657_v5 }
 0x162   :  { %v4463_v13 = vpack.i.bf16 %v2399_v6, %v2399_v6  ;;  %v2429_v24 = vrot.slane %v2428_v41, 2  ;;  %v2420_v19 = vrot.slane %v2419_v34, 1  ;;  %v5939_v47 = vcombine.low %v3680_v60, %v3680_v60 }
 0x163   :  { %v4471_v54 = vpack.i.bf16 %v2410_v58, %v2410_v58  ;;  %v2439_v30 = vmax.f32 %v2437_v22, %v2438_v26  ;;  %v5843_v58 = vld [vmem:[#allocation5_spill] sm:$0xff]  ;;  %v5940_v5 = vcombine.low %v3682_v61, %v3682_v61  ;;  %v5943_v60 = vcombine.low %v3706_v40, %v3706_v40 }
 0x164   :  { %v2430_v43 = vmax.f32 %v2428_v41, %v2429_v24  ;;  %v2421_v52 = vmax.f32 %v2419_v34, %v2420_v19  ;;  %v5846_v41 = vld [vmem:[#allocation8_spill] sm:$0xff]  ;;  %v5930_v34 = vcombine.low %v3615_v16, %v3615_v16  ;;  %v5934_v16 = vcombine.low %v3636_v38, %v3636_v38 }
 0x165   :  { %v2440_v6 = vrot.slane %v2439_v30, 2  ;;  %v5938_v38 = vcombine.low %v3671_v48, %v3671_v48  ;;  %v5942_v48 = vcombine.low %v3694_v23, %v3694_v23  ;;  %v5944_v61 = vcombine.low %v3715_v2, %v3715_v2 }
 0x166   :  { %v2431_v45 = vrot.slane %v2430_v43, 1  ;;  %v4485_v22 = vpack.i.bf16 %v2421_v52, %v2421_v52  ;;  %v4727_v52 = vunpack.c.l.b16 %v5930_v34  ;;  %v4747_v34 = vunpack.c.l.b16 %v5934_v16 }
 0x167   :  { %v2441_v19 = vmax.f32 %v2439_v30, %v2440_v6  ;;  %v5929_v6 = vcombine.low %v3613_v15, %v3613_v15  ;;  %v5933_v15 = vcombine.low %v3631_v29, %v3631_v29  ;;  %v5937_v29 = vcombine.low %v3669_v46, %v3669_v46 }
 0x168   :  { %v2432_v26 = vmax.f32 %v2430_v43, %v2431_v45  ;;  %v4767_v16 = vunpack.c.l.b16 %v5938_v38  ;;  %v5941_v46 = vcombine.low %v3687_v7, %v3687_v7  ;;  %v4787_v38 = vunpack.c.l.b16 %v5942_v48  ;;  %v5975_v45 = vld [vmem:[#allocation12_spill] sm:$0xff] }
 0x169   :  { %v2442_v30 = vrot.slane %v2441_v19, 1  ;;  %v4722_v56 = vunpack.c.l.b16 %v5929_v6  ;;  %v4742_v6 = vunpack.c.l.b16 %v5933_v15  ;;  %v4762_v15 = vunpack.c.l.b16 %v5937_v29 }
 0x16a   :  { %v4505_v43 = vpack.i.bf16 %v2432_v26, %v2432_v26  ;;  %v5844_v26 = vld [vmem:[#allocation6_spill] sm:$0xff]  ;;  %v4782_v29 = vunpack.c.l.b16 %v5941_v46  ;;  %v5945_v7 = vcombine.low %v3725_v28, %v3725_v28  ;;  %v5946_v23 = vcombine.low %v3727_v33, %v3727_v33 }
 0x16b   :  { %v2443_v24 = vmax.f32 %v2441_v19, %v2442_v30  ;;  %v4732_v19 = vunpack.c.l.b16 %v5931_v4  ;;  %v4752_v4 = vunpack.c.l.b16 %v5935_v21  ;;  %v4772_v21 = vunpack.c.l.b16 %v5939_v47 }
 0x16c   :  { %5842 = vst [vmem:[#allocation92_spill] sm:$0xff] %v4505_v43  ;;  %v4737_v43 = vunpack.c.l.b16 %v5932_v39  ;;  %v4757_v39 = vunpack.c.l.b16 %v5936_v25  ;;  %v4777_v25 = vunpack.c.l.b16 %v5940_v5  ;;  %v4792_v47 = vunpack.c.l.b16 %v5943_v60 }
 0x16d   :  { %v4533_v30 = vpack.i.bf16 %v2443_v24, %v2443_v24  ;;  %v5923_v24 = vld [vmem:[#allocation85_spill] sm:$0xff]  ;;  %v4797_v5 = vunpack.c.l.b16 %v5944_v61  ;;  %v4802_v46 = vunpack.c.l.b16 %v5945_v7  ;;  %v4807_v48 = vunpack.c.l.b16 %v5946_v23 }
 0x16e   :  { %v5947_v40 = vcombine.low %v3732_v44, %v3732_v44  ;;  %v5948_v2 = vcombine.low %v3744_v63, %v3744_v63  ;;  %v5949_v28 = vcombine.low %v3748_v11, %v3748_v11  ;;  %v5950_v33 = vcombine.low %v3757_v31, %v3757_v31 }
 0x16f   :  { %v5951_v44 = vcombine.low %v3762_v51, %v3762_v51  ;;  %v5952_v63 = vcombine.low %v3769_v12, %v3769_v12  ;;  %v5953_v11 = vcombine.low %v3779_v35, %v3779_v35  ;;  %v5954_v31 = vcombine.low %v3783_v49, %v3783_v49 }
 0x170   :  { %v4812_v60 = vunpack.c.l.b16 %v5947_v40  ;;  %v4817_v61 = vunpack.c.l.b16 %v5948_v2  ;;  %v4822_v7 = vunpack.c.l.b16 %v5949_v28  ;;  %v4827_v23 = vunpack.c.l.b16 %v5950_v33 }
 0x171   :  { %v4832_v40 = vunpack.c.l.b16 %v5951_v44  ;;  %v4837_v2 = vunpack.c.l.b16 %v5952_v63  ;;  %v4842_v28 = vunpack.c.l.b16 %v5953_v11  ;;  %v4847_v33 = vunpack.c.l.b16 %v5954_v31 }
 0x172   :  { %v5955_v51 = vcombine.low %v3788_v59, %v3788_v59  ;;  %v5956_v12 = vcombine.low %v3800_v20, %v3800_v20  ;;  %v5957_v35 = vcombine.low %v3804_v36, %v3804_v36  ;;  %v5958_v49 = vcombine.low %v3813_v57, %v3813_v57 }
 0x173   :  { %v5959_v59 = vcombine.low %v3818_v18, %v3818_v18  ;;  %v5960_v20 = vcombine.low %v3825_v53, %v3825_v53  ;;  %v5961_v36 = vcombine.low %v3835_v14, %v3835_v14  ;;  %v5962_v57 = vcombine.low %v3839_v32, %v3839_v32 }
 0x174   :  { %v4852_v44 = vunpack.c.l.b16 %v5955_v51  ;;  %v4857_v63 = vunpack.c.l.b16 %v5956_v12  ;;  %v4862_v11 = vunpack.c.l.b16 %v5957_v35  ;;  %v4867_v31 = vunpack.c.l.b16 %v5958_v49 }
 0x175   :  { %v4872_v51 = vunpack.c.l.b16 %v5959_v59  ;;  %v4877_v12 = vunpack.c.l.b16 %v5960_v20  ;;  %v4882_v35 = vunpack.c.l.b16 %v5961_v36  ;;  %v4887_v49 = vunpack.c.l.b16 %v5962_v57 }
 0x176   :  { %v5963_v18 = vcombine.low %v5843_v58, %v5843_v58  ;;  %v5964_v53 = vcombine.low %v5844_v26, %v5844_v26  ;;  %v5966_v14 = vcombine.low %v5845_v17, %v5845_v17  ;;  %v5968_v32 = vcombine.low %v5846_v41, %v5846_v41 }
 0x177   :  { %v5970_v58 = vcombine.low %v5847_v10, %v5847_v10  ;;  %v5972_v26 = vcombine.low %v5848_v42, %v5848_v42  ;;  %v5974_v17 = vcombine.low %v5849_v27, %v5849_v27  ;;  %v5976_v41 = vcombine.low %v5975_v45, %v5975_v45 }
 0x178   :  { %v4892_v59 = vunpack.c.l.b16 %v5963_v18  ;;  %v4897_v20 = vunpack.c.l.b16 %v5964_v53  ;;  %v4902_v36 = vunpack.c.l.b16 %v5966_v14  ;;  %v4907_v57 = vunpack.c.l.b16 %v5968_v32 }
 0x179   :  { %v4912_v18 = vunpack.c.l.b16 %v5970_v58  ;;  %v4917_v53 = vunpack.c.l.b16 %v5972_v26  ;;  %v4922_v14 = vunpack.c.l.b16 %v5974_v17  ;;  %v4927_v32 = vunpack.c.l.b16 %v5976_v41 }
 0x17a   :  { %5965 = vst [vmem:[#allocation5_spill] sm:$0xff] %v4897_v20  ;;  %5967 = vst [vmem:[#allocation6_spill] sm:$0xff] %v4902_v36  ;;  %v5986_v36 = vld [vmem:[#allocation16_spill] sm:$0xff]  ;;  %v5989_v20 = vld [vmem:[#allocation17_spill] sm:$0xff]  ;;  %vm2969_vm9 = vcmask 1047559   ;;  %vm3108_vm10 = vcmask 519168  }
 0x17b   :  { %5969 = vst [vmem:[#allocation7_spill] sm:$0xff] %v4907_v57  ;;  %5971 = vst [vmem:[#allocation8_spill] sm:$0xff] %v4912_v18  ;;  %v5977_v57 = vld [vmem:[#allocation13_spill] sm:$0xff]  ;;  %v5980_v18 = vld [vmem:[#allocation14_spill] sm:$0xff]  ;;  %v5987_v45 = vcombine.low %v5986_v36, %v5986_v36 }
 0x17c   :  { %5973 = vst [vmem:[#allocation9_spill] sm:$0xff] %v4917_v53  ;;  %v5978_v10 = vcombine.low %v5977_v57, %v5977_v57  ;;  %v5981_v42 = vcombine.low %v5980_v18, %v5980_v18  ;;  %v5983_v53 = vld [vmem:[#allocation15_spill] sm:$0xff]  ;;  %v5990_v57 = vcombine.low %v5989_v20, %v5989_v20 }
 0x17d   :  { %v5984_v27 = vcombine.low %v5983_v53, %v5983_v53  ;;  %v4947_v41 = vunpack.c.l.b16 %v5987_v45 }
 0x17e   :  { %v4932_v58 = vunpack.c.l.b16 %v5978_v10  ;;  %v4937_v26 = vunpack.c.l.b16 %v5981_v42  ;;  %v4952_v10 = vunpack.c.l.b16 %v5990_v57 }
 0x17f   :  { %v4942_v17 = vunpack.c.l.b16 %v5984_v27  ;;  %5988 = vst [vmem:[#allocation84_spill] sm:$0xff] %v4947_v41  ;;  %v6001_v41 = vld [vmem:[#allocation21_spill] sm:$0xff] }
 0x180   :  { %5979 = vst [vmem:[#allocation10_spill] sm:$0xff] %v4932_v58  ;;  %5982 = vst [vmem:[#allocation11_spill] sm:$0xff] %v4937_v26  ;;  %v5992_v58 = vld [vmem:[#allocation18_spill] sm:$0xff]  ;;  %v5995_v26 = vld [vmem:[#allocation19_spill] sm:$0xff]  ;;  %v6002_v20 = vcombine.low %v6001_v41, %v6001_v41 }
 0x181   :  { %5985 = vst [vmem:[#allocation83_spill] sm:$0xff] %v4942_v17  ;;  %5991 = vst [vmem:[#allocation85_spill] sm:$0xff] %v4952_v10  ;;  %v5993_v18 = vcombine.low %v5992_v58, %v5992_v58  ;;  %v5996_v53 = vcombine.low %v5995_v26, %v5995_v26  ;;  %v5998_v17 = vld [vmem:[#allocation20_spill] sm:$0xff]  ;;  %v6004_v10 = vld [vmem:[#allocation22_spill] sm:$0xff] }
 0x182   :  { %v5999_v36 = vcombine.low %v5998_v17, %v5998_v17  ;;  %v4972_v57 = vunpack.c.l.b16 %v6002_v20  ;;  %v6005_v58 = vcombine.low %v6004_v10, %v6004_v10 }
 0x183   :  { %v4957_v42 = vunpack.c.l.b16 %v5993_v18  ;;  %v4962_v27 = vunpack.c.l.b16 %v5996_v53 }
 0x184   :  { %v4967_v45 = vunpack.c.l.b16 %v5999_v36  ;;  %6003 = vst [vmem:[#allocation89_spill] sm:$0xff] %v4972_v57  ;;  %v4977_v18 = vunpack.c.l.b16 %v6005_v58  ;;  %v6016_v57 = vld [vmem:[#allocation26_spill] sm:$0xff] }
 0x185   :  { %5994 = vst [vmem:[#allocation86_spill] sm:$0xff] %v4957_v42  ;;  %5997 = vst [vmem:[#allocation87_spill] sm:$0xff] %v4962_v27  ;;  %v6007_v42 = vld [vmem:[#allocation23_spill] sm:$0xff]  ;;  %v6010_v27 = vld [vmem:[#allocation24_spill] sm:$0xff]  ;;  %v6017_v10 = vcombine.low %v6016_v57, %v6016_v57 }
 0x186   :  { %6000 = vst [vmem:[#allocation88_spill] sm:$0xff] %v4967_v45  ;;  %6006 = vst [vmem:[#allocation90_spill] sm:$0xff] %v4977_v18  ;;  %v6008_v26 = vcombine.low %v6007_v42, %v6007_v42  ;;  %v6011_v17 = vcombine.low %v6010_v27, %v6010_v27  ;;  %v6013_v45 = vld [vmem:[#allocation25_spill] sm:$0xff]  ;;  %v6019_v18 = vld [vmem:[#allocation27_spill] sm:$0xff] }
 0x187   :  { %v6014_v41 = vcombine.low %v6013_v45, %v6013_v45  ;;  %v4997_v58 = vunpack.c.l.b16 %v6017_v10  ;;  %v6020_v42 = vcombine.low %v6019_v18, %v6019_v18 }
 0x188   :  { %v4982_v53 = vunpack.c.l.b16 %v6008_v26  ;;  %v4987_v36 = vunpack.c.l.b16 %v6011_v17 }
 0x189   :  { %v4992_v20 = vunpack.c.l.b16 %v6014_v41  ;;  %6018 = vst [vmem:[#allocation15_spill] sm:$0xff] %v4997_v58  ;;  %v5002_v26 = vunpack.c.l.b16 %v6020_v42  ;;  %v6031_v58 = vld [vmem:[#allocation31_spill] sm:$0xff] }
 0x18a   :  { %6009 = vst [vmem:[#allocation12_spill] sm:$0xff] %v4982_v53  ;;  %6012 = vst [vmem:[#allocation13_spill] sm:$0xff] %v4987_v36  ;;  %v6022_v53 = vld [vmem:[#allocation28_spill] sm:$0xff]  ;;  %v6025_v36 = vld [vmem:[#allocation29_spill] sm:$0xff]  ;;  %v6032_v18 = vcombine.low %v6031_v58, %v6031_v58 }
 0x18b   :  { %6015 = vst [vmem:[#allocation14_spill] sm:$0xff] %v4992_v20  ;;  %6021 = vst [vmem:[#allocation16_spill] sm:$0xff] %v5002_v26  ;;  %v6023_v27 = vcombine.low %v6022_v53, %v6022_v53  ;;  %v6026_v45 = vcombine.low %v6025_v36, %v6025_v36  ;;  %v6028_v20 = vld [vmem:[#allocation30_spill] sm:$0xff]  ;;  %v6034_v26 = vld [vmem:[#allocation32_spill] sm:$0xff] }
 0x18c   :  { %v6029_v57 = vcombine.low %v6028_v20, %v6028_v20  ;;  %v5022_v42 = vunpack.c.l.b16 %v6032_v18  ;;  %v6035_v53 = vcombine.low %v6034_v26, %v6034_v26 }
 0x18d   :  { %v5007_v17 = vunpack.c.l.b16 %v6023_v27  ;;  %v5012_v41 = vunpack.c.l.b16 %v6026_v45 }
 0x18e   :  { %v5017_v10 = vunpack.c.l.b16 %v6029_v57  ;;  %6033 = vst [vmem:[#allocation20_spill] sm:$0xff] %v5022_v42  ;;  %v5027_v27 = vunpack.c.l.b16 %v6035_v53  ;;  %v6046_v42 = vld [vmem:[#allocation36_spill] sm:$0xff] }
 0x18f   :  { %6024 = vst [vmem:[#allocation17_spill] sm:$0xff] %v5007_v17  ;;  %6027 = vst [vmem:[#allocation18_spill] sm:$0xff] %v5012_v41  ;;  %v6037_v17 = vld [vmem:[#allocation33_spill] sm:$0xff]  ;;  %v6040_v41 = vld [vmem:[#allocation34_spill] sm:$0xff]  ;;  %v6047_v26 = vcombine.low %v6046_v42, %v6046_v42 }
 0x190   :  { %6030 = vst [vmem:[#allocation19_spill] sm:$0xff] %v5017_v10  ;;  %6036 = vst [vmem:[#allocation21_spill] sm:$0xff] %v5027_v27  ;;  %v6038_v36 = vcombine.low %v6037_v17, %v6037_v17  ;;  %v6041_v20 = vcombine.low %v6040_v41, %v6040_v41  ;;  %v6043_v10 = vld [vmem:[#allocation35_spill] sm:$0xff]  ;;  %v6049_v27 = vld [vmem:[#allocation37_spill] sm:$0xff] }
 0x191   :  { %v6044_v58 = vcombine.low %v6043_v10, %v6043_v10  ;;  %v5047_v53 = vunpack.c.l.b16 %v6047_v26  ;;  %v6050_v17 = vcombine.low %v6049_v27, %v6049_v27 }
 0x192   :  { %v5032_v45 = vunpack.c.l.b16 %v6038_v36  ;;  %v5037_v57 = vunpack.c.l.b16 %v6041_v20 }
 0x193   :  { %v5042_v18 = vunpack.c.l.b16 %v6044_v58  ;;  %6048 = vst [vmem:[#allocation25_spill] sm:$0xff] %v5047_v53  ;;  %v5052_v36 = vunpack.c.l.b16 %v6050_v17  ;;  %v6061_v53 = vld [vmem:[#allocation41_spill] sm:$0xff] }
 0x194   :  { %6039 = vst [vmem:[#allocation22_spill] sm:$0xff] %v5032_v45  ;;  %6042 = vst [vmem:[#allocation23_spill] sm:$0xff] %v5037_v57  ;;  %v6052_v45 = vld [vmem:[#allocation38_spill] sm:$0xff]  ;;  %v6055_v57 = vld [vmem:[#allocation39_spill] sm:$0xff]  ;;  %v6062_v27 = vcombine.low %v6061_v53, %v6061_v53 }
 0x195   :  { %6045 = vst [vmem:[#allocation24_spill] sm:$0xff] %v5042_v18  ;;  %6051 = vst [vmem:[#allocation26_spill] sm:$0xff] %v5052_v36  ;;  %v6053_v41 = vcombine.low %v6052_v45, %v6052_v45  ;;  %v6056_v10 = vcombine.low %v6055_v57, %v6055_v57  ;;  %v6058_v18 = vld [vmem:[#allocation40_spill] sm:$0xff]  ;;  %v6064_v36 = vld [vmem:[#allocation42_spill] sm:$0xff] }
 0x196   :  { %v6059_v42 = vcombine.low %v6058_v18, %v6058_v18  ;;  %v5072_v17 = vunpack.c.l.b16 %v6062_v27  ;;  %v6065_v45 = vcombine.low %v6064_v36, %v6064_v36 }
 0x197   :  { %v5057_v20 = vunpack.c.l.b16 %v6053_v41  ;;  %v5062_v58 = vunpack.c.l.b16 %v6056_v10 }
 0x198   :  { %v5067_v26 = vunpack.c.l.b16 %v6059_v42  ;;  %6063 = vst [vmem:[#allocation30_spill] sm:$0xff] %v5072_v17  ;;  %v5077_v41 = vunpack.c.l.b16 %v6065_v45  ;;  %v6076_v17 = vld [vmem:[#allocation46_spill] sm:$0xff] }
 0x199   :  { %6054 = vst [vmem:[#allocation27_spill] sm:$0xff] %v5057_v20  ;;  %6057 = vst [vmem:[#allocation28_spill] sm:$0xff] %v5062_v58  ;;  %v6067_v20 = vld [vmem:[#allocation43_spill] sm:$0xff]  ;;  %v6070_v58 = vld [vmem:[#allocation44_spill] sm:$0xff]  ;;  %v6077_v36 = vcombine.low %v6076_v17, %v6076_v17 }
 0x19a   :  { %6060 = vst [vmem:[#allocation29_spill] sm:$0xff] %v5067_v26  ;;  %6066 = vst [vmem:[#allocation31_spill] sm:$0xff] %v5077_v41  ;;  %v6068_v57 = vcombine.low %v6067_v20, %v6067_v20  ;;  %v6071_v18 = vcombine.low %v6070_v58, %v6070_v58  ;;  %v6073_v26 = vld [vmem:[#allocation45_spill] sm:$0xff]  ;;  %v6079_v41 = vld [vmem:[#allocation47_spill] sm:$0xff] }
 0x19b   :  { %v6074_v53 = vcombine.low %v6073_v26, %v6073_v26  ;;  %v5097_v45 = vunpack.c.l.b16 %v6077_v36  ;;  %v6080_v20 = vcombine.low %v6079_v41, %v6079_v41 }
 0x19c   :  { %v5082_v10 = vunpack.c.l.b16 %v6068_v57  ;;  %v5087_v42 = vunpack.c.l.b16 %v6071_v18 }
 0x19d   :  { %v5092_v27 = vunpack.c.l.b16 %v6074_v53  ;;  %6078 = vst [vmem:[#allocation35_spill] sm:$0xff] %v5097_v45  ;;  %v5102_v57 = vunpack.c.l.b16 %v6080_v20  ;;  %v6091_v45 = vld [vmem:[#allocation51_spill] sm:$0xff] }
 0x19e   :  { %6069 = vst [vmem:[#allocation32_spill] sm:$0xff] %v5082_v10  ;;  %6072 = vst [vmem:[#allocation33_spill] sm:$0xff] %v5087_v42  ;;  %v6082_v10 = vld [vmem:[#allocation48_spill] sm:$0xff]  ;;  %v6085_v42 = vld [vmem:[#allocation49_spill] sm:$0xff]  ;;  %v6092_v41 = vcombine.low %v6091_v45, %v6091_v45 }
 0x19f   :  { %6075 = vst [vmem:[#allocation34_spill] sm:$0xff] %v5092_v27  ;;  %6081 = vst [vmem:[#allocation36_spill] sm:$0xff] %v5102_v57  ;;  %v6083_v58 = vcombine.low %v6082_v10, %v6082_v10  ;;  %v6086_v26 = vcombine.low %v6085_v42, %v6085_v42  ;;  %v6088_v27 = vld [vmem:[#allocation50_spill] sm:$0xff]  ;;  %v6094_v57 = vld [vmem:[#allocation52_spill] sm:$0xff] }
 0x1a0   :  { %v6089_v17 = vcombine.low %v6088_v27, %v6088_v27  ;;  %v5122_v20 = vunpack.c.l.b16 %v6092_v41  ;;  %v6095_v10 = vcombine.low %v6094_v57, %v6094_v57 }
 0x1a1   :  { %v5107_v18 = vunpack.c.l.b16 %v6083_v58  ;;  %v5112_v53 = vunpack.c.l.b16 %v6086_v26 }
 0x1a2   :  { %v5117_v36 = vunpack.c.l.b16 %v6089_v17  ;;  %6093 = vst [vmem:[#allocation40_spill] sm:$0xff] %v5122_v20  ;;  %v5127_v58 = vunpack.c.l.b16 %v6095_v10  ;;  %v6106_v20 = vld [vmem:[#allocation56_spill] sm:$0xff] }
 0x1a3   :  { %6084 = vst [vmem:[#allocation37_spill] sm:$0xff] %v5107_v18  ;;  %6087 = vst [vmem:[#allocation38_spill] sm:$0xff] %v5112_v53  ;;  %v6097_v18 = vld [vmem:[#allocation53_spill] sm:$0xff]  ;;  %v6100_v53 = vld [vmem:[#allocation54_spill] sm:$0xff]  ;;  %v6107_v57 = vcombine.low %v6106_v20, %v6106_v20 }
 0x1a4   :  { %6090 = vst [vmem:[#allocation39_spill] sm:$0xff] %v5117_v36  ;;  %6096 = vst [vmem:[#allocation41_spill] sm:$0xff] %v5127_v58  ;;  %v6098_v42 = vcombine.low %v6097_v18, %v6097_v18  ;;  %v6101_v27 = vcombine.low %v6100_v53, %v6100_v53  ;;  %v6103_v36 = vld [vmem:[#allocation55_spill] sm:$0xff]  ;;  %v6109_v58 = vld [vmem:[#allocation57_spill] sm:$0xff] }
 0x1a5   :  { %v6104_v45 = vcombine.low %v6103_v36, %v6103_v36  ;;  %v5147_v10 = vunpack.c.l.b16 %v6107_v57  ;;  %v6110_v18 = vcombine.low %v6109_v58, %v6109_v58 }
 0x1a6   :  { %v5132_v26 = vunpack.c.l.b16 %v6098_v42  ;;  %v5137_v17 = vunpack.c.l.b16 %v6101_v27 }
 0x1a7   :  { %v5142_v41 = vunpack.c.l.b16 %v6104_v45  ;;  %6108 = vst [vmem:[#allocation45_spill] sm:$0xff] %v5147_v10  ;;  %v5152_v42 = vunpack.c.l.b16 %v6110_v18  ;;  %v6121_v10 = vld [vmem:[#allocation61_spill] sm:$0xff] }
 0x1a8   :  { %6099 = vst [vmem:[#allocation42_spill] sm:$0xff] %v5132_v26  ;;  %6102 = vst [vmem:[#allocation43_spill] sm:$0xff] %v5137_v17  ;;  %v6112_v26 = vld [vmem:[#allocation58_spill] sm:$0xff]  ;;  %v6115_v17 = vld [vmem:[#allocation59_spill] sm:$0xff]  ;;  %v6122_v58 = vcombine.low %v6121_v10, %v6121_v10 }
 0x1a9   :  { %6105 = vst [vmem:[#allocation44_spill] sm:$0xff] %v5142_v41  ;;  %6111 = vst [vmem:[#allocation46_spill] sm:$0xff] %v5152_v42  ;;  %v6113_v53 = vcombine.low %v6112_v26, %v6112_v26  ;;  %v6116_v36 = vcombine.low %v6115_v17, %v6115_v17  ;;  %v6118_v41 = vld [vmem:[#allocation60_spill] sm:$0xff]  ;;  %v6124_v42 = vld [vmem:[#allocation62_spill] sm:$0xff] }
 0x1aa   :  { %v6119_v20 = vcombine.low %v6118_v41, %v6118_v41  ;;  %v5172_v18 = vunpack.c.l.b16 %v6122_v58  ;;  %v6125_v26 = vcombine.low %v6124_v42, %v6124_v42 }
 0x1ab   :  { %v5157_v27 = vunpack.c.l.b16 %v6113_v53  ;;  %v5162_v45 = vunpack.c.l.b16 %v6116_v36 }
 0x1ac   :  { %v5167_v57 = vunpack.c.l.b16 %v6119_v20  ;;  %6123 = vst [vmem:[#allocation50_spill] sm:$0xff] %v5172_v18  ;;  %v5177_v53 = vunpack.c.l.b16 %v6125_v26  ;;  %v6136_v18 = vld [vmem:[#allocation66_spill] sm:$0xff] }
 0x1ad   :  { %6114 = vst [vmem:[#allocation47_spill] sm:$0xff] %v5157_v27  ;;  %6117 = vst [vmem:[#allocation48_spill] sm:$0xff] %v5162_v45  ;;  %v6127_v27 = vld [vmem:[#allocation63_spill] sm:$0xff]  ;;  %v6130_v45 = vld [vmem:[#allocation64_spill] sm:$0xff]  ;;  %v6137_v42 = vcombine.low %v6136_v18, %v6136_v18 }
 0x1ae   :  { %6120 = vst [vmem:[#allocation49_spill] sm:$0xff] %v5167_v57  ;;  %6126 = vst [vmem:[#allocation51_spill] sm:$0xff] %v5177_v53  ;;  %v6128_v17 = vcombine.low %v6127_v27, %v6127_v27  ;;  %v6131_v41 = vcombine.low %v6130_v45, %v6130_v45  ;;  %v6133_v57 = vld [vmem:[#allocation65_spill] sm:$0xff]  ;;  %v6139_v53 = vld [vmem:[#allocation67_spill] sm:$0xff] }
 0x1af   :  { %v6134_v10 = vcombine.low %v6133_v57, %v6133_v57  ;;  %v5197_v26 = vunpack.c.l.b16 %v6137_v42  ;;  %v6140_v27 = vcombine.low %v6139_v53, %v6139_v53 }
 0x1b0   :  { %v5182_v36 = vunpack.c.l.b16 %v6128_v17  ;;  %v5187_v20 = vunpack.c.l.b16 %v6131_v41 }
 0x1b1   :  { %v5192_v58 = vunpack.c.l.b16 %v6134_v10  ;;  %6138 = vst [vmem:[#allocation55_spill] sm:$0xff] %v5197_v26  ;;  %v5202_v17 = vunpack.c.l.b16 %v6140_v27  ;;  %v6151_v26 = vld [vmem:[#allocation71_spill] sm:$0xff] }
 0x1b2   :  { %6129 = vst [vmem:[#allocation52_spill] sm:$0xff] %v5182_v36  ;;  %6132 = vst [vmem:[#allocation53_spill] sm:$0xff] %v5187_v20  ;;  %v6142_v36 = vld [vmem:[#allocation68_spill] sm:$0xff]  ;;  %v6145_v20 = vld [vmem:[#allocation69_spill] sm:$0xff]  ;;  %v6152_v53 = vcombine.low %v6151_v26, %v6151_v26 }
 0x1b3   :  { %6135 = vst [vmem:[#allocation54_spill] sm:$0xff] %v5192_v58  ;;  %6141 = vst [vmem:[#allocation56_spill] sm:$0xff] %v5202_v17  ;;  %v6143_v45 = vcombine.low %v6142_v36, %v6142_v36  ;;  %v6146_v57 = vcombine.low %v6145_v20, %v6145_v20  ;;  %v6148_v58 = vld [vmem:[#allocation70_spill] sm:$0xff]  ;;  %v6154_v17 = vld [vmem:[#allocation72_spill] sm:$0xff] }
 0x1b4   :  { %v6149_v18 = vcombine.low %v6148_v58, %v6148_v58  ;;  %v5222_v27 = vunpack.c.l.b16 %v6152_v53  ;;  %v6155_v36 = vcombine.low %v6154_v17, %v6154_v17 }
 0x1b5   :  { %v5207_v41 = vunpack.c.l.b16 %v6143_v45  ;;  %v5212_v10 = vunpack.c.l.b16 %v6146_v57 }
 0x1b6   :  { %v5217_v42 = vunpack.c.l.b16 %v6149_v18  ;;  %6153 = vst [vmem:[#allocation60_spill] sm:$0xff] %v5222_v27  ;;  %v5227_v45 = vunpack.c.l.b16 %v6155_v36  ;;  %v6166_v27 = vld [vmem:[#allocation76_spill] sm:$0xff] }
 0x1b7   :  { %6144 = vst [vmem:[#allocation57_spill] sm:$0xff] %v5207_v41  ;;  %6147 = vst [vmem:[#allocation58_spill] sm:$0xff] %v5212_v10  ;;  %v6157_v41 = vld [vmem:[#allocation73_spill] sm:$0xff]  ;;  %v6160_v10 = vld [vmem:[#allocation74_spill] sm:$0xff]  ;;  %v6167_v17 = vcombine.low %v6166_v27, %v6166_v27 }
 0x1b8   :  { %6150 = vst [vmem:[#allocation59_spill] sm:$0xff] %v5217_v42  ;;  %6156 = vst [vmem:[#allocation61_spill] sm:$0xff] %v5227_v45  ;;  %v6158_v20 = vcombine.low %v6157_v41, %v6157_v41  ;;  %v6161_v58 = vcombine.low %v6160_v10, %v6160_v10  ;;  %v6163_v42 = vld [vmem:[#allocation75_spill] sm:$0xff]  ;;  %v6169_v45 = vld [vmem:[#allocation77_spill] sm:$0xff] }
 0x1b9   :  { %v6164_v26 = vcombine.low %v6163_v42, %v6163_v42  ;;  %v5247_v36 = vunpack.c.l.b16 %v6167_v17  ;;  %v6170_v41 = vcombine.low %v6169_v45, %v6169_v45 }
 0x1ba   :  { %v5232_v57 = vunpack.c.l.b16 %v6158_v20  ;;  %v5237_v18 = vunpack.c.l.b16 %v6161_v58 }
 0x1bb   :  { %v5242_v53 = vunpack.c.l.b16 %v6164_v26  ;;  %6168 = vst [vmem:[#allocation65_spill] sm:$0xff] %v5247_v36  ;;  %v5252_v20 = vunpack.c.l.b16 %v6170_v41  ;;  %v6178_v36 = vld [vmem:[#allocation81_spill] sm:$0xff] }
 0x1bc   :  { %6159 = vst [vmem:[#allocation62_spill] sm:$0xff] %v5232_v57  ;;  %6162 = vst [vmem:[#allocation63_spill] sm:$0xff] %v5237_v18  ;;  %v6172_v57 = vld [vmem:[#allocation78_spill] sm:$0xff]  ;;  %v6174_v18 = vld [vmem:[#allocation79_spill] sm:$0xff]  ;;  %v6179_v45 = vcombine.low %v6178_v36, %v6178_v36  ;;  %v6185_v36 = vcombine.low %v5923_v24, %v5923_v24  ;;  %v6189_v24 = vcombine.low %v5927_v1, %v5927_v1 }
 0x1bd   :  { %6165 = vst [vmem:[#allocation64_spill] sm:$0xff] %v5242_v53  ;;  %6171 = vst [vmem:[#allocation66_spill] sm:$0xff] %v5252_v20  ;;  %v6173_v10 = vcombine.low %v6172_v57, %v6172_v57  ;;  %v6175_v42 = vcombine.low %v6174_v18, %v6174_v18  ;;  %v6176_v53 = vld [vmem:[#allocation80_spill] sm:$0xff]  ;;  %v6180_v20 = vld [vmem:[#allocation82_spill] sm:$0xff]  ;;  %v6183_v18 = vcombine.low %v5921_v8, %v5921_v8 }
 0x1be   :  { %v6177_v27 = vcombine.low %v6176_v53, %v6176_v53  ;;  %v5272_v41 = vunpack.c.l.b16 %v6179_v45  ;;  %v6181_v57 = vcombine.low %v6180_v20, %v6180_v20  ;;  %v6184_v53 = vcombine.low %v5922_v50, %v5922_v50 }
 0x1bf   :  { %v5257_v58 = vunpack.c.l.b16 %v6173_v10  ;;  %v5262_v26 = vunpack.c.l.b16 %v6175_v42  ;;  %v5282_v42 = vunpack.c.l.b16 %v6183_v18  ;;  %v5292_v45 = vunpack.c.l.b16 %v6185_v36 }
 0x1c0   :  { %v5267_v17 = vunpack.c.l.b16 %v6177_v27  ;;  %v5277_v10 = vunpack.c.l.b16 %v6181_v57  ;;  %v5287_v27 = vunpack.c.l.b16 %v6184_v53  ;;  %v6186_v20 = vcombine.low %v5924_v37, %v5924_v37 }
 0x1c1   :  { %v6187_v8 = vcombine.low %v5925_v62, %v5925_v62  ;;  %v6188_v50 = vcombine.low %v5926_v9, %v5926_v9  ;;  %v5312_v36 = vunpack.c.l.b16 %v6189_v24  ;;  %v6190_v37 = vcombine.low %v5928_v55, %v5928_v55 }
 0x1c2   :  { %6182 = vst [vmem:[#allocation67_spill] sm:$0xff] %v5277_v10  ;;  %v5297_v57 = vunpack.c.l.b16 %v6186_v20  ;;  %v6192_v62 = vcombine.low %v4445_v3, %v4445_v3  ;;  %v6193_v10 = vld [vmem:[#allocation91_spill] sm:$0xff]  ;;  %v6195_v1 = vcombine.low %v4451_v0, %v4451_v0  ;;  %v6196_v55 = vcombine.low %v4463_v13, %v4463_v13 }
 0x1c3   :  { %v5302_v18 = vunpack.c.l.b16 %v6187_v8  ;;  %v5307_v53 = vunpack.c.l.b16 %v6188_v50  ;;  %v5317_v20 = vunpack.c.l.b16 %v6190_v37  ;;  %v6194_v9 = vcombine.low %v6193_v10, %v6193_v10 }
 0x1c4   :  { %v5322_v8 = vunpack.c.l.b16 %v6192_v62  ;;  %v5332_v24 = vunpack.c.l.b16 %v6195_v1  ;;  %v5337_v37 = vunpack.c.l.b16 %v6196_v55  ;;  %v6197_v3 = vcombine.low %v4471_v54, %v4471_v54 }
 0x1c5   :  { %6191 = vst [vmem:[#allocation68_spill] sm:$0xff] %v5317_v20  ;;  %v5327_v50 = vunpack.c.l.b16 %v6194_v9  ;;  %v6198_v10 = vcombine.low %v4485_v22, %v4485_v22  ;;  %v6199_v20 = vld [vmem:[#allocation92_spill] sm:$0xff]  ;;  %v6201_v13 = vcombine.low %v4533_v30, %v4533_v30  ;;  %v2958_v54 = vsel %vm2957_vm3, %v4727_v52, %v4722_v56 }
 0x1c6   :  { %v5342_v62 = vunpack.c.l.b16 %v6197_v3  ;;  %v6200_v0 = vcombine.low %v6199_v20, %v6199_v20  ;;  %v2960_v22 = vsel %vm2959_vm4, %v4732_v19, %v2958_v54  ;;  %v2971_v30 = vsel %vm2957_vm3, %v4767_v16, %v4762_v15  ;;  %v6209_v54 = vld [vmem:[#allocation6_spill] sm:$0xff] }
 0x1c7   :  { %v5347_v9 = vunpack.c.l.b16 %v6198_v10  ;;  %v5357_v55 = vunpack.c.l.b16 %v6201_v13  ;;  %v2978_v20 = vsel %vm2957_vm3, %v4807_v48, %v4802_v46  ;;  %v2962_v3 = vsel %vm2961_vm5, %v4737_v43, %v2960_v22  ;;  %v6205_v10 = vld [vmem:[#allocation10_spill] sm:$0xff]  ;;  %v6208_v13 = vld [vmem:[#allocation17_spill] sm:$0xff] }
 0x1c8   :  { %v5352_v1 = vunpack.c.l.b16 %v6200_v0  ;;  %v2972_v56 = vsel %vm2959_vm4, %v4772_v21, %v2971_v30  ;;  %v2979_v52 = vsel %vm2959_vm4, %v4812_v60, %v2978_v20  ;;  %v2985_v19 = vsel %vm2957_vm3, %v4847_v33, %v4842_v28  ;;  %v6207_v0 = vld [vmem:[#allocation16_spill] sm:$0xff]  ;;  %v6211_v30 = vld [vmem:[#allocation90_spill] sm:$0xff] }
 0x1c9   :  { %v2964_v15 = vsel %vm2963_vm6, %v4742_v6, %v2962_v3  ;;  %v2973_v16 = vsel %vm2961_vm5, %v4777_v25, %v2972_v56  ;;  %v2980_v46 = vsel %vm2961_vm5, %v4817_v61, %v2979_v52  ;;  %v2986_v43 = vsel %vm2959_vm4, %v4852_v44, %v2985_v19  ;;  %v6212_v3 = vld [vmem:[#allocation18_spill] sm:$0xff]  ;;  %v6213_v52 = vld [vmem:[#allocation7_spill] sm:$0xff] }
 0x1ca   :  { %v2966_v21 = vsel %vm2965_vm7, %v4747_v34, %v2964_v15  ;;  %v2974_v48 = vsel %vm2963_vm6, %v4782_v29, %v2973_v16  ;;  %v2981_v60 = vsel %vm2963_vm6, %v4822_v7, %v2980_v46  ;;  %v2987_v6 = vsel %vm2961_vm5, %v4857_v63, %v2986_v43  ;;  %v6203_v63 = vld [vmem:[#allocation88_spill] sm:$0xff]  ;;  %v6214_v15 = vld [vmem:[#allocation83_spill] sm:$0xff] }
 0x1cb   :  { %v2968_v25 = vsel %vm2967_vm8, %v4752_v4, %v2966_v21  ;;  %v2975_v61 = vsel %vm2965_vm7, %v4787_v38, %v2974_v48  ;;  %v2982_v28 = vsel %vm2965_vm7, %v4827_v23, %v2981_v60  ;;  %v2988_v34 = vsel %vm2963_vm6, %v4862_v11, %v2987_v6  ;;  %v6215_v46 = vld [vmem:[#allocation12_spill] sm:$0xff]  ;;  %v6216_v21 = vld [vmem:[#allocation19_spill] sm:$0xff] }
 0x1cc   :  { %v5405_v29 = vsel %vm2969_vm9, %v4757_v39, %v2968_v25  ;;  %v2976_v7 = vsel %vm2967_vm8, %v4792_v47, %v2975_v61  ;;  %v2983_v33 = vsel %vm2967_vm8, %v4832_v40, %v2982_v28  ;;  %v2989_v4 = vsel %vm2965_vm7, %v4867_v31, %v2988_v34  ;;  %v6204_v31 = vld [vmem:[#allocation5_spill] sm:$0xff]  ;;  %v6217_v60 = vld [vmem:[#allocation8_spill] sm:$0xff] }
 0x1cd   :  { %v5415_v38 = vsel %vm2969_vm9, %v4797_v5, %v2976_v7  ;;  %v5419_v23 = vsel %vm2969_vm9, %v4837_v2, %v2983_v33  ;;  %v2990_v39 = vsel %vm2967_vm8, %v4872_v51, %v2989_v4  ;;  %v2992_v47 = vsel %vm2957_vm3, %v4887_v49, %v4882_v35  ;;  %v6202_v2 = vld [vmem:[#allocation87_spill] sm:$0xff]  ;;  %v6206_v49 = vld [vmem:[#allocation89_spill] sm:$0xff]  ;;  %v6218_v25 = vld [vmem:[#allocation84_spill] sm:$0xff] }
 0x1ce   :  { %v5428_v40 = vsel %vm2969_vm9, %v4877_v12, %v2990_v39  ;;  %v2993_v44 = vsel %vm2959_vm4, %v4892_v59, %v2992_v47  ;;  %v2999_v5 = vsel %vm2957_vm3, %v4927_v32, %v4922_v14  ;;  %v3006_v11 = vsel %vm2957_vm3, %v6203_v63, %v6202_v2  ;;  %v6210_v32 = vld [vmem:[#allocation11_spill] sm:$0xff]  ;;  %v6219_v28 = vld [vmem:[#allocation13_spill] sm:$0xff]  ;;  %v6220_v7 = vld [vmem:[#allocation20_spill] sm:$0xff] }
 0x1cf   :  { %v2994_v51 = vsel %vm2961_vm5, %v6204_v31, %v2993_v44  ;;  %v3000_v35 = vsel %vm2959_vm4, %v6205_v10, %v2999_v5  ;;  %v3007_v12 = vsel %vm2959_vm4, %v6206_v49, %v3006_v11  ;;  %v3013_v59 = vsel %vm2957_vm3, %v6208_v13, %v6207_v0  ;;  %v6221_v4 = vld [vmem:[#allocation9_spill] sm:$0xff]  ;;  %v6223_v5 = vld [vmem:[#allocation14_spill] sm:$0xff]  ;;  %v6226_v10 = vld [vmem:[#allocation15_spill] sm:$0xff] }
 0x1d0   :  { %v2995_v14 = vsel %vm2963_vm6, %v6209_v54, %v2994_v51  ;;  %v3001_v22 = vsel %vm2961_vm5, %v6210_v32, %v3000_v35  ;;  %v3008_v20 = vsel %vm2961_vm5, %v6211_v30, %v3007_v12  ;;  %v3014_v56 = vsel %vm2959_vm4, %v6212_v3, %v3013_v59  ;;  %v6222_v47 = vld [vmem:[#allocation85_spill] sm:$0xff]  ;;  %v6225_v31 = vld [vmem:[#allocation86_spill] sm:$0xff]  ;;  %v6228_v0 = vld [vmem:[#allocation24_spill] sm:$0xff] }
 0x1d1   :  { %v2996_v19 = vsel %vm2965_vm7, %v6213_v52, %v2995_v14  ;;  %v3002_v16 = vsel %vm2963_vm6, %v6214_v15, %v3001_v22  ;;  %v3009_v43 = vsel %vm2963_vm6, %v6215_v46, %v3008_v20  ;;  %v3015_v48 = vsel %vm2961_vm5, %v6216_v21, %v3014_v56  ;;  %v6224_v63 = vld [vmem:[#allocation21_spill] sm:$0xff]  ;;  %v6227_v49 = vld [vmem:[#allocation22_spill] sm:$0xff]  ;;  %v6230_v54 = vld [vmem:[#allocation23_spill] sm:$0xff] }
 0x1d2   :  { %v2997_v6 = vsel %vm2967_vm8, %v6217_v60, %v2996_v19  ;;  %v3003_v61 = vsel %vm2965_vm7, %v6218_v25, %v3002_v16  ;;  %v3010_v34 = vsel %vm2965_vm7, %v6219_v28, %v3009_v43  ;;  %v3016_v33 = vsel %vm2963_vm6, %v6220_v7, %v3015_v48  ;;  %v6229_v13 = vld [vmem:[#allocation25_spill] sm:$0xff]  ;;  %v6231_v32 = vld [vmem:[#allocation26_spill] sm:$0xff]  ;;  %v6232_v30 = vld [vmem:[#allocation32_spill] sm:$0xff] }
 0x1d3   :  { %v5473_v39 = vsel %vm2969_vm9, %v6221_v4, %v2997_v6  ;;  %v3004_v44 = vsel %vm2967_vm8, %v6222_v47, %v3003_v61  ;;  %v3011_v2 = vsel %vm2967_vm8, %v6223_v5, %v3010_v34  ;;  %v3017_v11 = vsel %vm2965_vm7, %v6224_v63, %v3016_v33  ;;  %v6233_v20 = vld [vmem:[#allocation33_spill] sm:$0xff]  ;;  %v6234_v56 = vld [vmem:[#allocation40_spill] sm:$0xff]  ;;  %v6236_v15 = vld [vmem:[#allocation27_spill] sm:$0xff] }
 0x1d4   :  { %v5483_v51 = vsel %vm2969_vm9, %v6225_v31, %v3004_v44  ;;  %v5487_v35 = vsel %vm2969_vm9, %v6226_v10, %v3011_v2  ;;  %v3018_v12 = vsel %vm2967_vm8, %v6227_v49, %v3017_v11  ;;  %v3020_v59 = vsel %vm2957_vm3, %v6229_v13, %v6228_v0  ;;  %v6235_v52 = vld [vmem:[#allocation41_spill] sm:$0xff]  ;;  %v6237_v46 = vld [vmem:[#allocation34_spill] sm:$0xff]  ;;  %v6239_v60 = vld [vmem:[#allocation48_spill] sm:$0xff] }
 0x1d5   :  { %v5496_v14 = vsel %vm2969_vm9, %v6230_v54, %v3018_v12  ;;  %v3021_v22 = vsel %vm2959_vm4, %v6231_v32, %v3020_v59  ;;  %v3027_v3 = vsel %vm2957_vm3, %v6233_v20, %v6232_v30  ;;  %v3034_v19 = vsel %vm2957_vm3, %v6235_v52, %v6234_v56  ;;  %v6238_v21 = vld [vmem:[#allocation42_spill] sm:$0xff]  ;;  %v6240_v6 = vld [vmem:[#allocation49_spill] sm:$0xff]  ;;  %v6241_v61 = vld [vmem:[#allocation28_spill] sm:$0xff] }
 0x1d6   :  { %v3022_v16 = vsel %vm2961_vm5, %v6236_v15, %v3021_v22  ;;  %v3028_v43 = vsel %vm2959_vm4, %v6237_v46, %v3027_v3  ;;  %v3035_v48 = vsel %vm2959_vm4, %v6238_v21, %v3034_v19  ;;  %v3041_v25 = vsel %vm2957_vm3, %v6240_v6, %v6239_v60  ;;  %v6242_v34 = vld [vmem:[#allocation35_spill] sm:$0xff]  ;;  %v6244_v47 = vld [vmem:[#allocation50_spill] sm:$0xff]  ;;  %v6245_v5 = vld [vmem:[#allocation29_spill] sm:$0xff] }
 0x1d7   :  { %v3023_v28 = vsel %vm2963_vm6, %v6241_v61, %v3022_v16  ;;  %v3029_v7 = vsel %vm2961_vm5, %v6242_v34, %v3028_v43  ;;  %v6243_v33 = vld [vmem:[#allocation43_spill] sm:$0xff]  ;;  %v3042_v44 = vsel %vm2959_vm4, %v6244_v47, %v3041_v25  ;;  %v6246_v63 = vld [vmem:[#allocation36_spill] sm:$0xff]  ;;  %v6249_v0 = vld [vmem:[#allocation30_spill] sm:$0xff] }
 0x1d8   :  { %v3036_v4 = vsel %vm2961_vm5, %v6243_v33, %v3035_v48  ;;  %v3024_v2 = vsel %vm2965_vm7, %v6245_v5, %v3023_v28  ;;  %v3030_v11 = vsel %vm2963_vm6, %v6246_v63, %v3029_v7  ;;  %v6247_v31 = vld [vmem:[#allocation44_spill] sm:$0xff]  ;;  %v6248_v49 = vld [vmem:[#allocation51_spill] sm:$0xff]  ;;  %v6250_v59 = vld [vmem:[#allocation37_spill] sm:$0xff] }
 0x1d9   :  { %v3037_v10 = vsel %vm2963_vm6, %v6247_v31, %v3036_v4  ;;  %v3043_v12 = vsel %vm2961_vm5, %v6248_v49, %v3042_v44  ;;  %v3025_v13 = vsel %vm2967_vm8, %v6249_v0, %v3024_v2  ;;  %v3031_v54 = vsel %vm2965_vm7, %v6250_v59, %v3030_v11  ;;  %v6251_v32 = vld [vmem:[#allocation45_spill] sm:$0xff]  ;;  %v6252_v30 = vld [vmem:[#allocation52_spill] sm:$0xff]  ;;  %v6253_v3 = vld [vmem:[#allocation31_spill] sm:$0xff] }
 0x1da   :  { %v3038_v22 = vsel %vm2965_vm7, %v6251_v32, %v3037_v10  ;;  %v3044_v20 = vsel %vm2963_vm6, %v6252_v30, %v3043_v12  ;;  %v5541_v56 = vsel %vm2969_vm9, %v6253_v3, %v3025_v13  ;;  %v6254_v52 = vld [vmem:[#allocation38_spill] sm:$0xff]  ;;  %v6256_v46 = vld [vmem:[#allocation53_spill] sm:$0xff]  ;;  %v6257_v21 = vld [vmem:[#allocation39_spill] sm:$0xff]  ;;  %v3062_v11 = vsel %vm2957_vm3, %v5287_v27, %v5282_v42 }
 0x1db   :  { %v3032_v19 = vsel %vm2967_vm8, %v6254_v52, %v3031_v54  ;;  %v6255_v15 = vld [vmem:[#allocation46_spill] sm:$0xff]  ;;  %v3045_v43 = vsel %vm2965_vm7, %v6256_v46, %v3044_v20  ;;  %v6258_v60 = vld [vmem:[#allocation47_spill] sm:$0xff]  ;;  %v6260_v28 = vld [vmem:[#allocation56_spill] sm:$0xff]  ;;  %v3063_v0 = vsel %vm2959_vm4, %v5292_v45, %v3062_v11  ;;  %v3069_v13 = vsel %vm2957_vm3, %v5327_v50, %v5322_v8 }
 0x1dc   :  { %v3039_v16 = vsel %vm2967_vm8, %v6255_v15, %v3038_v22  ;;  %v3033_v48 = vsel %vm2969_vm9, %v6257_v21, %v3032_v19  ;;  %v6259_v25 = vld [vmem:[#allocation54_spill] sm:$0xff]  ;;  %v6261_v34 = vld [vmem:[#allocation57_spill] sm:$0xff]  ;;  %v6262_v33 = vld [vmem:[#allocation55_spill] sm:$0xff]  ;;  %v3064_v42 = vsel %vm2961_vm5, %v5297_v57, %v3063_v0  ;;  %v3070_v27 = vsel %vm2959_vm4, %v5332_v24, %v3069_v13 }
 0x1dd   :  { %v3040_v6 = vsel %vm2969_vm9, %v6258_v60, %v3039_v16  ;;  %v3046_v61 = vsel %vm2967_vm8, %v6259_v25, %v3045_v43  ;;  %v3048_v7 = vsel %vm2957_vm3, %v6261_v34, %v6260_v28  ;;  %v6263_v47 = vld [vmem:[#allocation58_spill] sm:$0xff]  ;;  %v6264_v5 = vld [vmem:[#allocation64_spill] sm:$0xff]  ;;  %v6265_v2 = vld [vmem:[#allocation65_spill] sm:$0xff]  ;;  %v3065_v8 = vsel %vm2963_vm6, %v5302_v18, %v3064_v42 }
 0x1de   :  { %v3047_v4 = vsel %vm2969_vm9, %v6262_v33, %v3046_v61  ;;  %v3049_v44 = vsel %vm2959_vm4, %v6263_v47, %v3048_v7  ;;  %v3055_v63 = vsel %vm2957_vm3, %v6265_v2, %v6264_v5  ;;  %v6266_v31 = vld [vmem:[#allocation59_spill] sm:$0xff]  ;;  %v6267_v49 = vld [vmem:[#allocation66_spill] sm:$0xff]  ;;  %v6268_v59 = vld [vmem:[#allocation60_spill] sm:$0xff]  ;;  %v3071_v50 = vsel %vm2961_vm5, %v5337_v37, %v3070_v27 }
 0x1df   :  { %v3050_v10 = vsel %vm2961_vm5, %v6266_v31, %v3049_v44  ;;  %v3056_v12 = vsel %vm2959_vm4, %v6267_v49, %v3055_v63  ;;  %v6269_v22 = vld [vmem:[#allocation61_spill] sm:$0xff]  ;;  %v6270_v20 = vld [vmem:[#allocation62_spill] sm:$0xff]  ;;  %v3066_v24 = vsel %vm2965_vm7, %v5307_v53, %v3065_v8  ;;  %v3072_v3 = vsel %vm2963_vm6, %v5342_v62, %v3071_v50  ;;  %v6271_v52 = vld [vmem:[#allocation63_spill] sm:$0xff] }
 0x1e0   :  { %v3051_v54 = vsel %vm2963_vm6, %v6268_v59, %v3050_v10  ;;  %v3057_v32 = vsel %vm2961_vm5, %v5257_v58, %v3056_v12  ;;  %v3067_v37 = vsel %vm2967_vm8, %v5312_v36, %v3066_v24  ;;  %v3073_v19 = vsel %vm2965_vm7, %v5347_v9, %v3072_v3  ;;  %v6272_v15 = vld [vmem:[#allocation67_spill] sm:$0xff]  ;;  %v6273_v16 = vld [vmem:[#allocation68_spill] sm:$0xff] }
 0x1e1   :  { %v3052_v30 = vsel %vm2965_vm7, %v6269_v22, %v3051_v54  ;;  %v3058_v45 = vsel %vm2963_vm6, %v5262_v26, %v3057_v32  ;;  %v3068_v53 = vsel %vm2969_vm9, %v6273_v16, %v3067_v37  ;;  %v3074_v62 = vsel %vm2967_vm8, %v5352_v1, %v3073_v19 }
 0x1e2   :  { %v3053_v58 = vsel %vm2967_vm8, %v6270_v20, %v3052_v30  ;;  %v3059_v57 = vsel %vm2965_vm7, %v5267_v17, %v3058_v45  ;;  %v3076_v46 = vpack.c.b16 %v5405_v29, %v5405_v29  ;;  %v3077_v36 = vpack.c.b16 %v5415_v38, %v5415_v38 }
 0x1e3   :  { %v3054_v26 = vsel %vm2969_vm9, %v6271_v52, %v3053_v58  ;;  %v3060_v18 = vsel %vm2967_vm8, %v5272_v41, %v3059_v57  ;;  %v3075_v41 = vsel %vm2969_vm9, %v5357_v55, %v3074_v62  ;;  %v3078_v9 = vpack.c.b16 %v5419_v23, %v5419_v23 }
 0x1e4   :  { %v3061_v17 = vsel %vm2969_vm9, %v6272_v15, %v3060_v18  ;;  %v3079_v43 = vpack.c.b16 %v5428_v40, %v5428_v40  ;;  %v3080_v1 = vpack.c.b16 %v5473_v39, %v5473_v39  ;;  %v3081_v29 = vpack.c.b16 %v5483_v51, %v5483_v51  ;;  %3109 = vst.msk [vmem:[#allocation2] sm:$0xf] %vm3108_vm10, %v3076_v46 }
 0x1e5   :  { %v3082_v21 = vpack.c.b16 %v5487_v35, %v5487_v35  ;;  %v3083_v55 = vpack.c.b16 %v5496_v14, %v5496_v14  ;;  %v3084_v38 = vpack.c.b16 %v5541_v56, %v5541_v56  ;;  %v3085_v60 = vpack.c.b16 %v3033_v48, %v3033_v48  ;;  %3110 = vst.msk [vmem:[#allocation2 + $0x4] sm:$0xf] %vm3108_vm10, %v3077_v36 }
 0x1e6   :  { %v3086_v23 = vpack.c.b16 %v3040_v6, %v3040_v6  ;;  %v3087_v25 = vpack.c.b16 %v3047_v4, %v3047_v4  ;;  %v3088_v40 = vpack.c.b16 %v3054_v26, %v3054_v26  ;;  %v3089_v61 = vpack.c.b16 %v3061_v17, %v3061_v17  ;;  %3111 = vst.msk [vmem:[#allocation2 + $0x8] sm:$0xf] %vm3108_vm10, %v3078_v9 }
 0x1e7   :  { %v3090_v39 = vpack.c.b16 %v3068_v53, %v3068_v53  ;;  %v3091_v28 = vpack.c.b16 %v3075_v41, %v3075_v41  ;;  %3112 = vst.msk [vmem:[#allocation2 + $0xc] sm:$0xf] %vm3108_vm10, %v3079_v43  ;;  %3113 = vst.msk [vmem:[#allocation2 + $0x10] sm:$0xf] %vm3108_vm10, %v3080_v1 }
 0x1e8   :  { %3114 = vst.msk [vmem:[#allocation2 + $0x14] sm:$0xf] %vm3108_vm10, %v3081_v29  ;;  %3115 = vst.msk [vmem:[#allocation2 + $0x18] sm:$0xf] %vm3108_vm10, %v3082_v21 }
 0x1e9   :  { %3116 = vst.msk [vmem:[#allocation2 + $0x1c] sm:$0xf] %vm3108_vm10, %v3083_v55  ;;  %3117 = vst.msk [vmem:[#allocation2 + $0x20] sm:$0xf] %vm3108_vm10, %v3084_v38 }
 0x1ea   :  { %3118 = vst.msk [vmem:[#allocation2 + $0x24] sm:$0xf] %vm3108_vm10, %v3085_v60  ;;  %3119 = vst.msk [vmem:[#allocation2 + $0x28] sm:$0xf] %vm3108_vm10, %v3086_v23 }
 0x1eb   :  { %3120 = vst.msk [vmem:[#allocation2 + $0x2c] sm:$0xf] %vm3108_vm10, %v3087_v25  ;;  %3121 = vst.msk [vmem:[#allocation2 + $0x30] sm:$0xf] %vm3108_vm10, %v3088_v40 }
 0x1ec   :  { %3122 = vst.msk [vmem:[#allocation2 + $0x34] sm:$0xf] %vm3108_vm10, %v3089_v61  ;;  %3123 = vst.msk [vmem:[#allocation2 + $0x38] sm:$0xf] %vm3108_vm10, %v3090_v39 }
 0x1ed   :  { %3124 = vst.msk [vmem:[#allocation2 + $0x3c] sm:$0xf] %vm3108_vm10, %v3091_v28 }
 0x1ee   :  { %3539 = shalt.err (!%p3536_p4)
}
 0x1ef   :  { %s3551_s3 = smov 64   ;;  %s3552_s4 = smov 4  }
 0x1f0   :  { %3136 = dma.vmem_to_hbm [thread:$0]  %s5635_s30, 1024, %s5662_s1, [#allocation3], %s3551_s3, %s3551_s3, %s3552_s4  }
 0x1f1   :  { %3548 = dma.done.wait [#allocation3], 1024  }
 0x1f2   :  { %3549 = vsyncadd [#allocation3], 4294966272 }
 0x1f3   :  { %3140 = vsyncpa [#allocation3], 1 }

</bundles_post_ra>
